<compile_context>
chip_gen: v7x
topology: tpu7x:2x2x1
jax: 0.10.0
libtpu: 0.0.40
codegen_flags: <defaults>
</compile_context>

<pallas_src>
import jax
import jax.numpy as jnp
from jax import lax
from jax.experimental import pallas as pl
from jax.experimental.pallas import tpu as pltpu

# ---------------- synthetic roberta-base-like config (small) ----------------
HIDDEN = 128
N_HEADS = 4
HEAD_DIM = HIDDEN // N_HEADS
N_LAYERS = 2
INTERMEDIATE = 256
VOCAB = 100
MAX_POS = 40
NUM_CLASSES = 10
CLASS_PAD = 128                 # lane-dense padded logits width
LN_EPS = 1e-5
PAD_IDX = 1                     # RoBERTa padding_idx
ATTN_SCALE = 1.0 / (HEAD_DIM ** 0.5)

POS_OFFSET = 128                # position rows start here in the fused table
TBL_ROWS = 256                  # fused embedding table rows (word 0..99, pos 128..167)
P_ROWS = 1 + 4 * N_LAYERS       # param-bank rows


# ============================ fused Pallas kernel ============================

def _layer_norm(x, g, b):
    mean = jnp.mean(x, axis=-1, keepdims=True)
    var = jnp.mean(jnp.square(x - mean), axis=-1, keepdims=True)
    return (x - mean) * lax.rsqrt(var + LN_EPS) * g + b


def _encoder_kernel(ids_ref, mask_ref, tbl_ref,
                    wqkv_ref, wo_ref, w1_ref, w2_ref, fc_w_ref,
                    pbank_ref, out_ref):
    rows = ids_ref.shape[0]                                   # B*S token rows

    # ---- embeddings via one-hot bf16 matmul (rides on the MXU) ----
    ids = ids_ref[...]                                        # (rows, 2) int32
    lane = lax.broadcasted_iota(jnp.int32, (rows, TBL_ROWS), 1)
    hit = jnp.logical_or(lane == ids[:, 0:1],                 # word(+type) row
                         lane == ids[:, 1:2])                 # position row
    onehot = jnp.where(hit, 1.0, 0.0).astype(jnp.bfloat16)    # (rows, TBL_ROWS)
    emb = jnp.dot(onehot, tbl_ref[...],
                  preferred_element_type=jnp.float32)         # (rows, H) f32

    # ---- param-bank slices (static -> zero-cost ref views) ----
    emb_ln_g = pbank_ref[0:1, 0:HIDDEN]
    emb_ln_b = pbank_ref[0:1, HIDDEN:2 * HIDDEN]
    fc_b     = pbank_ref[0:1, 2 * HIDDEN:2 * HIDDEN + CLASS_PAD]

    h = _layer_norm(emb, emb_ln_g, emb_ln_b)                  # emb LN (no residual)

    # Additive mask: block-diagonal over batch + key padding, precomputed in glue.
    neg = mask_ref[...]                                       # (rows, rows) f32

    # Static unroll over the 2 layers; weights are read at the dot sites so
    # live ranges stay short (no vreg-file-sized weight preloads).
    # TODO(synk): if a bundle dump ever shows spills here, switch to
    # lax.fori_loop with a dynamic leading index into the stacked weight refs.
    for li in range(N_LAYERS):
        r = 1 + 4 * li
        bqkv  = pbank_ref[r:r + 1, 0:3 * HIDDEN]
        bo    = pbank_ref[r + 1:r + 2, 0:HIDDEN]
        ln1_g = pbank_ref[r + 1:r + 2, HIDDEN:2 * HIDDEN]
        ln1_b = pbank_ref[r + 1:r + 2, 2 * HIDDEN:3 * HIDDEN]
        b1    = pbank_ref[r + 2:r + 3, 0:INTERMEDIATE]
        b2    = pbank_ref[r + 2:r + 3, INTERMEDIATE:INTERMEDIATE + HIDDEN]
        ln2_g = pbank_ref[r + 3:r + 4, 0:HIDDEN]
        ln2_b = pbank_ref[r + 3:r + 4, HIDDEN:2 * HIDDEN]

        x_in = h                                              # (rows, H) f32

        # ---- fused QKV projection: one (rows,H)@(H,3H) matmul ----
        # (ATTN_SCALE already folded into the Q columns/bias at pack time.)
        qkv = jnp.dot(x_in.astype(jnp.bfloat16), wqkv_ref[li],
                      preferred_element_type=jnp.float32) + bqkv   # (rows, 3H)

        # ---- multi-head attention, batch folded via block-diagonal mask ----
        attn = jnp.zeros((rows, HIDDEN), jnp.float32)
        for hh in range(N_HEADS):
            q0 = hh * HEAD_DIM
            k0 = HIDDEN + hh * HEAD_DIM
            v0 = 2 * HIDDEN + hh * HEAD_DIM
            qh = qkv[:, q0:q0 + HEAD_DIM].astype(jnp.bfloat16)     # (rows, D)
            kh = qkv[:, k0:k0 + HEAD_DIM].astype(jnp.bfloat16)
            vh = qkv[:, v0:v0 + HEAD_DIM].astype(jnp.bfloat16)
            # q @ k^T via contraction of last dims (no explicit transpose).
            s = lax.dot_general(qh, kh, (((1,), (1,)), ((), ())),
                                preferred_element_type=jnp.float32)  # (rows, rows)
            s = s + neg
            s = s - jnp.max(s, axis=-1, keepdims=True)
            p = jnp.exp(s)
            p = p * pl.reciprocal(jnp.sum(p, axis=-1, keepdims=True),
                                  approx=True)
            o = jnp.dot(p.astype(jnp.bfloat16), vh,
                        preferred_element_type=jnp.float32)          # (rows, D)
            # No lane concat: split wo along its (sublane-aligned) contraction
            # axis and accumulate directly.
            attn = attn + jnp.dot(o.astype(jnp.bfloat16),
                                  wo_ref[li, q0:q0 + HEAD_DIM, :],
                                  preferred_element_type=jnp.float32)

        h = _layer_norm(attn + bo + x_in, ln1_g, ln1_b)

        # ---- FFN + add & LN ----
        ffn = jnp.dot(h.astype(jnp.bfloat16), w1_ref[li],
                      preferred_element_type=jnp.float32) + b1       # (rows, I)
        # TODO(synk): HF RoBERTa uses exact erf GELU; tanh-approx kept (EUP path).
        ffn = jax.nn.gelu(ffn, approximate=True)
        ffn = jnp.dot(ffn.astype(jnp.bfloat16), w2_ref[li],
                      preferred_element_type=jnp.float32) + b2       # (rows, H)
        h = _layer_norm(ffn + h, ln2_g, ln2_b)

    # ---- classification head on ALL rows (CLS rows selected in the wrapper;
    #      relu(relu(x)) == relu(x)).  Lane-dense 128-wide padded logits. ----
    pooled = jnp.maximum(h, 0.0)
    logits = jnp.dot(pooled.astype(jnp.bfloat16), fc_w_ref[...],
                     preferred_element_type=jnp.float32) + fc_b      # (rows, 128)
    out_ref[...] = logits.astype(out_ref.dtype)


# ============================ params (synthetic) ============================

def init_params(key):
    def nrm(k, shape, scale=0.02):
        return (scale * jax.random.normal(k, shape)).astype(jnp.float32)

    keys = jax.random.split(key, 8 + N_LAYERS)
    params = {
        "word_emb": nrm(keys[0], (VOCAB, HIDDEN)),
        "pos_emb": nrm(keys[1], (MAX_POS, HIDDEN)),
        "type_emb": nrm(keys[2], (1, HIDDEN)),
        "emb_ln_g": jnp.ones((HIDDEN,), jnp.float32),
        "emb_ln_b": jnp.zeros((HIDDEN,), jnp.float32),
        "fc_w": nrm(keys[3], (HIDDEN, NUM_CLASSES)),
        "fc_b": jnp.zeros((NUM_CLASSES,), jnp.float32),
        "layers": [],
    }
    for li in range(N_LAYERS):
        lk = jax.random.split(keys[8 + li], 8)
        params["layers"].append({
            "wq": nrm(lk[0], (HIDDEN, HIDDEN)), "bq": jnp.zeros((HIDDEN,), jnp.float32),
            "wk": nrm(lk[1], (HIDDEN, HIDDEN)), "bk": jnp.zeros((HIDDEN,), jnp.float32),
            "wv": nrm(lk[2], (HIDDEN, HIDDEN)), "bv": jnp.zeros((HIDDEN,), jnp.float32),
            "wo": nrm(lk[3], (HIDDEN, HIDDEN)), "bo": jnp.zeros((HIDDEN,), jnp.float32),
            "ln1_g": jnp.ones((HIDDEN,), jnp.float32), "ln1_b": jnp.zeros((HIDDEN,), jnp.float32),
            "w1": nrm(lk[4], (HIDDEN, INTERMEDIATE)), "b1": jnp.zeros((INTERMEDIATE,), jnp.float32),
            "w2": nrm(lk[5], (INTERMEDIATE, HIDDEN)), "b2": jnp.zeros((HIDDEN,), jnp.float32),
            "ln2_g": jnp.ones((HIDDEN,), jnp.float32), "ln2_b": jnp.zeros((HIDDEN,), jnp.float32),
        })
    return params


def pack_params(params):
    """Fuse/stack weights: bf16 matmul weights (Q pre-scaled), one fused
    embedding table, and a single f32 param bank for all small vectors."""
    L = params["layers"]

    def qkv_w(l):   # fold attention scale into Q columns
        return jnp.concatenate([l["wq"] * ATTN_SCALE, l["wk"], l["wv"]], axis=1)

    def qkv_b(l):
        return jnp.concatenate([l["bq"] * ATTN_SCALE, l["bk"], l["bv"]])

    wqkv = jnp.stack([qkv_w(l) for l in L]).astype(jnp.bfloat16)    # (L, H, 3H)
    wo = jnp.stack([l["wo"] for l in L]).astype(jnp.bfloat16)       # (L, H, H)
    w1 = jnp.stack([l["w1"] for l in L]).astype(jnp.bfloat16)       # (L, H, I)
    w2 = jnp.stack([l["w2"] for l in L]).astype(jnp.bfloat16)       # (L, I, H)

    fc_w = jnp.zeros((HIDDEN, CLASS_PAD), jnp.float32)
    fc_w = fc_w.at[:, :NUM_CLASSES].set(params["fc_w"]).astype(jnp.bfloat16)

    # Fused embedding table: rows 0..VOCAB-1 = word + type (type ids are all 0,
    # so it is added to every token), rows POS_OFFSET.. = positions.
    tbl = jnp.zeros((TBL_ROWS, HIDDEN), jnp.float32)
    tbl = tbl.at[:VOCAB, :].set(params["word_emb"] + params["type_emb"][0])
    tbl = tbl.at[POS_OFFSET:POS_OFFSET + MAX_POS, :].set(params["pos_emb"])
    tbl = tbl.astype(jnp.bfloat16)

    # Param bank (P_ROWS, 384): all biases / LN params / fc_b in one slab.
    W = 3 * HIDDEN
    pbank = jnp.zeros((P_ROWS, W), jnp.float32)
    fc_b_pad = jnp.zeros((CLASS_PAD,), jnp.float32).at[:NUM_CLASSES].set(params["fc_b"])
    pbank = pbank.at[0, 0:HIDDEN].set(params["emb_ln_g"])
    pbank = pbank.at[0, HIDDEN:2 * HIDDEN].set(params["emb_ln_b"])
    pbank = pbank.at[0, 2 * HIDDEN:2 * HIDDEN + CLASS_PAD].set(fc_b_pad)
    for li, l in enumerate(L):
        r = 1 + 4 * li
        pbank = pbank.at[r, 0:W].set(qkv_b(l))
        pbank = pbank.at[r + 1, 0:HIDDEN].set(l["bo"])
        pbank = pbank.at[r + 1, HIDDEN:2 * HIDDEN].set(l["ln1_g"])
        pbank = pbank.at[r + 1, 2 * HIDDEN:3 * HIDDEN].set(l["ln1_b"])
        pbank = pbank.at[r + 2, 0:INTERMEDIATE].set(l["b1"])
        pbank = pbank.at[r + 2, INTERMEDIATE:INTERMEDIATE + HIDDEN].set(l["b2"])
        pbank = pbank.at[r + 3, 0:HIDDEN].set(l["ln2_g"])
        pbank = pbank.at[r + 3, HIDDEN:2 * HIDDEN].set(l["ln2_b"])

    return {"emb_table": tbl, "wqkv": wqkv, "wo": wo, "w1": w1, "w2": w2,
            "fc_w": fc_w, "pbank": pbank}


# ============================ forward ============================

def roberta_intents_classifier(packed, input_ids, attention_mask):
    B, S = input_ids.shape
    BS = B * S

    # --- tiny integer glue (no gathers, no (B,S,H) HBM tensors) ---
    # RoBERTa-style position ids (HF derives them from input_ids != padding_idx).
    not_pad = (input_ids != PAD_IDX).astype(jnp.int32)
    position_ids = jnp.cumsum(not_pad, axis=1) * not_pad + PAD_IDX
    ids2 = jnp.stack([input_ids.reshape(BS),
                      position_ids.reshape(BS) + POS_OFFSET],
                     axis=1).astype(jnp.int32)                      # (BS, 2)

    # Additive mask: block-diagonal over batch + key padding -> lets attention
    # run batch-folded as one (BS, BS) softmax per head.
    key_valid = attention_mask.reshape(BS) > 0                      # (BS,)
    bidx = jnp.repeat(jnp.arange(B, dtype=jnp.int32), S)            # (BS,)
    valid = (bidx[:, None] == bidx[None, :]) & key_valid[None, :]
    mask_add = jnp.where(valid, 0.0, -1e9).astype(jnp.float32)      # (BS, BS)

    const2 = lambda b: (0, 0)
    const3 = lambda b: (0, 0, 0)

    # Single grid step: batch folded into the matmul M dimension (M = B*S).
    # TODO(synk): on v7x one could use grid=(2,) with a B/2-sized batch block
    # per TensorCore; at this problem size a single step is best on v5e/v6e.
    logits_all = pl.pallas_call(
        _encoder_kernel,
        out_shape=jax.ShapeDtypeStruct((BS, CLASS_PAD), jnp.float32),
        grid=(1,),
        in_specs=[
            pl.BlockSpec((BS, 2), const2),                                      # ids (word, pos)
            pl.BlockSpec((BS, BS), const2),                                     # additive mask
            pl.BlockSpec((TBL_ROWS, HIDDEN), const2),                           # emb table
            pl.BlockSpec((N_LAYERS, HIDDEN, 3 * HIDDEN), const3),               # wqkv
            pl.BlockSpec((N_LAYERS, HIDDEN, HIDDEN), const3),                   # wo
            pl.BlockSpec((N_LAYERS, HIDDEN, INTERMEDIATE), const3),             # w1
            pl.BlockSpec((N_LAYERS, INTERMEDIATE, HIDDEN), const3),             # w2
            pl.BlockSpec((HIDDEN, CLASS_PAD), const2),                          # fc_w
            pl.BlockSpec((P_ROWS, 3 * HIDDEN), const2),                         # param bank
        ],
        out_specs=pl.BlockSpec((BS, CLASS_PAD), const2),
        compiler_params=pltpu.CompilerParams(
            dimension_semantics=("parallel",)),
    )(ids2, mask_add,
      packed["emb_table"], packed["wqkv"], packed["wo"],
      packed["w1"], packed["w2"], packed["fc_w"], packed["pbank"])

    # CLS pooling + unpad the lane-dense logits slab.
    return logits_all.reshape(B, S, CLASS_PAD)[:, 0, :NUM_CLASSES]


# ================================== main ==================================

if __name__ == "__main__":
    B, S = 2, 8
    key = jax.random.PRNGKey(0)
    k_par, k_ids = jax.random.split(key)

    params = init_params(k_par)
    packed = pack_params(params)          # pack/stack/cast once, outside jit

    input_ids = jax.random.randint(k_ids, (B, S), 2, VOCAB, dtype=jnp.int32)
    input_ids = input_ids.at[:, 0].set(0)                  # <s> token
    attention_mask = jnp.ones((B, S), dtype=jnp.int32)
    attention_mask = attention_mask.at[1, 6:].set(0)       # some padding in row 1
    input_ids = jnp.where(attention_mask == 1, input_ids, PAD_IDX)

    logits = jax.jit(roberta_intents_classifier)(packed, input_ids, attention_mask)
    logits = jax.block_until_ready(logits)
    assert logits.shape == (B, NUM_CLASSES)
    assert bool(jnp.all(jnp.isfinite(logits)))
    print("KERNEL_OK")
</pallas_src>

<mosaic_0001>
module attributes {stable_mosaic.version = 11 : i64} {
  func.func @_encoder_kernel(%arg0: i32, %arg1: memref<16x2xi32, #tpu.memory_space<vmem>>, %arg2: memref<16x16xf32, #tpu.memory_space<vmem>>, %arg3: memref<256x128xbf16, #tpu.memory_space<vmem>>, %arg4: memref<2x128x384xbf16, #tpu.memory_space<vmem>>, %arg5: memref<2x128x128xbf16, #tpu.memory_space<vmem>>, %arg6: memref<2x128x256xbf16, #tpu.memory_space<vmem>>, %arg7: memref<2x256x128xbf16, #tpu.memory_space<vmem>>, %arg8: memref<128x128xbf16, #tpu.memory_space<vmem>>, %arg9: memref<9x384xf32, #tpu.memory_space<vmem>>, %arg10: memref<16x128xf32, #tpu.memory_space<vmem>>) attributes {dimension_semantics = [#tpu.dimension_semantics<parallel>], iteration_bounds = array<i64: 1>, scalar_prefetch = 0 : i64, scratch_operands = 0 : i64, tpu.core_type = #tpu.core_type<tc>, window_params = [{pipeline_mode = #tpu.pipeline_mode<synchronous>, transform_indices = @transform_0, window_bounds = array<i64: 16, 2>}, {pipeline_mode = #tpu.pipeline_mode<synchronous>, transform_indices = @transform_1, window_bounds = array<i64: 16, 16>}, {pipeline_mode = #tpu.pipeline_mode<synchronous>, transform_indices = @transform_2, window_bounds = array<i64: 256, 128>}, {pipeline_mode = #tpu.pipeline_mode<synchronous>, transform_indices = @transform_3, window_bounds = array<i64: 2, 128, 384>}, {pipeline_mode = #tpu.pipeline_mode<synchronous>, transform_indices = @transform_4, window_bounds = array<i64: 2, 128, 128>}, {pipeline_mode = #tpu.pipeline_mode<synchronous>, transform_indices = @transform_5, window_bounds = array<i64: 2, 128, 256>}, {pipeline_mode = #tpu.pipeline_mode<synchronous>, transform_indices = @transform_6, window_bounds = array<i64: 2, 256, 128>}, {pipeline_mode = #tpu.pipeline_mode<synchronous>, transform_indices = @transform_7, window_bounds = array<i64: 128, 128>}, {pipeline_mode = #tpu.pipeline_mode<synchronous>, transform_indices = @transform_8, window_bounds = array<i64: 9, 384>}, {pipeline_mode = #tpu.pipeline_mode<synchronous>, transform_indices = @transform_9, window_bounds = array<i64: 16, 128>}]} {
    %c0 = arith.constant 0 : index
    %c0_0 = arith.constant 0 : index
    %0 = vector.load %arg1[%c0, %c0_0] : memref<16x2xi32, #tpu.memory_space<vmem>>, vector<16x2xi32>
    %1 = tpu.iota {dimensions = array<i32: 1>} : vector<16x256xi32>
    %2 = vector.extract_strided_slice %0 {offsets = [0, 0], sizes = [16, 1], strides = [1, 1]} : vector<16x2xi32> to vector<16x1xi32>
    %3 = vector.broadcast %2 : vector<16x1xi32> to vector<16x256xi32>
    %4 = arith.cmpi eq, %1, %3 : vector<16x256xi32>
    %5 = vector.extract_strided_slice %0 {offsets = [0, 1], sizes = [16, 1], strides = [1, 1]} : vector<16x2xi32> to vector<16x1xi32>
    %6 = vector.broadcast %5 : vector<16x1xi32> to vector<16x256xi32>
    %7 = arith.cmpi eq, %1, %6 : vector<16x256xi32>
    %8 = arith.ori %4, %7 : vector<16x256xi1>
    %cst = arith.constant 1.000000e+00 : f32
    %cst_1 = arith.constant 0.000000e+00 : f32
    %9 = vector.broadcast %cst : f32 to vector<16x256xf32>
    %10 = vector.broadcast %cst_1 : f32 to vector<16x256xf32>
    %11 = arith.select %8, %9, %10 : vector<16x256xi1>, vector<16x256xf32>
    %12 = arith.truncf %11 : vector<16x256xf32> to vector<16x256xbf16>
    %c0_2 = arith.constant 0 : index
    %c0_3 = arith.constant 0 : index
    %13 = vector.load %arg3[%c0_2, %c0_3] : memref<256x128xbf16, #tpu.memory_space<vmem>>, vector<256x128xbf16>
    %cst_4 = arith.constant dense<0.000000e+00> : vector<16x128xf32>
    %14 = tpu.matmul %12, %13, %cst_4 {dimension_numbers = #tpu.dot_dimension_numbers<[1], [0], [0], [1], [0, 0, 1, 1], [], []>} : vector<16x256xbf16>, vector<256x128xbf16>, vector<16x128xf32> -> vector<16x128xf32>
    %c0_5 = arith.constant 0 : index
    %c0_6 = arith.constant 0 : index
    %15 = vector.load %arg9[%c0_5, %c0_6] : memref<9x384xf32, #tpu.memory_space<vmem>>, vector<1x128xf32>
    %c0_7 = arith.constant 0 : index
    %c128 = arith.constant 128 : index
    %16 = vector.load %arg9[%c0_7, %c128] : memref<9x384xf32, #tpu.memory_space<vmem>>, vector<1x128xf32>
    %c0_8 = arith.constant 0 : index
    %c256 = arith.constant 256 : index
    %17 = vector.load %arg9[%c0_8, %c256] : memref<9x384xf32, #tpu.memory_space<vmem>>, vector<1x128xf32>
    %cst_9 = arith.constant dense<0.000000e+00> : vector<16xf32>
    %18 = vector.multi_reduction <add>, %14, %cst_9 [1] : vector<16x128xf32> to vector<16xf32>
    %19 = vector.shape_cast %18 : vector<16xf32> to vector<16x1xf32>
    %cst_10 = arith.constant 1.280000e+02 : f32
    %20 = vector.broadcast %cst_10 : f32 to vector<16x1xf32>
    %21 = arith.divf %19, %20 : vector<16x1xf32>
    %22 = vector.broadcast %21 : vector<16x1xf32> to vector<16x128xf32>
    %23 = arith.subf %14, %22 : vector<16x128xf32>
    %24 = arith.mulf %23, %23 : vector<16x128xf32>
    %cst_11 = arith.constant dense<0.000000e+00> : vector<16xf32>
    %25 = vector.multi_reduction <add>, %24, %cst_11 [1] : vector<16x128xf32> to vector<16xf32>
    %26 = vector.shape_cast %25 : vector<16xf32> to vector<16x1xf32>
    %cst_12 = arith.constant 1.280000e+02 : f32
    %27 = vector.broadcast %cst_12 : f32 to vector<16x1xf32>
    %28 = arith.divf %26, %27 : vector<16x1xf32>
    %29 = vector.broadcast %21 : vector<16x1xf32> to vector<16x128xf32>
    %30 = arith.subf %14, %29 : vector<16x128xf32>
    %cst_13 = arith.constant 9.99999974E-6 : f32
    %31 = vector.broadcast %cst_13 : f32 to vector<16x1xf32>
    %32 = arith.addf %28, %31 : vector<16x1xf32>
    %33 = math.rsqrt %32 : vector<16x1xf32>
    %34 = vector.broadcast %33 : vector<16x1xf32> to vector<16x128xf32>
    %35 = arith.mulf %30, %34 : vector<16x128xf32>
    %36 = vector.broadcast %15 : vector<1x128xf32> to vector<16x128xf32>
    %37 = arith.mulf %35, %36 : vector<16x128xf32>
    %38 = vector.broadcast %16 : vector<1x128xf32> to vector<16x128xf32>
    %39 = arith.addf %37, %38 : vector<16x128xf32>
    %c0_14 = arith.constant 0 : index
    %c0_15 = arith.constant 0 : index
    %40 = vector.load %arg2[%c0_14, %c0_15] : memref<16x16xf32, #tpu.memory_space<vmem>>, vector<16x16xf32>
    %c1 = arith.constant 1 : index
    %c0_16 = arith.constant 0 : index
    %41 = vector.load %arg9[%c1, %c0_16] : memref<9x384xf32, #tpu.memory_space<vmem>>, vector<1x384xf32>
    %c2 = arith.constant 2 : index
    %c0_17 = arith.constant 0 : index
    %42 = vector.load %arg9[%c2, %c0_17] : memref<9x384xf32, #tpu.memory_space<vmem>>, vector<1x128xf32>
    %c2_18 = arith.constant 2 : index
    %c128_19 = arith.constant 128 : index
    %43 = vector.load %arg9[%c2_18, %c128_19] : memref<9x384xf32, #tpu.memory_space<vmem>>, vector<1x128xf32>
    %c2_20 = arith.constant 2 : index
    %c256_21 = arith.constant 256 : index
    %44 = vector.load %arg9[%c2_20, %c256_21] : memref<9x384xf32, #tpu.memory_space<vmem>>, vector<1x128xf32>
    %c3 = arith.constant 3 : index
    %c0_22 = arith.constant 0 : index
    %45 = vector.load %arg9[%c3, %c0_22] : memref<9x384xf32, #tpu.memory_space<vmem>>, vector<1x256xf32>
    %c3_23 = arith.constant 3 : index
    %c256_24 = arith.constant 256 : index
    %46 = vector.load %arg9[%c3_23, %c256_24] : memref<9x384xf32, #tpu.memory_space<vmem>>, vector<1x128xf32>
    %c4 = arith.constant 4 : index
    %c0_25 = arith.constant 0 : index
    %47 = vector.load %arg9[%c4, %c0_25] : memref<9x384xf32, #tpu.memory_space<vmem>>, vector<1x128xf32>
    %c4_26 = arith.constant 4 : index
    %c128_27 = arith.constant 128 : index
    %48 = vector.load %arg9[%c4_26, %c128_27] : memref<9x384xf32, #tpu.memory_space<vmem>>, vector<1x128xf32>
    %49 = arith.truncf %39 : vector<16x128xf32> to vector<16x128xbf16>
    %c0_28 = arith.constant 0 : index
    %c0_29 = arith.constant 0 : index
    %c0_30 = arith.constant 0 : index
    %50 = vector.load %arg4[%c0_28, %c0_29, %c0_30] : memref<2x128x384xbf16, #tpu.memory_space<vmem>>, vector<1x128x384xbf16>
    %51 = vector.shape_cast %50 : vector<1x128x384xbf16> to vector<128x384xbf16>
    %cst_31 = arith.constant dense<0.000000e+00> : vector<16x384xf32>
    %52 = tpu.matmul %49, %51, %cst_31 {dimension_numbers = #tpu.dot_dimension_numbers<[1], [0], [0], [1], [0, 0, 1, 1], [], []>} : vector<16x128xbf16>, vector<128x384xbf16>, vector<16x384xf32> -> vector<16x384xf32>
    %53 = vector.broadcast %41 : vector<1x384xf32> to vector<16x384xf32>
    %54 = arith.addf %52, %53 : vector<16x384xf32>
    %cst_32 = arith.constant 0.000000e+00 : f32
    %55 = vector.broadcast %cst_32 : f32 to vector<16x128xf32>
    %56 = vector.extract_strided_slice %54 {offsets = [0, 0], sizes = [16, 32], strides = [1, 1]} : vector<16x384xf32> to vector<16x32xf32>
    %57 = arith.truncf %56 : vector<16x32xf32> to vector<16x32xbf16>
    %58 = vector.extract_strided_slice %54 {offsets = [0, 128], sizes = [16, 32], strides = [1, 1]} : vector<16x384xf32> to vector<16x32xf32>
    %59 = arith.truncf %58 : vector<16x32xf32> to vector<16x32xbf16>
    %60 = vector.extract_strided_slice %54 {offsets = [0, 256], sizes = [16, 32], strides = [1, 1]} : vector<16x384xf32> to vector<16x32xf32>
    %61 = arith.truncf %60 : vector<16x32xf32> to vector<16x32xbf16>
    %cst_33 = arith.constant dense<0.000000e+00> : vector<16x16xf32>
    %62 = tpu.matmul %57, %59, %cst_33 {dimension_numbers = #tpu.dot_dimension_numbers<[1], [1], [0], [0], [0, 0, 1, 0], [], []>} : vector<16x32xbf16>, vector<16x32xbf16>, vector<16x16xf32> -> vector<16x16xf32>
    %63 = arith.addf %62, %40 : vector<16x16xf32>
    %cst_34 = arith.constant dense<0xFF800000> : vector<16xf32>
    %64 = vector.multi_reduction <maximumf>, %63, %cst_34 [1] : vector<16x16xf32> to vector<16xf32>
    %65 = vector.shape_cast %64 : vector<16xf32> to vector<16x1xf32>
    %66 = vector.broadcast %65 : vector<16x1xf32> to vector<16x16xf32>
    %67 = arith.subf %63, %66 : vector<16x16xf32>
    %68 = math.exp %67 : vector<16x16xf32>
    %cst_35 = arith.constant dense<0.000000e+00> : vector<16xf32>
    %69 = vector.multi_reduction <add>, %68, %cst_35 [1] : vector<16x16xf32> to vector<16xf32>
    %70 = vector.shape_cast %69 : vector<16xf32> to vector<16x1xf32>
    %71 = tpu.reciprocal %70 {approx = true} : vector<16x1xf32> -> vector<16x1xf32>
    %72 = vector.broadcast %71 : vector<16x1xf32> to vector<16x16xf32>
    %73 = arith.mulf %68, %72 : vector<16x16xf32>
    %74 = arith.truncf %73 : vector<16x16xf32> to vector<16x16xbf16>
    %cst_36 = arith.constant dense<0.000000e+00> : vector<16x32xf32>
    %75 = tpu.matmul %74, %61, %cst_36 {dimension_numbers = #tpu.dot_dimension_numbers<[1], [0], [0], [1], [0, 0, 1, 1], [], []>} : vector<16x16xbf16>, vector<16x32xbf16>, vector<16x32xf32> -> vector<16x32xf32>
    %76 = arith.truncf %75 : vector<16x32xf32> to vector<16x32xbf16>
    %c0_37 = arith.constant 0 : index
    %c0_38 = arith.constant 0 : index
    %c0_39 = arith.constant 0 : index
    %77 = vector.load %arg5[%c0_37, %c0_38, %c0_39] : memref<2x128x128xbf16, #tpu.memory_space<vmem>>, vector<1x32x128xbf16>
    %78 = vector.shape_cast %77 : vector<1x32x128xbf16> to vector<32x128xbf16>
    %cst_40 = arith.constant dense<0.000000e+00> : vector<16x128xf32>
    %79 = tpu.matmul %76, %78, %cst_40 {dimension_numbers = #tpu.dot_dimension_numbers<[1], [0], [0], [1], [0, 0, 1, 1], [], []>} : vector<16x32xbf16>, vector<32x128xbf16>, vector<16x128xf32> -> vector<16x128xf32>
    %80 = arith.addf %55, %79 : vector<16x128xf32>
    %81 = vector.extract_strided_slice %54 {offsets = [0, 32], sizes = [16, 32], strides = [1, 1]} : vector<16x384xf32> to vector<16x32xf32>
    %82 = arith.truncf %81 : vector<16x32xf32> to vector<16x32xbf16>
    %83 = vector.extract_strided_slice %54 {offsets = [0, 160], sizes = [16, 32], strides = [1, 1]} : vector<16x384xf32> to vector<16x32xf32>
    %84 = arith.truncf %83 : vector<16x32xf32> to vector<16x32xbf16>
    %85 = vector.extract_strided_slice %54 {offsets = [0, 288], sizes = [16, 32], strides = [1, 1]} : vector<16x384xf32> to vector<16x32xf32>
    %86 = arith.truncf %85 : vector<16x32xf32> to vector<16x32xbf16>
    %cst_41 = arith.constant dense<0.000000e+00> : vector<16x16xf32>
    %87 = tpu.matmul %82, %84, %cst_41 {dimension_numbers = #tpu.dot_dimension_numbers<[1], [1], [0], [0], [0, 0, 1, 0], [], []>} : vector<16x32xbf16>, vector<16x32xbf16>, vector<16x16xf32> -> vector<16x16xf32>
    %88 = arith.addf %87, %40 : vector<16x16xf32>
    %cst_42 = arith.constant dense<0xFF800000> : vector<16xf32>
    %89 = vector.multi_reduction <maximumf>, %88, %cst_42 [1] : vector<16x16xf32> to vector<16xf32>
    %90 = vector.shape_cast %89 : vector<16xf32> to vector<16x1xf32>
    %91 = vector.broadcast %90 : vector<16x1xf32> to vector<16x16xf32>
    %92 = arith.subf %88, %91 : vector<16x16xf32>
    %93 = math.exp %92 : vector<16x16xf32>
    %cst_43 = arith.constant dense<0.000000e+00> : vector<16xf32>
    %94 = vector.multi_reduction <add>, %93, %cst_43 [1] : vector<16x16xf32> to vector<16xf32>
    %95 = vector.shape_cast %94 : vector<16xf32> to vector<16x1xf32>
    %96 = tpu.reciprocal %95 {approx = true} : vector<16x1xf32> -> vector<16x1xf32>
    %97 = vector.broadcast %96 : vector<16x1xf32> to vector<16x16xf32>
    %98 = arith.mulf %93, %97 : vector<16x16xf32>
    %99 = arith.truncf %98 : vector<16x16xf32> to vector<16x16xbf16>
    %cst_44 = arith.constant dense<0.000000e+00> : vector<16x32xf32>
    %100 = tpu.matmul %99, %86, %cst_44 {dimension_numbers = #tpu.dot_dimension_numbers<[1], [0], [0], [1], [0, 0, 1, 1], [], []>} : vector<16x16xbf16>, vector<16x32xbf16>, vector<16x32xf32> -> vector<16x32xf32>
    %101 = arith.truncf %100 : vector<16x32xf32> to vector<16x32xbf16>
    %c0_45 = arith.constant 0 : index
    %c32 = arith.constant 32 : index
    %c0_46 = arith.constant 0 : index
    %102 = vector.load %arg5[%c0_45, %c32, %c0_46] : memref<2x128x128xbf16, #tpu.memory_space<vmem>>, vector<1x32x128xbf16>
    %103 = vector.shape_cast %102 : vector<1x32x128xbf16> to vector<32x128xbf16>
    %cst_47 = arith.constant dense<0.000000e+00> : vector<16x128xf32>
    %104 = tpu.matmul %101, %103, %cst_47 {dimension_numbers = #tpu.dot_dimension_numbers<[1], [0], [0], [1], [0, 0, 1, 1], [], []>} : vector<16x32xbf16>, vector<32x128xbf16>, vector<16x128xf32> -> vector<16x128xf32>
    %105 = arith.addf %80, %104 : vector<16x128xf32>
    %106 = vector.extract_strided_slice %54 {offsets = [0, 64], sizes = [16, 32], strides = [1, 1]} : vector<16x384xf32> to vector<16x32xf32>
    %107 = arith.truncf %106 : vector<16x32xf32> to vector<16x32xbf16>
    %108 = vector.extract_strided_slice %54 {offsets = [0, 192], sizes = [16, 32], strides = [1, 1]} : vector<16x384xf32> to vector<16x32xf32>
    %109 = arith.truncf %108 : vector<16x32xf32> to vector<16x32xbf16>
    %110 = vector.extract_strided_slice %54 {offsets = [0, 320], sizes = [16, 32], strides = [1, 1]} : vector<16x384xf32> to vector<16x32xf32>
    %111 = arith.truncf %110 : vector<16x32xf32> to vector<16x32xbf16>
    %cst_48 = arith.constant dense<0.000000e+00> : vector<16x16xf32>
    %112 = tpu.matmul %107, %109, %cst_48 {dimension_numbers = #tpu.dot_dimension_numbers<[1], [1], [0], [0], [0, 0, 1, 0], [], []>} : vector<16x32xbf16>, vector<16x32xbf16>, vector<16x16xf32> -> vector<16x16xf32>
    %113 = arith.addf %112, %40 : vector<16x16xf32>
    %cst_49 = arith.constant dense<0xFF800000> : vector<16xf32>
    %114 = vector.multi_reduction <maximumf>, %113, %cst_49 [1] : vector<16x16xf32> to vector<16xf32>
    %115 = vector.shape_cast %114 : vector<16xf32> to vector<16x1xf32>
    %116 = vector.broadcast %115 : vector<16x1xf32> to vector<16x16xf32>
    %117 = arith.subf %113, %116 : vector<16x16xf32>
    %118 = math.exp %117 : vector<16x16xf32>
    %cst_50 = arith.constant dense<0.000000e+00> : vector<16xf32>
    %119 = vector.multi_reduction <add>, %118, %cst_50 [1] : vector<16x16xf32> to vector<16xf32>
    %120 = vector.shape_cast %119 : vector<16xf32> to vector<16x1xf32>
    %121 = tpu.reciprocal %120 {approx = true} : vector<16x1xf32> -> vector<16x1xf32>
    %122 = vector.broadcast %121 : vector<16x1xf32> to vector<16x16xf32>
    %123 = arith.mulf %118, %122 : vector<16x16xf32>
    %124 = arith.truncf %123 : vector<16x16xf32> to vector<16x16xbf16>
    %cst_51 = arith.constant dense<0.000000e+00> : vector<16x32xf32>
    %125 = tpu.matmul %124, %111, %cst_51 {dimension_numbers = #tpu.dot_dimension_numbers<[1], [0], [0], [1], [0, 0, 1, 1], [], []>} : vector<16x16xbf16>, vector<16x32xbf16>, vector<16x32xf32> -> vector<16x32xf32>
    %126 = arith.truncf %125 : vector<16x32xf32> to vector<16x32xbf16>
    %c0_52 = arith.constant 0 : index
    %c64 = arith.constant 64 : index
    %c0_53 = arith.constant 0 : index
    %127 = vector.load %arg5[%c0_52, %c64, %c0_53] : memref<2x128x128xbf16, #tpu.memory_space<vmem>>, vector<1x32x128xbf16>
    %128 = vector.shape_cast %127 : vector<1x32x128xbf16> to vector<32x128xbf16>
    %cst_54 = arith.constant dense<0.000000e+00> : vector<16x128xf32>
    %129 = tpu.matmul %126, %128, %cst_54 {dimension_numbers = #tpu.dot_dimension_numbers<[1], [0], [0], [1], [0, 0, 1, 1], [], []>} : vector<16x32xbf16>, vector<32x128xbf16>, vector<16x128xf32> -> vector<16x128xf32>
    %130 = arith.addf %105, %129 : vector<16x128xf32>
    %131 = vector.extract_strided_slice %54 {offsets = [0, 96], sizes = [16, 32], strides = [1, 1]} : vector<16x384xf32> to vector<16x32xf32>
    %132 = arith.truncf %131 : vector<16x32xf32> to vector<16x32xbf16>
    %133 = vector.extract_strided_slice %54 {offsets = [0, 224], sizes = [16, 32], strides = [1, 1]} : vector<16x384xf32> to vector<16x32xf32>
    %134 = arith.truncf %133 : vector<16x32xf32> to vector<16x32xbf16>
    %135 = vector.extract_strided_slice %54 {offsets = [0, 352], sizes = [16, 32], strides = [1, 1]} : vector<16x384xf32> to vector<16x32xf32>
    %136 = arith.truncf %135 : vector<16x32xf32> to vector<16x32xbf16>
    %cst_55 = arith.constant dense<0.000000e+00> : vector<16x16xf32>
    %137 = tpu.matmul %132, %134, %cst_55 {dimension_numbers = #tpu.dot_dimension_numbers<[1], [1], [0], [0], [0, 0, 1, 0], [], []>} : vector<16x32xbf16>, vector<16x32xbf16>, vector<16x16xf32> -> vector<16x16xf32>
    %138 = arith.addf %137, %40 : vector<16x16xf32>
    %cst_56 = arith.constant dense<0xFF800000> : vector<16xf32>
    %139 = vector.multi_reduction <maximumf>, %138, %cst_56 [1] : vector<16x16xf32> to vector<16xf32>
    %140 = vector.shape_cast %139 : vector<16xf32> to vector<16x1xf32>
    %141 = vector.broadcast %140 : vector<16x1xf32> to vector<16x16xf32>
    %142 = arith.subf %138, %141 : vector<16x16xf32>
    %143 = math.exp %142 : vector<16x16xf32>
    %cst_57 = arith.constant dense<0.000000e+00> : vector<16xf32>
    %144 = vector.multi_reduction <add>, %143, %cst_57 [1] : vector<16x16xf32> to vector<16xf32>
    %145 = vector.shape_cast %144 : vector<16xf32> to vector<16x1xf32>
    %146 = tpu.reciprocal %145 {approx = true} : vector<16x1xf32> -> vector<16x1xf32>
    %147 = vector.broadcast %146 : vector<16x1xf32> to vector<16x16xf32>
    %148 = arith.mulf %143, %147 : vector<16x16xf32>
    %149 = arith.truncf %148 : vector<16x16xf32> to vector<16x16xbf16>
    %cst_58 = arith.constant dense<0.000000e+00> : vector<16x32xf32>
    %150 = tpu.matmul %149, %136, %cst_58 {dimension_numbers = #tpu.dot_dimension_numbers<[1], [0], [0], [1], [0, 0, 1, 1], [], []>} : vector<16x16xbf16>, vector<16x32xbf16>, vector<16x32xf32> -> vector<16x32xf32>
    %151 = arith.truncf %150 : vector<16x32xf32> to vector<16x32xbf16>
    %c0_59 = arith.constant 0 : index
    %c96 = arith.constant 96 : index
    %c0_60 = arith.constant 0 : index
    %152 = vector.load %arg5[%c0_59, %c96, %c0_60] : memref<2x128x128xbf16, #tpu.memory_space<vmem>>, vector<1x32x128xbf16>
    %153 = vector.shape_cast %152 : vector<1x32x128xbf16> to vector<32x128xbf16>
    %cst_61 = arith.constant dense<0.000000e+00> : vector<16x128xf32>
    %154 = tpu.matmul %151, %153, %cst_61 {dimension_numbers = #tpu.dot_dimension_numbers<[1], [0], [0], [1], [0, 0, 1, 1], [], []>} : vector<16x32xbf16>, vector<32x128xbf16>, vector<16x128xf32> -> vector<16x128xf32>
    %155 = arith.addf %130, %154 : vector<16x128xf32>
    %156 = vector.broadcast %42 : vector<1x128xf32> to vector<16x128xf32>
    %157 = arith.addf %155, %156 : vector<16x128xf32>
    %158 = arith.addf %157, %39 : vector<16x128xf32>
    %cst_62 = arith.constant dense<0.000000e+00> : vector<16xf32>
    %159 = vector.multi_reduction <add>, %158, %cst_62 [1] : vector<16x128xf32> to vector<16xf32>
    %160 = vector.shape_cast %159 : vector<16xf32> to vector<16x1xf32>
    %cst_63 = arith.constant 1.280000e+02 : f32
    %161 = vector.broadcast %cst_63 : f32 to vector<16x1xf32>
    %162 = arith.divf %160, %161 : vector<16x1xf32>
    %163 = vector.broadcast %162 : vector<16x1xf32> to vector<16x128xf32>
    %164 = arith.subf %158, %163 : vector<16x128xf32>
    %165 = arith.mulf %164, %164 : vector<16x128xf32>
    %cst_64 = arith.constant dense<0.000000e+00> : vector<16xf32>
    %166 = vector.multi_reduction <add>, %165, %cst_64 [1] : vector<16x128xf32> to vector<16xf32>
    %167 = vector.shape_cast %166 : vector<16xf32> to vector<16x1xf32>
    %cst_65 = arith.constant 1.280000e+02 : f32
    %168 = vector.broadcast %cst_65 : f32 to vector<16x1xf32>
    %169 = arith.divf %167, %168 : vector<16x1xf32>
    %170 = vector.broadcast %162 : vector<16x1xf32> to vector<16x128xf32>
    %171 = arith.subf %158, %170 : vector<16x128xf32>
    %cst_66 = arith.constant 9.99999974E-6 : f32
    %172 = vector.broadcast %cst_66 : f32 to vector<16x1xf32>
    %173 = arith.addf %169, %172 : vector<16x1xf32>
    %174 = math.rsqrt %173 : vector<16x1xf32>
    %175 = vector.broadcast %174 : vector<16x1xf32> to vector<16x128xf32>
    %176 = arith.mulf %171, %175 : vector<16x128xf32>
    %177 = vector.broadcast %43 : vector<1x128xf32> to vector<16x128xf32>
    %178 = arith.mulf %176, %177 : vector<16x128xf32>
    %179 = vector.broadcast %44 : vector<1x128xf32> to vector<16x128xf32>
    %180 = arith.addf %178, %179 : vector<16x128xf32>
    %181 = arith.truncf %180 : vector<16x128xf32> to vector<16x128xbf16>
    %c0_67 = arith.constant 0 : index
    %c0_68 = arith.constant 0 : index
    %c0_69 = arith.constant 0 : index
    %182 = vector.load %arg6[%c0_67, %c0_68, %c0_69] : memref<2x128x256xbf16, #tpu.memory_space<vmem>>, vector<1x128x256xbf16>
    %183 = vector.shape_cast %182 : vector<1x128x256xbf16> to vector<128x256xbf16>
    %cst_70 = arith.constant dense<0.000000e+00> : vector<16x256xf32>
    %184 = tpu.matmul %181, %183, %cst_70 {dimension_numbers = #tpu.dot_dimension_numbers<[1], [0], [0], [1], [0, 0, 1, 1], [], []>} : vector<16x128xbf16>, vector<128x256xbf16>, vector<16x256xf32> -> vector<16x256xf32>
    %185 = vector.broadcast %45 : vector<1x256xf32> to vector<16x256xf32>
    %186 = arith.addf %184, %185 : vector<16x256xf32>
    %187 = arith.mulf %186, %186 : vector<16x256xf32>
    %188 = arith.mulf %186, %187 : vector<16x256xf32>
    %cst_71 = arith.constant 4.471500e-02 : f32
    %189 = vector.broadcast %cst_71 : f32 to vector<16x256xf32>
    %190 = arith.mulf %189, %188 : vector<16x256xf32>
    %191 = arith.addf %186, %190 : vector<16x256xf32>
    %cst_72 = arith.constant 0.797884583 : f32
    %192 = vector.broadcast %cst_72 : f32 to vector<16x256xf32>
    %193 = arith.mulf %192, %191 : vector<16x256xf32>
    %194 = math.tanh %193 : vector<16x256xf32>
    %cst_73 = arith.constant 1.000000e+00 : f32
    %195 = vector.broadcast %cst_73 : f32 to vector<16x256xf32>
    %196 = arith.addf %195, %194 : vector<16x256xf32>
    %cst_74 = arith.constant 5.000000e-01 : f32
    %197 = vector.broadcast %cst_74 : f32 to vector<16x256xf32>
    %198 = arith.mulf %197, %196 : vector<16x256xf32>
    %199 = arith.mulf %186, %198 : vector<16x256xf32>
    %200 = arith.truncf %199 : vector<16x256xf32> to vector<16x256xbf16>
    %c0_75 = arith.constant 0 : index
    %c0_76 = arith.constant 0 : index
    %c0_77 = arith.constant 0 : index
    %201 = vector.load %arg7[%c0_75, %c0_76, %c0_77] : memref<2x256x128xbf16, #tpu.memory_space<vmem>>, vector<1x256x128xbf16>
    %202 = vector.shape_cast %201 : vector<1x256x128xbf16> to vector<256x128xbf16>
    %cst_78 = arith.constant dense<0.000000e+00> : vector<16x128xf32>
    %203 = tpu.matmul %200, %202, %cst_78 {dimension_numbers = #tpu.dot_dimension_numbers<[1], [0], [0], [1], [0, 0, 1, 1], [], []>} : vector<16x256xbf16>, vector<256x128xbf16>, vector<16x128xf32> -> vector<16x128xf32>
    %204 = vector.broadcast %46 : vector<1x128xf32> to vector<16x128xf32>
    %205 = arith.addf %203, %204 : vector<16x128xf32>
    %206 = arith.addf %205, %180 : vector<16x128xf32>
    %cst_79 = arith.constant dense<0.000000e+00> : vector<16xf32>
    %207 = vector.multi_reduction <add>, %206, %cst_79 [1] : vector<16x128xf32> to vector<16xf32>
    %208 = vector.shape_cast %207 : vector<16xf32> to vector<16x1xf32>
    %cst_80 = arith.constant 1.280000e+02 : f32
    %209 = vector.broadcast %cst_80 : f32 to vector<16x1xf32>
    %210 = arith.divf %208, %209 : vector<16x1xf32>
    %211 = vector.broadcast %210 : vector<16x1xf32> to vector<16x128xf32>
    %212 = arith.subf %206, %211 : vector<16x128xf32>
    %213 = arith.mulf %212, %212 : vector<16x128xf32>
    %cst_81 = arith.constant dense<0.000000e+00> : vector<16xf32>
    %214 = vector.multi_reduction <add>, %213, %cst_81 [1] : vector<16x128xf32> to vector<16xf32>
    %215 = vector.shape_cast %214 : vector<16xf32> to vector<16x1xf32>
    %cst_82 = arith.constant 1.280000e+02 : f32
    %216 = vector.broadcast %cst_82 : f32 to vector<16x1xf32>
    %217 = arith.divf %215, %216 : vector<16x1xf32>
    %218 = vector.broadcast %210 : vector<16x1xf32> to vector<16x128xf32>
    %219 = arith.subf %206, %218 : vector<16x128xf32>
    %cst_83 = arith.constant 9.99999974E-6 : f32
    %220 = vector.broadcast %cst_83 : f32 to vector<16x1xf32>
    %221 = arith.addf %217, %220 : vector<16x1xf32>
    %222 = math.rsqrt %221 : vector<16x1xf32>
    %223 = vector.broadcast %222 : vector<16x1xf32> to vector<16x128xf32>
    %224 = arith.mulf %219, %223 : vector<16x128xf32>
    %225 = vector.broadcast %47 : vector<1x128xf32> to vector<16x128xf32>
    %226 = arith.mulf %224, %225 : vector<16x128xf32>
    %227 = vector.broadcast %48 : vector<1x128xf32> to vector<16x128xf32>
    %228 = arith.addf %226, %227 : vector<16x128xf32>
    %c5 = arith.constant 5 : index
    %c0_84 = arith.constant 0 : index
    %229 = vector.load %arg9[%c5, %c0_84] : memref<9x384xf32, #tpu.memory_space<vmem>>, vector<1x384xf32>
    %c6 = arith.constant 6 : index
    %c0_85 = arith.constant 0 : index
    %230 = vector.load %arg9[%c6, %c0_85] : memref<9x384xf32, #tpu.memory_space<vmem>>, vector<1x128xf32>
    %c6_86 = arith.constant 6 : index
    %c128_87 = arith.constant 128 : index
    %231 = vector.load %arg9[%c6_86, %c128_87] : memref<9x384xf32, #tpu.memory_space<vmem>>, vector<1x128xf32>
    %c6_88 = arith.constant 6 : index
    %c256_89 = arith.constant 256 : index
    %232 = vector.load %arg9[%c6_88, %c256_89] : memref<9x384xf32, #tpu.memory_space<vmem>>, vector<1x128xf32>
    %c7 = arith.constant 7 : index
    %c0_90 = arith.constant 0 : index
    %233 = vector.load %arg9[%c7, %c0_90] : memref<9x384xf32, #tpu.memory_space<vmem>>, vector<1x256xf32>
    %c7_91 = arith.constant 7 : index
    %c256_92 = arith.constant 256 : index
    %234 = vector.load %arg9[%c7_91, %c256_92] : memref<9x384xf32, #tpu.memory_space<vmem>>, vector<1x128xf32>
    %c8 = arith.constant 8 : index
    %c0_93 = arith.constant 0 : index
    %235 = vector.load %arg9[%c8, %c0_93] : memref<9x384xf32, #tpu.memory_space<vmem>>, vector<1x128xf32>
    %c8_94 = arith.constant 8 : index
    %c128_95 = arith.constant 128 : index
    %236 = vector.load %arg9[%c8_94, %c128_95] : memref<9x384xf32, #tpu.memory_space<vmem>>, vector<1x128xf32>
    %237 = arith.truncf %228 : vector<16x128xf32> to vector<16x128xbf16>
    %c1_96 = arith.constant 1 : index
    %c0_97 = arith.constant 0 : index
    %c0_98 = arith.constant 0 : index
    %238 = vector.load %arg4[%c1_96, %c0_97, %c0_98] : memref<2x128x384xbf16, #tpu.memory_space<vmem>>, vector<1x128x384xbf16>
    %239 = vector.shape_cast %238 : vector<1x128x384xbf16> to vector<128x384xbf16>
    %cst_99 = arith.constant dense<0.000000e+00> : vector<16x384xf32>
    %240 = tpu.matmul %237, %239, %cst_99 {dimension_numbers = #tpu.dot_dimension_numbers<[1], [0], [0], [1], [0, 0, 1, 1], [], []>} : vector<16x128xbf16>, vector<128x384xbf16>, vector<16x384xf32> -> vector<16x384xf32>
    %241 = vector.broadcast %229 : vector<1x384xf32> to vector<16x384xf32>
    %242 = arith.addf %240, %241 : vector<16x384xf32>
    %cst_100 = arith.constant 0.000000e+00 : f32
    %243 = vector.broadcast %cst_100 : f32 to vector<16x128xf32>
    %244 = vector.extract_strided_slice %242 {offsets = [0, 0], sizes = [16, 32], strides = [1, 1]} : vector<16x384xf32> to vector<16x32xf32>
    %245 = arith.truncf %244 : vector<16x32xf32> to vector<16x32xbf16>
    %246 = vector.extract_strided_slice %242 {offsets = [0, 128], sizes = [16, 32], strides = [1, 1]} : vector<16x384xf32> to vector<16x32xf32>
    %247 = arith.truncf %246 : vector<16x32xf32> to vector<16x32xbf16>
    %248 = vector.extract_strided_slice %242 {offsets = [0, 256], sizes = [16, 32], strides = [1, 1]} : vector<16x384xf32> to vector<16x32xf32>
    %249 = arith.truncf %248 : vector<16x32xf32> to vector<16x32xbf16>
    %cst_101 = arith.constant dense<0.000000e+00> : vector<16x16xf32>
    %250 = tpu.matmul %245, %247, %cst_101 {dimension_numbers = #tpu.dot_dimension_numbers<[1], [1], [0], [0], [0, 0, 1, 0], [], []>} : vector<16x32xbf16>, vector<16x32xbf16>, vector<16x16xf32> -> vector<16x16xf32>
    %251 = arith.addf %250, %40 : vector<16x16xf32>
    %cst_102 = arith.constant dense<0xFF800000> : vector<16xf32>
    %252 = vector.multi_reduction <maximumf>, %251, %cst_102 [1] : vector<16x16xf32> to vector<16xf32>
    %253 = vector.shape_cast %252 : vector<16xf32> to vector<16x1xf32>
    %254 = vector.broadcast %253 : vector<16x1xf32> to vector<16x16xf32>
    %255 = arith.subf %251, %254 : vector<16x16xf32>
    %256 = math.exp %255 : vector<16x16xf32>
    %cst_103 = arith.constant dense<0.000000e+00> : vector<16xf32>
    %257 = vector.multi_reduction <add>, %256, %cst_103 [1] : vector<16x16xf32> to vector<16xf32>
    %258 = vector.shape_cast %257 : vector<16xf32> to vector<16x1xf32>
    %259 = tpu.reciprocal %258 {approx = true} : vector<16x1xf32> -> vector<16x1xf32>
    %260 = vector.broadcast %259 : vector<16x1xf32> to vector<16x16xf32>
    %261 = arith.mulf %256, %260 : vector<16x16xf32>
    %262 = arith.truncf %261 : vector<16x16xf32> to vector<16x16xbf16>
    %cst_104 = arith.constant dense<0.000000e+00> : vector<16x32xf32>
    %263 = tpu.matmul %262, %249, %cst_104 {dimension_numbers = #tpu.dot_dimension_numbers<[1], [0], [0], [1], [0, 0, 1, 1], [], []>} : vector<16x16xbf16>, vector<16x32xbf16>, vector<16x32xf32> -> vector<16x32xf32>
    %264 = arith.truncf %263 : vector<16x32xf32> to vector<16x32xbf16>
    %c1_105 = arith.constant 1 : index
    %c0_106 = arith.constant 0 : index
    %c0_107 = arith.constant 0 : index
    %265 = vector.load %arg5[%c1_105, %c0_106, %c0_107] : memref<2x128x128xbf16, #tpu.memory_space<vmem>>, vector<1x32x128xbf16>
    %266 = vector.shape_cast %265 : vector<1x32x128xbf16> to vector<32x128xbf16>
    %cst_108 = arith.constant dense<0.000000e+00> : vector<16x128xf32>
    %267 = tpu.matmul %264, %266, %cst_108 {dimension_numbers = #tpu.dot_dimension_numbers<[1], [0], [0], [1], [0, 0, 1, 1], [], []>} : vector<16x32xbf16>, vector<32x128xbf16>, vector<16x128xf32> -> vector<16x128xf32>
    %268 = arith.addf %243, %267 : vector<16x128xf32>
    %269 = vector.extract_strided_slice %242 {offsets = [0, 32], sizes = [16, 32], strides = [1, 1]} : vector<16x384xf32> to vector<16x32xf32>
    %270 = arith.truncf %269 : vector<16x32xf32> to vector<16x32xbf16>
    %271 = vector.extract_strided_slice %242 {offsets = [0, 160], sizes = [16, 32], strides = [1, 1]} : vector<16x384xf32> to vector<16x32xf32>
    %272 = arith.truncf %271 : vector<16x32xf32> to vector<16x32xbf16>
    %273 = vector.extract_strided_slice %242 {offsets = [0, 288], sizes = [16, 32], strides = [1, 1]} : vector<16x384xf32> to vector<16x32xf32>
    %274 = arith.truncf %273 : vector<16x32xf32> to vector<16x32xbf16>
    %cst_109 = arith.constant dense<0.000000e+00> : vector<16x16xf32>
    %275 = tpu.matmul %270, %272, %cst_109 {dimension_numbers = #tpu.dot_dimension_numbers<[1], [1], [0], [0], [0, 0, 1, 0], [], []>} : vector<16x32xbf16>, vector<16x32xbf16>, vector<16x16xf32> -> vector<16x16xf32>
    %276 = arith.addf %275, %40 : vector<16x16xf32>
    %cst_110 = arith.constant dense<0xFF800000> : vector<16xf32>
    %277 = vector.multi_reduction <maximumf>, %276, %cst_110 [1] : vector<16x16xf32> to vector<16xf32>
    %278 = vector.shape_cast %277 : vector<16xf32> to vector<16x1xf32>
    %279 = vector.broadcast %278 : vector<16x1xf32> to vector<16x16xf32>
    %280 = arith.subf %276, %279 : vector<16x16xf32>
    %281 = math.exp %280 : vector<16x16xf32>
    %cst_111 = arith.constant dense<0.000000e+00> : vector<16xf32>
    %282 = vector.multi_reduction <add>, %281, %cst_111 [1] : vector<16x16xf32> to vector<16xf32>
    %283 = vector.shape_cast %282 : vector<16xf32> to vector<16x1xf32>
    %284 = tpu.reciprocal %283 {approx = true} : vector<16x1xf32> -> vector<16x1xf32>
    %285 = vector.broadcast %284 : vector<16x1xf32> to vector<16x16xf32>
    %286 = arith.mulf %281, %285 : vector<16x16xf32>
    %287 = arith.truncf %286 : vector<16x16xf32> to vector<16x16xbf16>
    %cst_112 = arith.constant dense<0.000000e+00> : vector<16x32xf32>
    %288 = tpu.matmul %287, %274, %cst_112 {dimension_numbers = #tpu.dot_dimension_numbers<[1], [0], [0], [1], [0, 0, 1, 1], [], []>} : vector<16x16xbf16>, vector<16x32xbf16>, vector<16x32xf32> -> vector<16x32xf32>
    %289 = arith.truncf %288 : vector<16x32xf32> to vector<16x32xbf16>
    %c1_113 = arith.constant 1 : index
    %c32_114 = arith.constant 32 : index
    %c0_115 = arith.constant 0 : index
    %290 = vector.load %arg5[%c1_113, %c32_114, %c0_115] : memref<2x128x128xbf16, #tpu.memory_space<vmem>>, vector<1x32x128xbf16>
    %291 = vector.shape_cast %290 : vector<1x32x128xbf16> to vector<32x128xbf16>
    %cst_116 = arith.constant dense<0.000000e+00> : vector<16x128xf32>
    %292 = tpu.matmul %289, %291, %cst_116 {dimension_numbers = #tpu.dot_dimension_numbers<[1], [0], [0], [1], [0, 0, 1, 1], [], []>} : vector<16x32xbf16>, vector<32x128xbf16>, vector<16x128xf32> -> vector<16x128xf32>
    %293 = arith.addf %268, %292 : vector<16x128xf32>
    %294 = vector.extract_strided_slice %242 {offsets = [0, 64], sizes = [16, 32], strides = [1, 1]} : vector<16x384xf32> to vector<16x32xf32>
    %295 = arith.truncf %294 : vector<16x32xf32> to vector<16x32xbf16>
    %296 = vector.extract_strided_slice %242 {offsets = [0, 192], sizes = [16, 32], strides = [1, 1]} : vector<16x384xf32> to vector<16x32xf32>
    %297 = arith.truncf %296 : vector<16x32xf32> to vector<16x32xbf16>
    %298 = vector.extract_strided_slice %242 {offsets = [0, 320], sizes = [16, 32], strides = [1, 1]} : vector<16x384xf32> to vector<16x32xf32>
    %299 = arith.truncf %298 : vector<16x32xf32> to vector<16x32xbf16>
    %cst_117 = arith.constant dense<0.000000e+00> : vector<16x16xf32>
    %300 = tpu.matmul %295, %297, %cst_117 {dimension_numbers = #tpu.dot_dimension_numbers<[1], [1], [0], [0], [0, 0, 1, 0], [], []>} : vector<16x32xbf16>, vector<16x32xbf16>, vector<16x16xf32> -> vector<16x16xf32>
    %301 = arith.addf %300, %40 : vector<16x16xf32>
    %cst_118 = arith.constant dense<0xFF800000> : vector<16xf32>
    %302 = vector.multi_reduction <maximumf>, %301, %cst_118 [1] : vector<16x16xf32> to vector<16xf32>
    %303 = vector.shape_cast %302 : vector<16xf32> to vector<16x1xf32>
    %304 = vector.broadcast %303 : vector<16x1xf32> to vector<16x16xf32>
    %305 = arith.subf %301, %304 : vector<16x16xf32>
    %306 = math.exp %305 : vector<16x16xf32>
    %cst_119 = arith.constant dense<0.000000e+00> : vector<16xf32>
    %307 = vector.multi_reduction <add>, %306, %cst_119 [1] : vector<16x16xf32> to vector<16xf32>
    %308 = vector.shape_cast %307 : vector<16xf32> to vector<16x1xf32>
    %309 = tpu.reciprocal %308 {approx = true} : vector<16x1xf32> -> vector<16x1xf32>
    %310 = vector.broadcast %309 : vector<16x1xf32> to vector<16x16xf32>
    %311 = arith.mulf %306, %310 : vector<16x16xf32>
    %312 = arith.truncf %311 : vector<16x16xf32> to vector<16x16xbf16>
    %cst_120 = arith.constant dense<0.000000e+00> : vector<16x32xf32>
    %313 = tpu.matmul %312, %299, %cst_120 {dimension_numbers = #tpu.dot_dimension_numbers<[1], [0], [0], [1], [0, 0, 1, 1], [], []>} : vector<16x16xbf16>, vector<16x32xbf16>, vector<16x32xf32> -> vector<16x32xf32>
    %314 = arith.truncf %313 : vector<16x32xf32> to vector<16x32xbf16>
    %c1_121 = arith.constant 1 : index
    %c64_122 = arith.constant 64 : index
    %c0_123 = arith.constant 0 : index
    %315 = vector.load %arg5[%c1_121, %c64_122, %c0_123] : memref<2x128x128xbf16, #tpu.memory_space<vmem>>, vector<1x32x128xbf16>
    %316 = vector.shape_cast %315 : vector<1x32x128xbf16> to vector<32x128xbf16>
    %cst_124 = arith.constant dense<0.000000e+00> : vector<16x128xf32>
    %317 = tpu.matmul %314, %316, %cst_124 {dimension_numbers = #tpu.dot_dimension_numbers<[1], [0], [0], [1], [0, 0, 1, 1], [], []>} : vector<16x32xbf16>, vector<32x128xbf16>, vector<16x128xf32> -> vector<16x128xf32>
    %318 = arith.addf %293, %317 : vector<16x128xf32>
    %319 = vector.extract_strided_slice %242 {offsets = [0, 96], sizes = [16, 32], strides = [1, 1]} : vector<16x384xf32> to vector<16x32xf32>
    %320 = arith.truncf %319 : vector<16x32xf32> to vector<16x32xbf16>
    %321 = vector.extract_strided_slice %242 {offsets = [0, 224], sizes = [16, 32], strides = [1, 1]} : vector<16x384xf32> to vector<16x32xf32>
    %322 = arith.truncf %321 : vector<16x32xf32> to vector<16x32xbf16>
    %323 = vector.extract_strided_slice %242 {offsets = [0, 352], sizes = [16, 32], strides = [1, 1]} : vector<16x384xf32> to vector<16x32xf32>
    %324 = arith.truncf %323 : vector<16x32xf32> to vector<16x32xbf16>
    %cst_125 = arith.constant dense<0.000000e+00> : vector<16x16xf32>
    %325 = tpu.matmul %320, %322, %cst_125 {dimension_numbers = #tpu.dot_dimension_numbers<[1], [1], [0], [0], [0, 0, 1, 0], [], []>} : vector<16x32xbf16>, vector<16x32xbf16>, vector<16x16xf32> -> vector<16x16xf32>
    %326 = arith.addf %325, %40 : vector<16x16xf32>
    %cst_126 = arith.constant dense<0xFF800000> : vector<16xf32>
    %327 = vector.multi_reduction <maximumf>, %326, %cst_126 [1] : vector<16x16xf32> to vector<16xf32>
    %328 = vector.shape_cast %327 : vector<16xf32> to vector<16x1xf32>
    %329 = vector.broadcast %328 : vector<16x1xf32> to vector<16x16xf32>
    %330 = arith.subf %326, %329 : vector<16x16xf32>
    %331 = math.exp %330 : vector<16x16xf32>
    %cst_127 = arith.constant dense<0.000000e+00> : vector<16xf32>
    %332 = vector.multi_reduction <add>, %331, %cst_127 [1] : vector<16x16xf32> to vector<16xf32>
    %333 = vector.shape_cast %332 : vector<16xf32> to vector<16x1xf32>
    %334 = tpu.reciprocal %333 {approx = true} : vector<16x1xf32> -> vector<16x1xf32>
    %335 = vector.broadcast %334 : vector<16x1xf32> to vector<16x16xf32>
    %336 = arith.mulf %331, %335 : vector<16x16xf32>
    %337 = arith.truncf %336 : vector<16x16xf32> to vector<16x16xbf16>
    %cst_128 = arith.constant dense<0.000000e+00> : vector<16x32xf32>
    %338 = tpu.matmul %337, %324, %cst_128 {dimension_numbers = #tpu.dot_dimension_numbers<[1], [0], [0], [1], [0, 0, 1, 1], [], []>} : vector<16x16xbf16>, vector<16x32xbf16>, vector<16x32xf32> -> vector<16x32xf32>
    %339 = arith.truncf %338 : vector<16x32xf32> to vector<16x32xbf16>
    %c1_129 = arith.constant 1 : index
    %c96_130 = arith.constant 96 : index
    %c0_131 = arith.constant 0 : index
    %340 = vector.load %arg5[%c1_129, %c96_130, %c0_131] : memref<2x128x128xbf16, #tpu.memory_space<vmem>>, vector<1x32x128xbf16>
    %341 = vector.shape_cast %340 : vector<1x32x128xbf16> to vector<32x128xbf16>
    %cst_132 = arith.constant dense<0.000000e+00> : vector<16x128xf32>
    %342 = tpu.matmul %339, %341, %cst_132 {dimension_numbers = #tpu.dot_dimension_numbers<[1], [0], [0], [1], [0, 0, 1, 1], [], []>} : vector<16x32xbf16>, vector<32x128xbf16>, vector<16x128xf32> -> vector<16x128xf32>
    %343 = arith.addf %318, %342 : vector<16x128xf32>
    %344 = vector.broadcast %230 : vector<1x128xf32> to vector<16x128xf32>
    %345 = arith.addf %343, %344 : vector<16x128xf32>
    %346 = arith.addf %345, %228 : vector<16x128xf32>
    %cst_133 = arith.constant dense<0.000000e+00> : vector<16xf32>
    %347 = vector.multi_reduction <add>, %346, %cst_133 [1] : vector<16x128xf32> to vector<16xf32>
    %348 = vector.shape_cast %347 : vector<16xf32> to vector<16x1xf32>
    %cst_134 = arith.constant 1.280000e+02 : f32
    %349 = vector.broadcast %cst_134 : f32 to vector<16x1xf32>
    %350 = arith.divf %348, %349 : vector<16x1xf32>
    %351 = vector.broadcast %350 : vector<16x1xf32> to vector<16x128xf32>
    %352 = arith.subf %346, %351 : vector<16x128xf32>
    %353 = arith.mulf %352, %352 : vector<16x128xf32>
    %cst_135 = arith.constant dense<0.000000e+00> : vector<16xf32>
    %354 = vector.multi_reduction <add>, %353, %cst_135 [1] : vector<16x128xf32> to vector<16xf32>
    %355 = vector.shape_cast %354 : vector<16xf32> to vector<16x1xf32>
    %cst_136 = arith.constant 1.280000e+02 : f32
    %356 = vector.broadcast %cst_136 : f32 to vector<16x1xf32>
    %357 = arith.divf %355, %356 : vector<16x1xf32>
    %358 = vector.broadcast %350 : vector<16x1xf32> to vector<16x128xf32>
    %359 = arith.subf %346, %358 : vector<16x128xf32>
    %cst_137 = arith.constant 9.99999974E-6 : f32
    %360 = vector.broadcast %cst_137 : f32 to vector<16x1xf32>
    %361 = arith.addf %357, %360 : vector<16x1xf32>
    %362 = math.rsqrt %361 : vector<16x1xf32>
    %363 = vector.broadcast %362 : vector<16x1xf32> to vector<16x128xf32>
    %364 = arith.mulf %359, %363 : vector<16x128xf32>
    %365 = vector.broadcast %231 : vector<1x128xf32> to vector<16x128xf32>
    %366 = arith.mulf %364, %365 : vector<16x128xf32>
    %367 = vector.broadcast %232 : vector<1x128xf32> to vector<16x128xf32>
    %368 = arith.addf %366, %367 : vector<16x128xf32>
    %369 = arith.truncf %368 : vector<16x128xf32> to vector<16x128xbf16>
    %c1_138 = arith.constant 1 : index
    %c0_139 = arith.constant 0 : index
    %c0_140 = arith.constant 0 : index
    %370 = vector.load %arg6[%c1_138, %c0_139, %c0_140] : memref<2x128x256xbf16, #tpu.memory_space<vmem>>, vector<1x128x256xbf16>
    %371 = vector.shape_cast %370 : vector<1x128x256xbf16> to vector<128x256xbf16>
    %cst_141 = arith.constant dense<0.000000e+00> : vector<16x256xf32>
    %372 = tpu.matmul %369, %371, %cst_141 {dimension_numbers = #tpu.dot_dimension_numbers<[1], [0], [0], [1], [0, 0, 1, 1], [], []>} : vector<16x128xbf16>, vector<128x256xbf16>, vector<16x256xf32> -> vector<16x256xf32>
    %373 = vector.broadcast %233 : vector<1x256xf32> to vector<16x256xf32>
    %374 = arith.addf %372, %373 : vector<16x256xf32>
    %375 = arith.mulf %374, %374 : vector<16x256xf32>
    %376 = arith.mulf %374, %375 : vector<16x256xf32>
    %cst_142 = arith.constant 4.471500e-02 : f32
    %377 = vector.broadcast %cst_142 : f32 to vector<16x256xf32>
    %378 = arith.mulf %377, %376 : vector<16x256xf32>
    %379 = arith.addf %374, %378 : vector<16x256xf32>
    %cst_143 = arith.constant 0.797884583 : f32
    %380 = vector.broadcast %cst_143 : f32 to vector<16x256xf32>
    %381 = arith.mulf %380, %379 : vector<16x256xf32>
    %382 = math.tanh %381 : vector<16x256xf32>
    %cst_144 = arith.constant 1.000000e+00 : f32
    %383 = vector.broadcast %cst_144 : f32 to vector<16x256xf32>
    %384 = arith.addf %383, %382 : vector<16x256xf32>
    %cst_145 = arith.constant 5.000000e-01 : f32
    %385 = vector.broadcast %cst_145 : f32 to vector<16x256xf32>
    %386 = arith.mulf %385, %384 : vector<16x256xf32>
    %387 = arith.mulf %374, %386 : vector<16x256xf32>
    %388 = arith.truncf %387 : vector<16x256xf32> to vector<16x256xbf16>
    %c1_146 = arith.constant 1 : index
    %c0_147 = arith.constant 0 : index
    %c0_148 = arith.constant 0 : index
    %389 = vector.load %arg7[%c1_146, %c0_147, %c0_148] : memref<2x256x128xbf16, #tpu.memory_space<vmem>>, vector<1x256x128xbf16>
    %390 = vector.shape_cast %389 : vector<1x256x128xbf16> to vector<256x128xbf16>
    %cst_149 = arith.constant dense<0.000000e+00> : vector<16x128xf32>
    %391 = tpu.matmul %388, %390, %cst_149 {dimension_numbers = #tpu.dot_dimension_numbers<[1], [0], [0], [1], [0, 0, 1, 1], [], []>} : vector<16x256xbf16>, vector<256x128xbf16>, vector<16x128xf32> -> vector<16x128xf32>
    %392 = vector.broadcast %234 : vector<1x128xf32> to vector<16x128xf32>
    %393 = arith.addf %391, %392 : vector<16x128xf32>
    %394 = arith.addf %393, %368 : vector<16x128xf32>
    %cst_150 = arith.constant dense<0.000000e+00> : vector<16xf32>
    %395 = vector.multi_reduction <add>, %394, %cst_150 [1] : vector<16x128xf32> to vector<16xf32>
    %396 = vector.shape_cast %395 : vector<16xf32> to vector<16x1xf32>
    %cst_151 = arith.constant 1.280000e+02 : f32
    %397 = vector.broadcast %cst_151 : f32 to vector<16x1xf32>
    %398 = arith.divf %396, %397 : vector<16x1xf32>
    %399 = vector.broadcast %398 : vector<16x1xf32> to vector<16x128xf32>
    %400 = arith.subf %394, %399 : vector<16x128xf32>
    %401 = arith.mulf %400, %400 : vector<16x128xf32>
    %cst_152 = arith.constant dense<0.000000e+00> : vector<16xf32>
    %402 = vector.multi_reduction <add>, %401, %cst_152 [1] : vector<16x128xf32> to vector<16xf32>
    %403 = vector.shape_cast %402 : vector<16xf32> to vector<16x1xf32>
    %cst_153 = arith.constant 1.280000e+02 : f32
    %404 = vector.broadcast %cst_153 : f32 to vector<16x1xf32>
    %405 = arith.divf %403, %404 : vector<16x1xf32>
    %406 = vector.broadcast %398 : vector<16x1xf32> to vector<16x128xf32>
    %407 = arith.subf %394, %406 : vector<16x128xf32>
    %cst_154 = arith.constant 9.99999974E-6 : f32
    %408 = vector.broadcast %cst_154 : f32 to vector<16x1xf32>
    %409 = arith.addf %405, %408 : vector<16x1xf32>
    %410 = math.rsqrt %409 : vector<16x1xf32>
    %411 = vector.broadcast %410 : vector<16x1xf32> to vector<16x128xf32>
    %412 = arith.mulf %407, %411 : vector<16x128xf32>
    %413 = vector.broadcast %235 : vector<1x128xf32> to vector<16x128xf32>
    %414 = arith.mulf %412, %413 : vector<16x128xf32>
    %415 = vector.broadcast %236 : vector<1x128xf32> to vector<16x128xf32>
    %416 = arith.addf %414, %415 : vector<16x128xf32>
    %cst_155 = arith.constant 0.000000e+00 : f32
    %417 = vector.broadcast %cst_155 : f32 to vector<16x128xf32>
    %418 = arith.maximumf %416, %417 : vector<16x128xf32>
    %419 = arith.truncf %418 : vector<16x128xf32> to vector<16x128xbf16>
    %c0_156 = arith.constant 0 : index
    %c0_157 = arith.constant 0 : index
    %420 = vector.load %arg8[%c0_156, %c0_157] : memref<128x128xbf16, #tpu.memory_space<vmem>>, vector<128x128xbf16>
    %cst_158 = arith.constant dense<0.000000e+00> : vector<16x128xf32>
    %421 = tpu.matmul %419, %420, %cst_158 {dimension_numbers = #tpu.dot_dimension_numbers<[1], [0], [0], [1], [0, 0, 1, 1], [], []>} : vector<16x128xbf16>, vector<128x128xbf16>, vector<16x128xf32> -> vector<16x128xf32>
    %422 = vector.broadcast %17 : vector<1x128xf32> to vector<16x128xf32>
    %423 = arith.addf %421, %422 : vector<16x128xf32>
    %c0_159 = arith.constant 0 : index
    %c0_160 = arith.constant 0 : index
    %424 = vector.load %arg10[%c0_159, %c0_160] : memref<16x128xf32, #tpu.memory_space<vmem>>, vector<16x128xf32>
    tpu.vector_store %arg10[%c0_159, %c0_160], %423 {strides = array<i32>} : memref<16x128xf32, #tpu.memory_space<vmem>>, vector<16x128xf32>,
    return
  }
  func.func @transform_0(%arg0: i32) -> (i32, i32) {
    %c0_i32 = arith.constant 0 : i32
    %c0_i32_0 = arith.constant 0 : i32
    %c0_i32_1 = arith.constant 0 : i32
    return %c0_i32, %c0_i32_0 : i32, i32
  }
  func.func @transform_1(%arg0: i32) -> (i32, i32) {
    %c0_i32 = arith.constant 0 : i32
    %c0_i32_0 = arith.constant 0 : i32
    %c0_i32_1 = arith.constant 0 : i32
    return %c0_i32, %c0_i32_0 : i32, i32
  }
  func.func @transform_2(%arg0: i32) -> (i32, i32) {
    %c0_i32 = arith.constant 0 : i32
    %c0_i32_0 = arith.constant 0 : i32
    %c0_i32_1 = arith.constant 0 : i32
    return %c0_i32, %c0_i32_0 : i32, i32
  }
  func.func @transform_3(%arg0: i32) -> (i32, i32, i32) {
    %c0_i32 = arith.constant 0 : i32
    %c0_i32_0 = arith.constant 0 : i32
    %c0_i32_1 = arith.constant 0 : i32
    %c0_i32_2 = arith.constant 0 : i32
    return %c0_i32, %c0_i32_0, %c0_i32_1 : i32, i32, i32
  }
  func.func @transform_4(%arg0: i32) -> (i32, i32, i32) {
    %c0_i32 = arith.constant 0 : i32
    %c0_i32_0 = arith.constant 0 : i32
    %c0_i32_1 = arith.constant 0 : i32
    %c0_i32_2 = arith.constant 0 : i32
    return %c0_i32, %c0_i32_0, %c0_i32_1 : i32, i32, i32
  }
  func.func @transform_5(%arg0: i32) -> (i32, i32, i32) {
    %c0_i32 = arith.constant 0 : i32
    %c0_i32_0 = arith.constant 0 : i32
    %c0_i32_1 = arith.constant 0 : i32
    %c0_i32_2 = arith.constant 0 : i32
    return %c0_i32, %c0_i32_0, %c0_i32_1 : i32, i32, i32
  }
  func.func @transform_6(%arg0: i32) -> (i32, i32, i32) {
    %c0_i32 = arith.constant 0 : i32
    %c0_i32_0 = arith.constant 0 : i32
    %c0_i32_1 = arith.constant 0 : i32
    %c0_i32_2 = arith.constant 0 : i32
    return %c0_i32, %c0_i32_0, %c0_i32_1 : i32, i32, i32
  }
  func.func @transform_7(%arg0: i32) -> (i32, i32) {
    %c0_i32 = arith.constant 0 : i32
    %c0_i32_0 = arith.constant 0 : i32
    %c0_i32_1 = arith.constant 0 : i32
    return %c0_i32, %c0_i32_0 : i32, i32
  }
  func.func @transform_8(%arg0: i32) -> (i32, i32) {
    %c0_i32 = arith.constant 0 : i32
    %c0_i32_0 = arith.constant 0 : i32
    %c0_i32_1 = arith.constant 0 : i32
    return %c0_i32, %c0_i32_0 : i32, i32
  }
  func.func @transform_9(%arg0: i32) -> (i32, i32) {
    %c0_i32 = arith.constant 0 : i32
    %c0_i32_0 = arith.constant 0 : i32
    %c0_i32_1 = arith.constant 0 : i32
    return %c0_i32, %c0_i32_0 : i32, i32
  }
}

</mosaic_0001>

<bundles_post_ra>
// kernel: eq.8
= control target key start
LH: loop header
LB: loop body
LE: loop exit
PB: predicated region body
PF: predicated region fallthrough
CT: control target
= control target key end

     0   :  { %vm7_vm0 = vcmask 64512   ;;  %vm13_vm1 = vcmask 130112   ;;  %s39_s0 = inlined_call_operand.vmem [shape: s32[2,8], index: 0, kind: input, shape index: {}]   ;;  %s40_s1 = inlined_call_operand.vmem [shape: s32[16], index: 1, kind: output, shape index: {}]  }
   0x1   :  { %v4_v0 = vld [vmem:[%s39_s0] sm:$0x3]  ;;  %s22_s0 = smov 8  }
   0x2   :  { %5 = vst [vmem:[#allocation1] sm:$0x3] %v4_v0 }
   0x9   :  { %v10_v1 = vld [vmem:[#allocation1 + $0x1] sm:$0x1]   ;;  %v6_v2 = vld [vmem:[#allocation1] sm:$0x1]  }
   0xa   :  { %11 = vrot.lane.b32.xlu0 %v10_v1, %s22_s0  ;;  %8 = vst.msk [vmem:[#allocation0] sm:$0x1] %vm7_vm0, %v6_v2  }
  0x7c   :  { %v12_v3 = vpop.permute.xlu0 %11  }
  0x7d   :  { %14 = vst.msk [vmem:[#allocation0] sm:$0x1] %vm13_vm1, %v12_v3  }
  0x84   :  { %v18_v4 = vld [vmem:[#allocation0] sm:$0x1] }
  0x85   :  { %20 = vst [vmem:[%s40_s1] sm:$0x1] %v18_v4 }

// kernel: roberta_intents_classifier.1
= control target key start
LH: loop header
LB: loop body
LE: loop exit
PB: predicated region body
PF: predicated region fallthrough
CT: control target
= control target key end

     0   :  { %14 = vsyncpa [#allocation3], 0  ;;  %s4855_s0 = inlined_call_operand.vmem [shape: s32[16,2], index: 0, kind: input, shape index: {}]   ;;  %s4856_s1 = inlined_call_operand.vmem [shape: f32[16,16], index: 1, kind: input, shape index: {}]   ;;  %s4857_s2 = inlined_call_operand.hbm [shape: bf16[256,128], index: 2, kind: input, shape index: {}]   ;;  %s4858_s3 = inlined_call_operand.hbm [shape: bf16[2,128,384], index: 3, kind: input, shape index: {}]   ;;  %s4859_s4 = inlined_call_operand.hbm [shape: bf16[2,128,128], index: 4, kind: input, shape index: {}]   ;;  %s4860_s5 = inlined_call_operand.hbm [shape: bf16[2,128,256], index: 5, kind: input, shape index: {}]   ;;  %s4861_s6 = inlined_call_operand.hbm [shape: bf16[2,256,128], index: 6, kind: input, shape index: {}]   ;;  %s4862_s7 = inlined_call_operand.vmem [shape: bf16[128,128], index: 7, kind: input, shape index: {}]   ;;  %s4863_s8 = inlined_call_operand.hbm [shape: f32[9,384], index: 8, kind: input, shape index: {}]   ;;  %s4864_s9 = inlined_call_operand.vmem [shape: f32[16,128], index: 9, kind: output, shape index: {}]  }
   0x1   :  { %15 = vsyncpa [#allocation5], 0 }
   0x2   :  { %16 = vsyncpa [#allocation8], 0 }
   0x3   :  { %17 = vsyncpa [#allocation11], 0  ;;  %s4310_s30 = smov [#allocation4]   ;;  %s4170_s13 = scalar_lea.hbm %s4858_s3, 6144 }
   0x4   :  { %s39_s10 = sshll.u32 %s4310_s30, 4  ;;  %p4171_p0 = scmp.ne.s32.totalorder %s4858_s3, %s4170_s13  ;;  %s40_s10 = int_to_ptr.vmem [resolvable:$true] %s39_s10 }
   0x5   :  { %p4174_p1 = scmp.lt.u32.totalorder %s4170_s13, %s4858_s3 }
   0x7   :  { %p4176_p2 = pnand %p4174_p1, %p4171_p0 }
   0x9   :  { %4179 = shalt.err (!%p4176_p2)
}
   0xa   :  { %s4180_s18 = scalar_lea.vmem %s40_s10, 6144  ;;  %p4185_p4 = scmp.lt.s32.totalorder %s40_s10, %s40_s10 }
   0xb   :  { %p4181_p3 = scmp.ne.s32.totalorder %s40_s10, %s4180_s18  ;;  %p4186_p5 = scmp.lt.s32.totalorder %s4180_s18, %s4180_s18 }
   0xd   :  { %p4187_p6 = por %p4186_p5, %p4185_p4 }
   0xf   :  { %p4188_p7 = pnand %p4187_p6, %p4181_p3 }
  0x11   :  { %4191 = shalt.err (!%p4188_p7)
}
  0x12   :  { %s4311_s19 = smov 192   ;;  %s4312_s20 = smov 12  }
  0x13   :  { %45 = dma.hbm_to_vmem [thread:$0]  %s4858_s3, 6144, %s40_s10, [#allocation5], %s4311_s19, %s4311_s19, %s4312_s20  }
  0x14   :  { %s4313_s23 = smov [#allocation7]   ;;  %s4192_s27 = scalar_lea.hbm %s4860_s5, 4096 }
  0x15   :  { %s63_s24 = sshll.u32 %s4313_s23, 4  ;;  %p4193_p8 = scmp.ne.s32.totalorder %s4860_s5, %s4192_s27  ;;  %s64_s24 = int_to_ptr.vmem [resolvable:$true] %s63_s24 }
  0x16   :  { %p4196_p9 = scmp.lt.u32.totalorder %s4192_s27, %s4860_s5 }
  0x18   :  { %p4198_p10 = pnand %p4196_p9, %p4193_p8 }
  0x1a   :  { %4201 = shalt.err (!%p4198_p10)
}
  0x1b   :  { %s4202_s12 = scalar_lea.vmem %s64_s24, 4096  ;;  %p4207_p12 = scmp.lt.s32.totalorder %s64_s24, %s64_s24 }
  0x1c   :  { %p4203_p11 = scmp.ne.s32.totalorder %s64_s24, %s4202_s12  ;;  %p4208_p13 = scmp.lt.s32.totalorder %s4202_s12, %s4202_s12 }
  0x1e   :  { %p4209_p0 = por %p4208_p13, %p4207_p12 }
  0x20   :  { %p4210_p1 = pnand %p4209_p0, %p4203_p11 }
  0x22   :  { %4213 = shalt.err (!%p4210_p1)
}
  0x23   :  { %s4314_s3 = smov 128   ;;  %s4315_s10 = smov 8  }
  0x24   :  { %69 = dma.hbm_to_vmem [thread:$0]  %s4860_s5, 4096, %s64_s24, [#allocation8], %s4314_s3, %s4314_s3, %s4315_s10  }
  0x25   :  { %s4316_s15 = smov [#allocation2]   ;;  %s4214_s19 = scalar_lea.hbm %s4857_s2, 2048 }
  0x26   :  { %s27_s16 = sshll.u32 %s4316_s15, 4  ;;  %p4215_p2 = scmp.ne.s32.totalorder %s4857_s2, %s4214_s19  ;;  %s28_s16 = int_to_ptr.vmem [resolvable:$true] %s27_s16 }
  0x27   :  { %p4218_p3 = scmp.lt.u32.totalorder %s4214_s19, %s4857_s2 }
  0x29   :  { %p4220_p4 = pnand %p4218_p3, %p4215_p2 }
  0x2b   :  { %4223 = shalt.err (!%p4220_p4)
}
  0x2c   :  { %s4224_s25 = scalar_lea.vmem %s28_s16, 2048  ;;  %p4229_p6 = scmp.lt.s32.totalorder %s28_s16, %s28_s16 }
  0x2d   :  { %p4225_p5 = scmp.ne.s32.totalorder %s28_s16, %s4224_s25  ;;  %p4230_p7 = scmp.lt.s32.totalorder %s4224_s25, %s4224_s25 }
  0x2f   :  { %p4231_p8 = por %p4230_p7, %p4229_p6 }
  0x31   :  { %p4232_p9 = pnand %p4231_p8, %p4225_p5 }
  0x33   :  { %4235 = shalt.err (!%p4232_p9)
}
  0x34   :  { %s4317_s5 = smov 64   ;;  %s4318_s24 = smov 4  }
  0x35   :  { %33 = dma.hbm_to_vmem [thread:$0]  %s4857_s2, 2048, %s28_s16, [#allocation3], %s4317_s5, %s4317_s5, %s4318_s24  }
  0x36   :  { %s4319_s28 = smov [#allocation6]   ;;  %s4320_s30 = smov [#allocation9]  }
  0x37   :  { %s51_s29 = sshll.u32 %s4319_s28, 4  ;;  %s75_s11 = sshll.u32 %s4320_s30, 4  ;;  %s52_s29 = int_to_ptr.vmem [resolvable:$true] %s51_s29  ;;  %s76_s11 = int_to_ptr.vmem [resolvable:$true] %s75_s11 }
  0x38   :  { %s4236_s10 = scalar_lea.hbm %s4859_s4, 2048 }
  0x39   :  { %p4237_p10 = scmp.ne.s32.totalorder %s4859_s4, %s4236_s10  ;;  %p4240_p11 = scmp.lt.u32.totalorder %s4236_s10, %s4859_s4 }
  0x3b   :  { %p4242_p12 = pnand %p4240_p11, %p4237_p10 }
  0x3d   :  { %4245 = shalt.err (!%p4242_p12)
}
  0x3e   :  { %s4246_s2 = scalar_lea.vmem %s52_s29, 2048  ;;  %p4251_p0 = scmp.lt.s32.totalorder %s52_s29, %s52_s29 }
  0x3f   :  { %p4247_p13 = scmp.ne.s32.totalorder %s52_s29, %s4246_s2  ;;  %p4252_p1 = scmp.lt.s32.totalorder %s4246_s2, %s4246_s2 }
  0x41   :  { %p4253_p2 = por %p4252_p1, %p4251_p0 }
  0x43   :  { %p4254_p3 = pnand %p4253_p2, %p4247_p13 }
  0x45   :  { %4257 = shalt.err (!%p4254_p3)
}
  0x46   :  { %57 = dma.hbm_to_vmem [thread:$0]  %s4859_s4, 2048, %s52_s29, [#allocation5], %s4317_s5, %s4317_s5, %s4318_s24  }
  0x47   :  { %s4258_s21 = scalar_lea.hbm %s4861_s6, 4096 }
  0x48   :  { %p4259_p4 = scmp.ne.s32.totalorder %s4861_s6, %s4258_s21  ;;  %p4262_p5 = scmp.lt.u32.totalorder %s4258_s21, %s4861_s6 }
  0x4a   :  { %p4264_p6 = pnand %p4262_p5, %p4259_p4 }
  0x4c   :  { %4267 = shalt.err (!%p4264_p6)
}
  0x4d   :  { %s4268_s27 = scalar_lea.vmem %s76_s11, 4096  ;;  %p4273_p8 = scmp.lt.s32.totalorder %s76_s11, %s76_s11 }
  0x4e   :  { %p4269_p7 = scmp.ne.s32.totalorder %s76_s11, %s4268_s27  ;;  %p4274_p9 = scmp.lt.s32.totalorder %s4268_s27, %s4268_s27 }
  0x50   :  { %p4275_p10 = por %p4274_p9, %p4273_p8 }
  0x52   :  { %p4276_p11 = pnand %p4275_p10, %p4269_p7 }
  0x54   :  { %4279 = shalt.err (!%p4276_p11)
}
  0x55   :  { %81 = dma.hbm_to_vmem [thread:$0]  %s4861_s6, 4096, %s76_s11, [#allocation8], %s4317_s5, %s4317_s5, %s4318_s24  }
  0x56   :  { %s4321_s29 = smov [#allocation10]   ;;  %s4280_s10 = scalar_lea.hbm %s4863_s8, 768 }
  0x57   :  { %s89_s30 = sshll.u32 %s4321_s29, 4  ;;  %p4281_p12 = scmp.ne.s32.totalorder %s4863_s8, %s4280_s10  ;;  %s90_s30 = int_to_ptr.vmem [resolvable:$true] %s89_s30 }
  0x58   :  { %p4284_p13 = scmp.lt.u32.totalorder %s4280_s10, %s4863_s8 }
  0x5a   :  { %p4286_p0 = pnand %p4284_p13, %p4281_p12 }
  0x5c   :  { %4289 = shalt.err (!%p4286_p0)
}
  0x5d   :  { %s4290_s2 = scalar_lea.vmem %s90_s30, 768  ;;  %p4295_p2 = scmp.lt.s32.totalorder %s90_s30, %s90_s30 }
  0x5e   :  { %p4291_p1 = scmp.ne.s32.totalorder %s90_s30, %s4290_s2  ;;  %p4296_p3 = scmp.lt.s32.totalorder %s4290_s2, %s4290_s2 }
  0x60   :  { %p4297_p4 = por %p4296_p3, %p4295_p2 }
  0x62   :  { %p4298_p5 = pnand %p4297_p4, %p4291_p1 }
  0x64   :  { %4301 = shalt.err (!%p4298_p5)
}
  0x65   :  { %s4322_s6 = smov 384   ;;  %s4323_s24 = smov 24  }
  0x66   :  { %95 = dma.hbm_to_vmem [thread:$0]  %s4863_s8, 768, %s90_s30, [#allocation11], %s4322_s6, %s4322_s6, %s4323_s24  }
  0x67   :  { %4302 = dma.done.wait [#allocation3], 2048  }
  0x68   :  { %4303 = vsyncadd [#allocation3], 4294965248 }
  0x69   :  { %4304 = dma.done.wait [#allocation5], 8192  }
  0x6a   :  { %4305 = vsyncadd [#allocation5], 4294959104 }
  0x6b   :  { %4306 = dma.done.wait [#allocation8], 8192  }
  0x6c   :  { %4307 = vsyncadd [#allocation8], 4294959104 }
  0x6d   :  { %4308 = dma.done.wait [#allocation11], 768  }
  0x6e   :  { %4309 = vsyncadd [#allocation11], 4294966528  ;;  %v4324_v0 = vmov 1   ;;  %v4325_v1 = vmov 0   ;;  %v115_v2 = vld [vmem:[%s4855_s0] sm:$0xff]  ;;  %v116_v3 = vld [vmem:[%s4855_s0 + $0x8] sm:$0xff]  ;;  %v117_v20 = vlaneseq }
  0x6f   :  { %3882 = vset.pattern.permute.xlu1 %v4324_v0  ;;  %3881 = vset.pattern.permute.xlu0 %v4325_v1  ;;  %v3884_v4 = vld [vmem:[#allocation2 + $0x40] sm:$0xff]   ;;  %v3886_v6 = vld [vmem:[#allocation2 + $0x48] sm:$0xff]   ;;  %v3888_v8 = vld [vmem:[#allocation2 + $0x50] sm:$0xff]   ;;  %v4326_v27 = vmov 1.0|1.0   ;;  %v4327_v36 = vmov 0.0  }
  0x70   :  { %570 = vmatprep.mubr.bf16.mxu1 %v4325_v1  ;;  %131 = vperm.xlu1 %3882, %v115_v2   ;;  %v3885_v5 = vld [vmem:[#allocation2] sm:$0xff]   ;;  %v3887_v7 = vld [vmem:[#allocation2 + $0x8] sm:$0xff]   ;;  %v3889_v9 = vld [vmem:[#allocation2 + $0x10] sm:$0xff]   ;;  %v118_v21 = vand.u32 127, %v117_v20  ;;  %vm4328_vm14 = vmmov 0   ;;  %vm625_vm15 = vcmask 261120  }
  0x71   :  { %121 = vperm.xlu0 %3881, %v115_v2   ;;  %3491 = vmatprep.subr.bf16.mxu0 %v3884_v4  ;;  %v3890_v10 = vld [vmem:[#allocation2 + $0x58] sm:$0xff]   ;;  %v3892_v12 = vld [vmem:[#allocation2 + $0x60] sm:$0xff]   ;;  %v3894_v14 = vld [vmem:[#allocation2 + $0x68] sm:$0xff]   ;;  %s4329_s25 = smov 96   ;;  %s4330_s26 = smov 32  }
  0x72   :  { %3492 = vmatpush3.bf16.msra.mxu0 %v3885_v5  ;;  %v3891_v11 = vld [vmem:[#allocation2 + $0x18] sm:$0xff]   ;;  %v3893_v13 = vld [vmem:[#allocation2 + $0x20] sm:$0xff]   ;;  %v3895_v15 = vld [vmem:[#allocation2 + $0x28] sm:$0xff]   ;;  %v119_v22 = vadd.s32 128, %v118_v21 }
  0x73   :  { %3493 = vmatprep.subr.bf16.mxu0 %v3886_v6  ;;  %v3896_v16 = vld [vmem:[#allocation2 + $0x70] sm:$0xff]   ;;  %v3898_v18 = vld [vmem:[#allocation2 + $0x78] sm:$0xff]   ;;  %v3902_v35 = vld [vmem:[#allocation4] ss:$12 sps:$4 sm:$0xff]  }
  0x74   :  { %134 = vperm.xlu1 %3882, %v116_v3   ;;  %v3897_v17 = vld [vmem:[#allocation2 + $0x30] sm:$0xff]   ;;  %v3899_v19 = vld [vmem:[#allocation2 + $0x38] sm:$0xff]   ;;  %v3907_v48 = vld [vmem:[#allocation4 + $0x20] ss:$12 sps:$4 sm:$0xff]  }
  0x75   :  { %124 = vperm.xlu0 %3881, %v116_v3   ;;  %v3900_v34 = vld [vmem:[#allocation4 + $0x4] ss:$12 sps:$4 sm:$0xff]   ;;  %v3903_v37 = vld [vmem:[#allocation4 + $0x8] ss:$12 sps:$4 sm:$0xff]   ;;  %v3912_v52 = vld [vmem:[#allocation4 + $0x4c] ss:$12 sps:$4 sm:$0xff]  }
  0x76   :  { %3494 = vmatpush3.bf16.msra.mxu0 %v3887_v7  ;;  %v3904_v38 = vld [vmem:[#allocation4 + $0x1c] ss:$12 sps:$4 sm:$0xff]   ;;  %538 = vmatprep.subr.bf16.mxu1 %v3900_v34  ;;  %v3906_v47 = vld [vmem:[#allocation4 + $0x18] ss:$12 sps:$4 sm:$0xff]   ;;  %v3908_v49 = vld [vmem:[#allocation4 + $0x34] ss:$12 sps:$4 sm:$0xff]  }
  0x77   :  { %3495 = vmatprep.subr.bf16.mxu0 %v3888_v8  ;;  %539 = vmatpush1.bf16.msra.mxu1 %v3902_v35  ;;  %v3910_v50 = vld [vmem:[#allocation4 + $0x30] ss:$12 sps:$4 sm:$0xff]   ;;  %v3911_v51 = vld [vmem:[#allocation4 + $0x38] ss:$12 sps:$4 sm:$0xff]   ;;  %v3914_v53 = vld [vmem:[#allocation4 + $0x48] ss:$12 sps:$4 sm:$0xff]  }
  0x78   :  { %540 = vmatprep.subr.bf16.mxu1 %v3904_v38  ;;  %v3915_v54 = vld [vmem:[#allocation4 + $0x50] ss:$12 sps:$4 sm:$0xff]   ;;  %v3918_v56 = vld [vmem:[#allocation4 + $0x60] ss:$12 sps:$4 sm:$0xff]   ;;  %v3919_v57 = vld [vmem:[#allocation4 + $0x68] ss:$12 sps:$4 sm:$0xff]  }
  0x79   :  { %3883 = vset.pattern.permute.xlu0 %v4324_v0  ;;  %v3916_v55 = vld [vmem:[#allocation4 + $0x64] ss:$12 sps:$4 sm:$0xff]   ;;  %v3920_v58 = vld [vmem:[#allocation4 + $0x7c] ss:$12 sps:$4 sm:$0xff]   ;;  %v3923_v60 = vld [vmem:[#allocation4 + $0x80] ss:$12 sps:$4 sm:$0xff]  }
  0x7a   :  { %3496 = vmatpush3.bf16.msra.mxu0 %v3889_v9  ;;  %v3922_v59 = vld [vmem:[#allocation4 + $0x78] ss:$12 sps:$4 sm:$0xff]   ;;  %v3924_v61 = vld [vmem:[#allocation4 + $0x94] ss:$12 sps:$4 sm:$0xff]   ;;  %v3926_v62 = vld [vmem:[#allocation4 + $0x90] ss:$12 sps:$4 sm:$0xff]  }
  0x7b   :  { %3497 = vmatprep.subr.bf16.mxu0 %v3890_v10  ;;  %541 = vmatpush1.bf16.msra.mxu1 %v3906_v47  ;;  %v3927_v63 = vld [vmem:[#allocation4 + $0x98] ss:$12 sps:$4 sm:$0xff]   ;;  %v3930_v2 = vld [vmem:[#allocation4 + $0xa8] ss:$12 sps:$4 sm:$0xff]   ;;  %v3931_v3 = vld [vmem:[#allocation4 + $0xb0] ss:$12 sps:$4 sm:$0xff]  }
  0x7c   :  { %542 = vmatprep.subr.bf16.mxu1 %v3908_v49  ;;  %v3928_v0 = vld [vmem:[#allocation4 + $0xac] ss:$12 sps:$4 sm:$0xff]  }
  0x7e   :  { %3498 = vmatpush3.bf16.msra.mxu0 %v3891_v11 }
  0x7f   :  { %3499 = vmatprep.subr.bf16.mxu0 %v3892_v12  ;;  %543 = vmatpush1.bf16.msra.mxu1 %v3910_v50  ;;  %v319_v12 = vld [vmem:[#allocation10] ss:$0 sm:$0xff]  ;;  %v4540_v50 = vld [vmem:[%s4856_s1 + $0x8] sm:$0xff] }
  0x80   :  { %544 = vmatprep.subr.bf16.mxu1 %v3912_v52 }
  0x82   :  { %3500 = vmatpush3.bf16.msra.mxu0 %v3893_v13 }
  0x83   :  { %3501 = vmatprep.subr.bf16.mxu0 %v3894_v14  ;;  %545 = vmatpush1.bf16.msra.mxu1 %v3914_v53 }
  0x84   :  { %546 = vmatprep.subr.bf16.mxu1 %v3916_v55 }
  0x86   :  { %3502 = vmatpush3.bf16.msra.mxu0 %v3895_v15 }
  0x87   :  { %3503 = vmatprep.subr.bf16.mxu0 %v3896_v16  ;;  %547 = vmatpush1.bf16.msra.mxu1 %v3918_v56  ;;  %v320_v16 = vld [vmem:[#allocation10 + $0x8] ss:$0 sm:$0xff] }
  0x88   :  { %548 = vmatprep.subr.bf16.mxu1 %v3920_v58 }
  0x8a   :  { %3504 = vmatpush3.bf16.msra.mxu0 %v3897_v17 }
  0x8b   :  { %3505 = vmatprep.subr.bf16.mxu0 %v3898_v18  ;;  %549 = vmatpush1.bf16.msra.mxu1 %v3922_v59 }
  0x8c   :  { %550 = vmatprep.subr.bf16.mxu1 %v3924_v61 }
  0x8e   :  { %3506 = vmatpush3.bf16.msra.mxu0 %v3899_v19 }
  0x8f   :  { %3640 = vmatprep.subr.bf16.mxu0 %v4327_v36  ;;  %551 = vmatpush1.bf16.msra.mxu1 %v3926_v62 }
  0x90   :  { %552 = vmatprep.subr.bf16.mxu1 %v3928_v0 }
  0x93   :  { %553 = vmatpush1.bf16.msra.mxu1 %v3930_v2 }
  0x94   :  { %3660 = vmatprep.subr.bf16.mxu1 %v4327_v36 }
  0xef   :  { %v132_v23 = vpop.permute.xlu1 %131 }
  0xf0   :  { %v122_v24 = vpop.permute.xlu0 %121  ;;  %vm136_vm0 = vcmp.eq.s32.totalorder %v118_v21, %v132_v23  ;;  %vm137_vm2 = vcmp.eq.s32.totalorder %v119_v22, %v132_v23 }
  0xf1   :  { %vm126_vm1 = vcmp.eq.s32.totalorder %v118_v21, %v122_v24  ;;  %vm127_vm3 = vcmp.eq.s32.totalorder %v119_v22, %v122_v24 }
  0xf2   :  { %vm140_vm4 = vmor %vm126_vm1, %vm136_vm0  ;;  %vm673_vm0 = vcmask 130048  }
  0xf3   :  { %v135_v25 = vpop.permute.xlu1 %134  ;;  %vm141_vm9 = vmor %vm127_vm3, %vm137_vm2 }
  0xf4   :  { %v125_v26 = vpop.permute.xlu0 %124  ;;  %vm138_vm5 = vcmp.eq.s32.totalorder %v118_v21, %v135_v25  ;;  %vm139_vm6 = vcmp.eq.s32.totalorder %v119_v22, %v135_v25  ;;  %v352_v25 = vld [vmem:[#allocation10 + $0x1] ss:$8 sm:$0x7] }
  0xf5   :  { %vm128_vm7 = vcmp.eq.s32.totalorder %v118_v21, %v125_v26  ;;  %vm129_vm8 = vcmp.eq.s32.totalorder %v119_v22, %v125_v26  ;;  %v4504_v22 = vshrl.u32 %v117_v20, 7 }
  0xf6   :  { %vm142_vm10 = vmor %vm128_vm7, %vm138_vm5 }
  0xf7   :  { %vm143_vm11 = vmor %vm129_vm8, %vm139_vm6  ;;  %v4507_v23 = vsub.s32 0, %v4504_v22  ;;  %v405_v24 = vsub.s32 2, %v4504_v22  ;;  %v4511_v26 = vsub.s32 1, %v4504_v22 }
  0xf8   :  { %vm3327_vm12 = vmpackc.low %vm143_vm11, %vm141_vm9 }
  0xf9   :  { %3328 = vmatprep.mubr.msk.bf16.mxu0 %vm3327_vm12, %v4326_v27  ;;  %vm3329_vm13 = vmpackc.low %vm142_vm10, %vm140_vm4 }
  0xfa   :  { %3330 = vmatmul.mubr.msk.bf16.vlgmr.msra.gmra.mrb[0].mxu0 %vm3329_vm13, %v4326_v27  ;;  %v398_v27 = vrot.slane %v352_v25, %v4507_v23 }
  0xfb   :  { %3641 = vmatpush3.bf16.msra.mxu0 %v3903_v37  ;;  %3656 = vmatprep.mubr.msk.bf16.mxu0 %vm4328_vm14, %v4327_v36 }
  0xfc   :  { %3642 = vmatprep.subr.bf16.mxu0 %v4327_v36 }
  0xff   :  { %3643 = vmatpush3.bf16.msra.mxu0 %v3907_v48  ;;  %v4535_v48 = vld [vmem:[%s4856_s1] sm:$0xff] }
 0x100   :  { %3644 = vmatprep.subr.bf16.mxu0 %v4327_v36 }
 0x103   :  { %3645 = vmatpush3.bf16.msra.mxu0 %v3911_v51 }
 0x104   :  { %3646 = vmatprep.subr.bf16.mxu0 %v4327_v36 }
 0x107   :  { %3647 = vmatpush3.bf16.msra.mxu0 %v3915_v54 }
 0x108   :  { %3648 = vmatprep.subr.bf16.mxu0 %v4327_v36 }
 0x10b   :  { %3649 = vmatpush3.bf16.msra.mxu0 %v3919_v57 }
 0x10c   :  { %3650 = vmatprep.subr.bf16.mxu0 %v4327_v36 }
 0x10f   :  { %3651 = vmatpush3.bf16.msra.mxu0 %v3923_v60 }
 0x110   :  { %3652 = vmatprep.subr.bf16.mxu0 %v4327_v36 }
 0x113   :  { %3653 = vmatpush3.bf16.msra.mxu0 %v3927_v63 }
 0x114   :  { %3654 = vmatprep.subr.bf16.mxu0 %v4327_v36 }
 0x117   :  { %3655 = vmatpush3.bf16.msra.mxu0 %v3931_v3 }
 0x118   :  { %3712 = vmatprep.subr.bf16.mxu0 %v4327_v36 }
 0x1cd   :  { %v3507_v28 = vpop.f32.mrb[0].mxu0 }
 0x1ce   :  { %v3508_v29 = vpop.f32.mrb[1].mxu0 }
 0x1cf   :  { %v3509_v30 = vadd.f32 %v3508_v29, %v3507_v28  ;;  %v3510_v31 = vpop.f32.mrb[2].mxu0  ;;  %v406_v28 = vrot.slane %v352_v25, %v405_v24 }
 0x1d0   :  { %v3511_v32 = vpop.f32.mrb[3].mxu0 }
 0x1d1   :  { %v3512_v33 = vadd.f32 %v3511_v32, %v3510_v31  ;;  %322 = vadd.xlane.f32.xlu0 %v3509_v30  ;;  %v402_v31 = vrot.slane %v352_v25, %v4511_v26 }
 0x1d3   :  { %324 = vadd.xlane.f32.xlu1 %v3512_v33 }
 0x25e   :  { %v323_v39 = vpop.xlane.xlu0 %322 }
 0x25f   :  { %v327_v40 = vmul.f32 0.0078125, %v323_v39 }
 0x260   :  { %v325_v41 = vpop.xlane.xlu1 %324 }
 0x261   :  { %v4473_v42 = vsub.f32 %v3509_v30, %v327_v40  ;;  %v328_v43 = vmul.f32 0.0078125, %v325_v41 }
 0x263   :  { %v4475_v44 = vsub.f32 %v3512_v33, %v328_v43  ;;  %v331_v45 = vmul.f32 %v4473_v42, %v4473_v42 }
 0x265   :  { %333 = vadd.xlane.f32.xlu0 %v331_v45  ;;  %v332_v46 = vmul.f32 %v4475_v44, %v4475_v44 }
 0x269   :  { %335 = vadd.xlane.f32.xlu0 %v332_v46 }
 0x2f2   :  { %v334_v4 = vpop.xlane.xlu0 %333 }
 0x2f3   :  { %v337_v5 = vmul.f32 0.0078125, %v334_v4 }
 0x2f5   :  { %v339_v6 = vadd.f32 1e-05, %v337_v5 }
 0x2f6   :  { %v336_v7 = vpop.xlane.xlu0 %335 }
 0x2f7   :  { %4068 = vrsqrt.f32 %v339_v6  ;;  %v338_v8 = vmul.f32 0.0078125, %v336_v7 }
 0x2f9   :  { %v340_v9 = vadd.f32 1e-05, %v338_v8 }
 0x2fb   :  { %4070 = vrsqrt.f32 %v340_v9 }
 0x301   :  { %v4069_v10 = vpop.eup %4068 }
 0x302   :  { %v343_v11 = vmul.f32 %v4069_v10, %v4473_v42 }
 0x304   :  { %v345_v15 = vmul.f32 %v343_v11, %v319_v12 }
 0x305   :  { %v4071_v13 = vpop.eup %4070 }
 0x306   :  { %v344_v14 = vmul.f32 %v4071_v13, %v4475_v44  ;;  %v4493_v18 = vadd.f32 %v345_v15, %v320_v16 }
 0x308   :  { %v346_v17 = vmul.f32 %v344_v14, %v319_v12 }
 0x30a   :  { %v4495_v19 = vadd.f32 %v346_v17, %v320_v16 }
 0x30c   :  { %v361_v21 = vpack.c.bf16 %v4495_v19, %v4493_v18 }
 0x30e   :  { %571 = vmatmul.mubr.bf16.vlgmr.msra.gmra.mrb[0].mxu1 %v361_v21  ;;  %3657 = vmatmul.mubr.bf16.vlgmr.msra.gmra.mrb[4].mxu0 %v361_v21 }
 0x30f   :  { %3662 = vmatprep.mubr.msk.bf16.mxu1 %vm4328_vm14, %v4327_v36  ;;  %3716 = vmatprep.mubr.msk.bf16.mxu0 %vm4328_vm14, %v4327_v36 }
 0x3e1   :  { %v572_v29 = vpop.f32.mrb[0].mxu1  ;;  %v615_v30 = vpop.f32.mrb[4].mxu0 }
 0x3e2   :  { %v574_v20 = vpop.f32.mrb[1].mxu1  ;;  %v3658_v32 = vpop.f32.mrb[5].mxu0  ;;  %v573_v35 = vadd.f32 %v572_v29, %v398_v27  ;;  %v616_v37 = vadd.f32 %v615_v30, %v406_v28 }
 0x3e3   :  { %v576_v33 = vpop.f32.mrb[2].mxu1  ;;  %v618_v34 = vpop.f32.mrb[6].mxu0  ;;  %v575_v42 = vadd.f32 %v574_v20, %v402_v31 }
 0x3e4   :  { %v577_v38 = vadd.f32 %v576_v33, %v398_v27  ;;  %v619_v39 = vadd.f32 %v618_v34, %v406_v28  ;;  %v578_v40 = vpop.f32.mrb[3].mxu1  ;;  %v3659_v41 = vpop.f32.mrb[7].mxu0 }
 0x3e5   :  { %v579_v43 = vadd.f32 %v578_v40, %v402_v31 }
 0x3e6   :  { %v4517_v44 = vpack.c.bf16 %v577_v38, %v573_v35  ;;  %v4519_v45 = vpack.c.bf16 %v619_v39, %v616_v37 }
 0x3e7   :  { %v4521_v46 = vpack.c.bf16 %v579_v43, %v575_v42 }
 0x3e9   :  { %v630_v47 = vsel %vm625_vm15, %v4521_v46, 0 }
 0x3ea   :  { %3661 = vmatpush3.bf16.xpose.msra.mxu1 %v630_v47 }
 0x3eb   :  { %3666 = vmatprep.subr.bf16.mxu1 %v4327_v36 }
 0x3f1   :  { %3663 = vmatmul.mubr.msk.bf16.vlgmr.msra.gmra.mrb[4].mxu1 %vm625_vm15, %v4517_v44 }
 0x3f2   :  { %3667 = vmatpush3.bf16.msra.mxu1 %v4519_v45  ;;  %3668 = vmatprep.mubr.msk.bf16.mxu1 %vm4328_vm14, %v4327_v36 }
 0x3f3   :  { %3672 = vmatprep.subr.bf16.mxu1 %v4327_v36 }
 0x4c4   :  { %v666_v49 = vpop.f32.mrb[4].mxu1 }
 0x4c5   :  { %v667_v51 = vadd.f32 %v666_v49, %v4535_v48  ;;  %v3664_v52 = vpop.f32.mrb[5].mxu1 }
 0x4c6   :  { %v669_v53 = vpop.f32.mrb[6].mxu1 }
 0x4c7   :  { %v670_v54 = vadd.f32 %v669_v53, %v4540_v50  ;;  %v3665_v55 = vpop.f32.mrb[7].mxu1  ;;  %v674_v56 = vsel %vm673_vm0, %v667_v51, -inf }
 0x4c8   :  { %675 = vmax.xlane.f32.xlu1 %v674_v56 }
 0x4c9   :  { %v677_v57 = vsel %vm673_vm0, %v670_v54, -inf }
 0x4ca   :  { %678 = vmax.xlane.f32.xlu0 %v677_v57  ;;  %v3932_v57 = vld [vmem:[#allocation6 + $0x10] sm:$0xff]  }
 0x555   :  { %v676_v58 = vpop.xlane.xlu1 %675 }
 0x556   :  { %v680_v59 = vsub.f32 %v667_v51, %v676_v58 }
 0x557   :  { %v679_v60 = vpop.xlane.xlu0 %678 }
 0x558   :  { %v682_v61 = vmul.f32 1.442695, %v680_v59  ;;  %v681_v62 = vsub.f32 %v670_v54, %v679_v60  ;;  %v3933_v59 = vld [vmem:[#allocation6 + $0x18] sm:$0xff]  }
 0x55a   :  { %4072 = vpow2.f32 %v682_v61  ;;  %v684_v63 = vmul.f32 1.442695, %v681_v62 }
 0x55c   :  { %4074 = vpow2.f32 %v684_v63  ;;  %v3934_v63 = vld [vmem:[#allocation6] sm:$0xff]  }
 0x564   :  { %v4073_v0 = vpop.eup %4072 }
 0x565   :  { %v686_v2 = vsel %vm673_vm0, %v4073_v0, 0.0 }
 0x566   :  { %v4075_v3 = vpop.eup %4074  ;;  %687 = vadd.xlane.f32.xlu1 %v686_v2 }
 0x567   :  { %v689_v4 = vsel %vm673_vm0, %v4075_v3, 0.0 }
 0x568   :  { %690 = vadd.xlane.f32.xlu0 %v689_v4 }
 0x577   :  { %750 = vrot.lane.b32.xlu1 %v4521_v46, %s4329_s25 }
 0x57e   :  { %747 = vrot.lane.b32.xlu0 %v4517_v44, %s4329_s25 }
 0x5f3   :  { %v688_v5 = vpop.xlane.xlu1 %687 }
 0x5f4   :  { %4076 = vrcp.f32 %v688_v5 }
 0x5f5   :  { %v691_v6 = vpop.xlane.xlu0 %690 }
 0x5f6   :  { %4078 = vrcp.f32 %v691_v6 }
 0x5f7   :  { %v751_v11 = vpop.permute.xlu1 %750 }
 0x5f8   :  { %v756_v13 = vsel %vm625_vm15, %v751_v11, 0 }
 0x5f9   :  { %v748_v14 = vpop.permute.xlu0 %747 }
 0x5fe   :  { %v4077_v7 = vpop.eup %4076 }
 0x5ff   :  { %v694_v9 = vmul.f32 %v4077_v7, %v4073_v0 }
 0x600   :  { %v4079_v8 = vpop.eup %4078 }
 0x601   :  { %v695_v10 = vmul.f32 %v4079_v8, %v4075_v3  ;;  %v3935_v3 = vld [vmem:[#allocation6 + $0x8] sm:$0xff]  }
 0x603   :  { %v696_v12 = vpack.c.bf16 %v695_v10, %v694_v9 }
 0x605   :  { %3669 = vmatmul.mubr.msk.bf16.vlgmr.msra.gmra.mrb[8].mxu1 %vm673_vm0, %v696_v12 }
 0x606   :  { %3673 = vmatpush3.bf16.xpose.msra.mxu1 %v756_v13  ;;  %3674 = vmatprep.mubr.msk.bf16.mxu1 %vm4328_vm14, %v4327_v36 }
 0x607   :  { %3678 = vmatprep.subr.bf16.mxu1 %v4327_v36 }
 0x60d   :  { %3675 = vmatmul.mubr.msk.bf16.vlgmr.msra.gmra.mrb[12].mxu1 %vm625_vm15, %v748_v14 }
 0x60e   :  { %3680 = vmatprep.mubr.msk.bf16.mxu1 %vm4328_vm14, %v4327_v36 }
 0x6d8   :  { %v4560_v15 = vpop.f32.mrb[8].mxu1 }
 0x6d9   :  { %v3670_v16 = vpop.f32.mrb[9].mxu1 }
 0x6da   :  { %v4562_v17 = vpop.f32.mrb[10].mxu1 }
 0x6db   :  { %v741_v21 = vpack.c.bf16 %v4562_v17, %v4560_v15  ;;  %v3671_v25 = vpop.f32.mrb[11].mxu1 }
 0x6e0   :  { %v792_v27 = vpop.f32.mrb[12].mxu1 }
 0x6e1   :  { %v793_v28 = vadd.f32 %v792_v27, %v4535_v48  ;;  %v3676_v29 = vpop.f32.mrb[13].mxu1 }
 0x6e2   :  { %v795_v30 = vpop.f32.mrb[14].mxu1 }
 0x6e3   :  { %v796_v31 = vadd.f32 %v795_v30, %v4540_v50  ;;  %v3677_v20 = vpop.f32.mrb[15].mxu1  ;;  %v799_v32 = vsel %vm673_vm0, %v793_v28, -inf }
 0x6e4   :  { %800 = vmax.xlane.f32.xlu1 %v799_v32 }
 0x6e5   :  { %v802_v33 = vsel %vm673_vm0, %v796_v31, -inf }
 0x6e6   :  { %803 = vmax.xlane.f32.xlu0 %v802_v33 }
 0x771   :  { %v801_v34 = vpop.xlane.xlu1 %800 }
 0x772   :  { %v805_v35 = vsub.f32 %v793_v28, %v801_v34 }
 0x773   :  { %v804_v37 = vpop.xlane.xlu0 %803 }
 0x774   :  { %v807_v38 = vmul.f32 1.442695, %v805_v35  ;;  %v806_v39 = vsub.f32 %v796_v31, %v804_v37 }
 0x776   :  { %4080 = vpow2.f32 %v807_v38  ;;  %v809_v40 = vmul.f32 1.442695, %v806_v39 }
 0x778   :  { %4082 = vpow2.f32 %v809_v40 }
 0x780   :  { %v4081_v41 = vpop.eup %4080 }
 0x781   :  { %v811_v42 = vsel %vm673_vm0, %v4081_v41, 0.0 }
 0x782   :  { %v4083_v43 = vpop.eup %4082  ;;  %812 = vadd.xlane.f32.xlu1 %v811_v42  ;;  %v3936_v42 = vld [vmem:[#allocation6 + $0x20] sm:$0xff]  }
 0x783   :  { %v814_v47 = vsel %vm673_vm0, %v4083_v43, 0.0  ;;  %3713 = vmatpush3.bf16.msra.mxu0 %v3936_v42 }
 0x784   :  { %815 = vadd.xlane.f32.xlu0 %v814_v47  ;;  %3714 = vmatprep.subr.bf16.mxu0 %v4327_v36 }
 0x793   :  { %823 = vrot.lane.b32.xlu1 %v4519_v45, %s4329_s25 }
 0x797   :  { %987 = vrot.lane.b32.xlu1 %v4517_v44, %s4317_s5 }
 0x79a   :  { %989 = vrot.lane.b32.xlu0 %v4521_v46, %s4317_s5 }
 0x80f   :  { %v813_v49 = vpop.xlane.xlu1 %812 }
 0x810   :  { %4084 = vrcp.f32 %v813_v49 }
 0x811   :  { %v816_v51 = vpop.xlane.xlu0 %815 }
 0x812   :  { %4086 = vrcp.f32 %v816_v51 }
 0x813   :  { %v824_v52 = vpop.permute.xlu1 %823 }
 0x814   :  { %3679 = vmatpush3.bf16.msra.mxu1 %v824_v52 }
 0x815   :  { %3684 = vmatprep.subr.bf16.mxu1 %v4327_v36  ;;  %v990_v4 = vpop.permute.xlu0 %989 }
 0x816   :  { %v995_v5 = vsel %vm625_vm15, %v990_v4, 0 }
 0x817   :  { %v988_v6 = vpop.permute.xlu1 %987 }
 0x81a   :  { %v4085_v53 = vpop.eup %4084 }
 0x81b   :  { %v819_v55 = vmul.f32 %v4085_v53, %v4081_v41 }
 0x81c   :  { %v4087_v54 = vpop.eup %4086 }
 0x81d   :  { %v820_v56 = vmul.f32 %v4087_v54, %v4083_v43 }
 0x81f   :  { %v821_v58 = vpack.c.bf16 %v820_v56, %v819_v55 }
 0x821   :  { %3681 = vmatmul.mubr.msk.bf16.vlgmr.msra.gmra.mrb[16].mxu1 %vm673_vm0, %v821_v58 }
 0x822   :  { %3685 = vmatpush3.bf16.msra.mxu1 %v3932_v57  ;;  %3688 = vmatprep.mubr.msk.bf16.mxu1 %vm4328_vm14, %v4327_v36  ;;  %v3937_v57 = vld [vmem:[#allocation6 + $0x28] sm:$0xff]  }
 0x823   :  { %3686 = vmatprep.subr.bf16.mxu1 %v4327_v36  ;;  %3715 = vmatpush3.bf16.msra.mxu0 %v3937_v57  ;;  %v3940_v57 = vld [vmem:[#allocation7] ss:$8 sps:$4 sm:$0xff]  }
 0x824   :  { %3726 = vmatprep.subr.bf16.mxu0 %v4327_v36 }
 0x826   :  { %3687 = vmatpush3.bf16.msra.mxu1 %v3933_v59 }
 0x827   :  { %3692 = vmatprep.subr.bf16.mxu1 %v4327_v36 }
 0x8f4   :  { %v863_v60 = vpop.f32.mrb[16].mxu1 }
 0x8f5   :  { %v3682_v61 = vpop.f32.mrb[17].mxu1 }
 0x8f6   :  { %v866_v62 = vpop.f32.mrb[18].mxu1 }
 0x8f7   :  { %v870_v0 = vpack.c.bf16 %v866_v62, %v863_v60  ;;  %v3683_v2 = vpop.f32.mrb[19].mxu1 }
 0x8f9   :  { %3689 = vmatmul.mubr.msk.bf16.vlgmr.msra.gmra.mrb[20].mxu1 %vm625_vm15, %v870_v0 }
 0x8fa   :  { %3693 = vmatpush3.bf16.msra.mxu1 %v3934_v63  ;;  %3696 = vmatprep.mubr.msk.bf16.mxu1 %vm4328_vm14, %v4327_v36 }
 0x8fb   :  { %3694 = vmatprep.subr.bf16.mxu1 %v4327_v36 }
 0x8fe   :  { %3695 = vmatpush3.bf16.msra.mxu1 %v3935_v3 }
 0x8ff   :  { %3700 = vmatprep.subr.bf16.mxu1 %v4327_v36 }
 0x901   :  { %3697 = vmatmul.mubr.msk.bf16.vlgmr.msra.gmra.mrb[24].mxu1 %vm625_vm15, %v741_v21 }
 0x902   :  { %3702 = vmatprep.mubr.msk.bf16.mxu1 %vm4328_vm14, %v4327_v36 }
 0x907   :  { %3701 = vmatpush3.bf16.xpose.msra.mxu1 %v995_v5 }
 0x908   :  { %3706 = vmatprep.subr.bf16.mxu1 %v4327_v36 }
 0x90e   :  { %3703 = vmatmul.mubr.msk.bf16.vlgmr.msra.gmra.mrb[28].mxu1 %vm625_vm15, %v988_v6 }
 0x90f   :  { %3708 = vmatprep.mubr.msk.bf16.mxu1 %vm4328_vm14, %v4327_v36 }
 0x9cc   :  { %v924_v7 = vpop.f32.mrb[20].mxu1 }
 0x9cd   :  { %v3690_v8 = vpop.f32.mrb[21].mxu1 }
 0x9ce   :  { %v927_v9 = vpop.f32.mrb[22].mxu1 }
 0x9cf   :  { %v3691_v10 = vpop.f32.mrb[23].mxu1 }
 0x9d4   :  { %v980_v11 = vpop.f32.mrb[24].mxu1 }
 0x9d5   :  { %v4597_v12 = vadd.f32 %v980_v11, %v924_v7  ;;  %v3698_v13 = vpop.f32.mrb[25].mxu1 }
 0x9d6   :  { %v983_v14 = vpop.f32.mrb[26].mxu1 }
 0x9d7   :  { %v4599_v15 = vadd.f32 %v983_v14, %v927_v9  ;;  %v3699_v16 = vpop.f32.mrb[27].mxu1 }
 0x9e1   :  { %v1031_v17 = vpop.f32.mrb[28].mxu1 }
 0x9e2   :  { %v1032_v21 = vadd.f32 %v1031_v17, %v4535_v48  ;;  %v3704_v25 = vpop.f32.mrb[29].mxu1 }
 0x9e3   :  { %v1034_v27 = vpop.f32.mrb[30].mxu1  ;;  %v3938_v25 = vld [vmem:[#allocation6 + $0x30] sm:$0xff]  }
 0x9e4   :  { %v1035_v28 = vadd.f32 %v1034_v27, %v4540_v50  ;;  %v3705_v29 = vpop.f32.mrb[31].mxu1  ;;  %v1038_v30 = vsel %vm673_vm0, %v1032_v21, -inf }
 0x9e5   :  { %1039 = vmax.xlane.f32.xlu1 %v1038_v30 }
 0x9e6   :  { %v1041_v31 = vsel %vm673_vm0, %v1035_v28, -inf }
 0x9e7   :  { %1042 = vmax.xlane.f32.xlu0 %v1041_v31 }
 0xa72   :  { %v1040_v20 = vpop.xlane.xlu1 %1039 }
 0xa73   :  { %v1044_v32 = vsub.f32 %v1032_v21, %v1040_v20 }
 0xa74   :  { %v1043_v33 = vpop.xlane.xlu0 %1042 }
 0xa75   :  { %v1046_v34 = vmul.f32 1.442695, %v1044_v32  ;;  %v1045_v35 = vsub.f32 %v1035_v28, %v1043_v33 }
 0xa77   :  { %4088 = vpow2.f32 %v1046_v34  ;;  %v1048_v37 = vmul.f32 1.442695, %v1045_v35 }
 0xa79   :  { %4090 = vpow2.f32 %v1048_v37 }
 0xa81   :  { %v4089_v38 = vpop.eup %4088 }
 0xa82   :  { %v1050_v39 = vsel %vm673_vm0, %v4089_v38, 0.0 }
 0xa83   :  { %v4091_v40 = vpop.eup %4090  ;;  %1051 = vadd.xlane.f32.xlu0 %v1050_v39  ;;  %v3939_v39 = vld [vmem:[#allocation6 + $0x38] sm:$0xff]  }
 0xa84   :  { %v1053_v41 = vsel %vm673_vm0, %v4091_v40, 0.0 }
 0xa85   :  { %1054 = vadd.xlane.f32.xlu1 %v1053_v41 }
 0xa96   :  { %1173 = vrot.lane.b32.xlu1 %v4521_v46, %s4330_s26 }
 0xa99   :  { %1061 = vrot.lane.b32.xlu0 %v4519_v45, %s4317_s5 }
 0xa9a   :  { %1171 = vrot.lane.b32.xlu1 %v4517_v44, %s4330_s26 }
 0xb10   :  { %v1052_v43 = vpop.xlane.xlu0 %1051 }
 0xb11   :  { %4092 = vrcp.f32 %v1052_v43  ;;  %v353_v43 = vld [vmem:[#allocation10 + $0x2] ss:$0 sm:$0xff] }
 0xb12   :  { %v1055_v47 = vpop.xlane.xlu1 %1054 }
 0xb13   :  { %4094 = vrcp.f32 %v1055_v47 }
 0xb14   :  { %v1062_v49 = vpop.permute.xlu0 %1061 }
 0xb15   :  { %3707 = vmatpush3.bf16.msra.mxu1 %v1062_v49 }
 0xb16   :  { %3720 = vmatprep.subr.bf16.mxu1 %v4327_v36  ;;  %v1174_v54 = vpop.permute.xlu1 %1173 }
 0xb17   :  { %v1179_v44 = vsel %vm625_vm15, %v1174_v54, 0 }
 0xb1a   :  { %v1172_v56 = vpop.permute.xlu1 %1171 }
 0xb1b   :  { %v4093_v51 = vpop.eup %4092 }
 0xb1c   :  { %v1058_v52 = vmul.f32 %v4093_v51, %v4089_v38 }
 0xb1d   :  { %v4095_v46 = vpop.eup %4094 }
 0xb1e   :  { %v1059_v53 = vmul.f32 %v4095_v46, %v4091_v40 }
 0xb20   :  { %v1060_v55 = vpack.c.bf16 %v1059_v53, %v1058_v52 }
 0xb22   :  { %3709 = vmatmul.mubr.msk.bf16.vlgmr.msra.gmra.mrb[32].mxu1 %vm673_vm0, %v1060_v55 }
 0xb23   :  { %3721 = vmatpush3.bf16.xpose.msra.mxu1 %v1179_v44  ;;  %3722 = vmatprep.mubr.msk.bf16.mxu1 %vm4328_vm14, %v4327_v36 }
 0xb24   :  { %3732 = vmatprep.subr.bf16.mxu1 %v4327_v36 }
 0xb2a   :  { %3723 = vmatmul.mubr.msk.bf16.vlgmr.msra.gmra.mrb[36].mxu1 %vm625_vm15, %v1172_v56 }
 0xb2b   :  { %3736 = vmatprep.mubr.msk.bf16.mxu1 %vm4328_vm14, %v4327_v36  ;;  %3733 = vmatpush3.bf16.msra.mxu1 %v3938_v25 }
 0xb2c   :  { %3734 = vmatprep.subr.bf16.mxu1 %v4327_v36 }
 0xb2f   :  { %3735 = vmatpush3.bf16.msra.mxu1 %v3939_v39  ;;  %v3964_v39 = vld [vmem:[#allocation9 + $0x40] sm:$0xff]  }
 0xb30   :  { %3550 = vmatprep.subr.bf16.mxu1 %v3964_v39 }
 0xbf5   :  { %v1101_v58 = vpop.f32.mrb[32].mxu1 }
 0xbf6   :  { %v3710_v59 = vpop.f32.mrb[33].mxu1 }
 0xbf7   :  { %v1104_v60 = vpop.f32.mrb[34].mxu1  ;;  %v3945_v59 = vld [vmem:[#allocation7 + $0x14] ss:$8 sps:$4 sm:$0xff]  }
 0xbf8   :  { %v1108_v61 = vpack.c.bf16 %v1104_v60, %v1101_v58  ;;  %v3711_v62 = vpop.f32.mrb[35].mxu1  ;;  %v3942_v58 = vld [vmem:[#allocation7 + $0x4] ss:$8 sps:$4 sm:$0xff]   ;;  %v3943_v60 = vld [vmem:[#allocation7 + $0x10] ss:$8 sps:$4 sm:$0xff]  }
 0xbfa   :  { %3717 = vmatmul.mubr.msk.bf16.vlgmr.msra.gmra.mrb[8].mxu0 %vm625_vm15, %v1108_v61 }
 0xbfb   :  { %3728 = vmatprep.mubr.msk.bf16.mxu0 %vm4328_vm14, %v4327_v36 }
 0xbfd   :  { %v1215_v63 = vpop.f32.mrb[36].mxu1 }
 0xbfe   :  { %v1216_v0 = vadd.f32 %v1215_v63, %v4535_v48  ;;  %v3724_v2 = vpop.f32.mrb[37].mxu1 }
 0xbff   :  { %v1218_v3 = vpop.f32.mrb[38].mxu1 }
 0xc00   :  { %v1219_v4 = vadd.f32 %v1218_v3, %v4540_v50  ;;  %v3725_v5 = vpop.f32.mrb[39].mxu1  ;;  %v1222_v6 = vsel %vm673_vm0, %v1216_v0, -inf }
 0xc01   :  { %1223 = vmax.xlane.f32.xlu0 %v1222_v6  ;;  %v3946_v5 = vld [vmem:[#allocation7 + $0x20] ss:$8 sps:$4 sm:$0xff]   ;;  %v3951_v6 = vld [vmem:[#allocation7 + $0x34] ss:$8 sps:$4 sm:$0xff]  }
 0xc02   :  { %v1225_v7 = vsel %vm673_vm0, %v1219_v4, -inf }
 0xc03   :  { %1226 = vmax.xlane.f32.xlu1 %v1225_v7  ;;  %v3949_v7 = vld [vmem:[#allocation7 + $0x30] ss:$8 sps:$4 sm:$0xff]  }
 0xc14   :  { %1245 = vrot.lane.b32.xlu1 %v4519_v45, %s4330_s26 }
 0xc8e   :  { %v1224_v8 = vpop.xlane.xlu0 %1223 }
 0xc8f   :  { %v1228_v9 = vsub.f32 %v1216_v0, %v1224_v8  ;;  %v3954_v8 = vld [vmem:[#allocation7 + $0x44] ss:$8 sps:$4 sm:$0xff]  }
 0xc90   :  { %v1227_v10 = vpop.xlane.xlu1 %1226 }
 0xc91   :  { %v1230_v11 = vmul.f32 1.442695, %v1228_v9  ;;  %v1229_v13 = vsub.f32 %v1219_v4, %v1227_v10  ;;  %v3952_v9 = vld [vmem:[#allocation7 + $0x40] ss:$8 sps:$4 sm:$0xff]   ;;  %v3957_v10 = vld [vmem:[#allocation7 + $0x54] ss:$8 sps:$4 sm:$0xff]  }
 0xc93   :  { %4096 = vpow2.f32 %v1230_v11  ;;  %v1232_v48 = vmul.f32 1.442695, %v1229_v13  ;;  %v3955_v11 = vld [vmem:[#allocation7 + $0x50] ss:$8 sps:$4 sm:$0xff]   ;;  %v3960_v13 = vld [vmem:[#allocation7 + $0x64] ss:$8 sps:$4 sm:$0xff]  }
 0xc94   :  { %v1246_v14 = vpop.permute.xlu1 %1245 }
 0xc95   :  { %4098 = vpow2.f32 %v1232_v48  ;;  %3727 = vmatpush3.bf16.msra.mxu0 %v1246_v14  ;;  %v3958_v48 = vld [vmem:[#allocation7 + $0x60] ss:$8 sps:$4 sm:$0xff]   ;;  %v3963_v14 = vld [vmem:[#allocation7 + $0x74] ss:$8 sps:$4 sm:$0xff]  }
 0xc96   :  { %1493 = vmatprep.subr.bf16.mxu0 %v3942_v58 }
 0xc9d   :  { %v4097_v50 = vpop.eup %4096 }
 0xc9e   :  { %v1234_v16 = vsel %vm673_vm0, %v4097_v50, 0.0 }
 0xc9f   :  { %v4099_v17 = vpop.eup %4098  ;;  %1235 = vadd.xlane.f32.xlu0 %v1234_v16 }
 0xca0   :  { %v1237_v21 = vsel %vm673_vm0, %v4099_v17, 0.0 }
 0xca3   :  { %1238 = vadd.xlane.f32.xlu0 %v1237_v21 }
 0xccd   :  { %v1162_v45 = vpop.f32.mrb[8].mxu0 }
 0xcce   :  { %v1169_v27 = vadd.f32 %v1162_v45, %v4597_v12  ;;  %v3718_v28 = vpop.f32.mrb[9].mxu0 }
 0xccf   :  { %v1165_v29 = vpop.f32.mrb[10].mxu0 }
 0xcd0   :  { %v1170_v30 = vadd.f32 %v1165_v29, %v4599_v15  ;;  %v3719_v31 = vpop.f32.mrb[11].mxu0 }
 0xd2c   :  { %v1236_v20 = vpop.xlane.xlu0 %1235 }
 0xd2d   :  { %4100 = vrcp.f32 %v1236_v20 }
 0xd30   :  { %v1239_v32 = vpop.xlane.xlu0 %1238 }
 0xd31   :  { %4102 = vrcp.f32 %v1239_v32 }
 0xd37   :  { %v4101_v33 = vpop.eup %4100 }
 0xd38   :  { %v1242_v35 = vmul.f32 %v4101_v33, %v4097_v50  ;;  %v3961_v50 = vld [vmem:[#allocation7 + $0x70] ss:$8 sps:$4 sm:$0xff]  }
 0xd39   :  { %v355_v33 = vld [vmem:[#allocation10 + $0x12] ss:$0 sm:$0xff] }
 0xd3b   :  { %v4103_v34 = vpop.eup %4102 }
 0xd3c   :  { %v1243_v37 = vmul.f32 %v4103_v34, %v4099_v17 }
 0xd3e   :  { %v1244_v38 = vpack.c.bf16 %v1243_v37, %v1242_v35 }
 0xd40   :  { %3729 = vmatmul.mubr.msk.bf16.vlgmr.msra.gmra.mrb[12].mxu0 %vm673_vm0, %v1244_v38 }
 0xd41   :  { %1525 = vmatprep.mubr.bf16.mxu0 %v4325_v1  ;;  %1494 = vmatpush1.bf16.msra.mxu0 %v3940_v57 }
 0xd42   :  { %1495 = vmatprep.subr.bf16.mxu0 %v3945_v59 }
 0xd45   :  { %1496 = vmatpush1.bf16.msra.mxu0 %v3943_v60 }
 0xe13   :  { %v1285_v12 = vpop.f32.mrb[12].mxu0 }
 0xe14   :  { %v3730_v40 = vpop.f32.mrb[13].mxu0 }
 0xe15   :  { %v1288_v41 = vpop.f32.mrb[14].mxu0  ;;  %v3966_v40 = vld [vmem:[#allocation9 + $0x48] sm:$0xff]  }
 0xe16   :  { %v1292_v15 = vpack.c.bf16 %v1288_v41, %v1285_v12  ;;  %v3731_v42 = vpop.f32.mrb[15].mxu0  ;;  %v3965_v12 = vld [vmem:[#allocation9] sm:$0xff]   ;;  %v3967_v41 = vld [vmem:[#allocation9 + $0x8] sm:$0xff]  }
 0xe17   :  { %v3969_v42 = vld [vmem:[#allocation9 + $0x10] sm:$0xff]  }
 0xe18   :  { %3737 = vmatmul.mubr.msk.bf16.vlgmr.msra.gmra.mrb[40].mxu1 %vm625_vm15, %v1292_v15  ;;  %v3968_v15 = vld [vmem:[#allocation9 + $0x50] sm:$0xff]  }
 0xe19   :  { %3551 = vmatpush3.bf16.msra.mxu1 %v3965_v12 }
 0xe1a   :  { %3552 = vmatprep.subr.bf16.mxu1 %v3966_v40 }
 0xe1d   :  { %3553 = vmatpush3.bf16.msra.mxu1 %v3967_v41 }
 0xe1e   :  { %3554 = vmatprep.subr.bf16.mxu1 %v3968_v15 }
 0xe21   :  { %3555 = vmatpush3.bf16.msra.mxu1 %v3969_v42 }
 0xeeb   :  { %v1346_v47 = vpop.f32.mrb[40].mxu1 }
 0xeec   :  { %v1353_v49 = vadd.f32 %v1346_v47, %v1169_v27  ;;  %v3738_v51 = vpop.f32.mrb[41].mxu1  ;;  %v3971_v47 = vld [vmem:[#allocation9 + $0x18] sm:$0xff]  }
 0xeed   :  { %v1349_v46 = vpop.f32.mrb[42].mxu1  ;;  %v3973_v51 = vld [vmem:[#allocation9 + $0x20] sm:$0xff]  }
 0xeee   :  { %v1355_v52 = vadd.f32 %v1353_v49, %v353_v43  ;;  %v1354_v53 = vadd.f32 %v1349_v46, %v1170_v30  ;;  %v3739_v54 = vpop.f32.mrb[43].mxu1  ;;  %v354_v30 = vld [vmem:[#allocation10 + $0xa] ss:$0 sm:$0xff]  ;;  %v3972_v49 = vld [vmem:[#allocation9 + $0x60] sm:$0xff]  }
 0xeef   :  { %v3974_v46 = vld [vmem:[#allocation9 + $0x68] sm:$0xff]   ;;  %v3977_v54 = vld [vmem:[#allocation9 + $0x30] sm:$0xff]  }
 0xef0   :  { %v1356_v55 = vadd.f32 %v1354_v53, %v353_v43  ;;  %v1357_v44 = vadd.f32 %v1355_v52, %v4493_v18  ;;  %v3970_v43 = vld [vmem:[#allocation9 + $0x58] sm:$0xff]   ;;  %v3975_v52 = vld [vmem:[#allocation9 + $0x28] sm:$0xff]   ;;  %v3976_v53 = vld [vmem:[#allocation9 + $0x70] sm:$0xff]  }
 0xef1   :  { %3556 = vmatprep.subr.bf16.mxu1 %v3970_v43 }
 0xef2   :  { %1359 = vadd.xlane.f32.xlu0 %v1357_v44  ;;  %v1358_v56 = vadd.f32 %v1356_v55, %v4495_v19  ;;  %v3948_v19 = vld [vmem:[#allocation7 + $0x24] ss:$8 sps:$4 sm:$0xff]   ;;  %3557 = vmatpush3.bf16.msra.mxu1 %v3971_v47  ;;  %v3978_v55 = vld [vmem:[#allocation9 + $0x78] sm:$0xff]  }
 0xef3   :  { %1497 = vmatprep.subr.bf16.mxu0 %v3948_v19  ;;  %3558 = vmatprep.subr.bf16.mxu1 %v3972_v49 }
 0xef4   :  { %1498 = vmatpush1.bf16.msra.mxu0 %v3946_v5 }
 0xef5   :  { %1499 = vmatprep.subr.bf16.mxu0 %v3951_v6 }
 0xef6   :  { %1361 = vadd.xlane.f32.xlu0 %v1358_v56  ;;  %3559 = vmatpush3.bf16.msra.mxu1 %v3973_v51 }
 0xef7   :  { %3560 = vmatprep.subr.bf16.mxu1 %v3974_v46  ;;  %v358_v46 = vld [vmem:[#allocation10 + $0x13] ss:$0 sm:$0xff] }
 0xef8   :  { %1500 = vmatpush1.bf16.msra.mxu0 %v3949_v7 }
 0xef9   :  { %1501 = vmatprep.subr.bf16.mxu0 %v3954_v8 }
 0xefa   :  { %3561 = vmatpush3.bf16.msra.mxu1 %v3975_v52 }
 0xefb   :  { %3562 = vmatprep.subr.bf16.mxu1 %v3976_v53 }
 0xefc   :  { %1502 = vmatpush1.bf16.msra.mxu0 %v3952_v9 }
 0xefd   :  { %1503 = vmatprep.subr.bf16.mxu0 %v3957_v10 }
 0xefe   :  { %3563 = vmatpush3.bf16.msra.mxu1 %v3977_v54 }
 0xeff   :  { %3564 = vmatprep.subr.bf16.mxu1 %v3978_v55 }
 0xf00   :  { %1504 = vmatpush1.bf16.msra.mxu0 %v3955_v11 }
 0xf01   :  { %1505 = vmatprep.subr.bf16.mxu0 %v3960_v13 }
 0xf04   :  { %1506 = vmatpush1.bf16.msra.mxu0 %v3958_v48 }
 0xf05   :  { %1507 = vmatprep.subr.bf16.mxu0 %v3963_v14 }
 0xf08   :  { %1508 = vmatpush1.bf16.msra.mxu0 %v3961_v50 }
 0xf7f   :  { %v1360_v61 = vpop.xlane.xlu0 %1359 }
 0xf80   :  { %v1363_v62 = vmul.f32 0.0078125, %v1360_v61 }
 0xf82   :  { %v1365_v63 = vsub.f32 %v1357_v44, %v1363_v62  ;;  %v3979_v44 = vld [vmem:[#allocation9 + $0x38] sm:$0xff]  }
 0xf83   :  { %v1362_v0 = vpop.xlane.xlu0 %1361  ;;  %3565 = vmatpush3.bf16.msra.mxu1 %v3979_v44 }
 0xf84   :  { %v1364_v2 = vmul.f32 0.0078125, %v1362_v0  ;;  %v1367_v3 = vmul.f32 %v1365_v63, %v1365_v63  ;;  %3740 = vmatprep.subr.bf16.mxu1 %v4327_v36 }
 0xf86   :  { %v1366_v4 = vsub.f32 %v1358_v56, %v1364_v2  ;;  %1369 = vadd.xlane.f32.xlu0 %v1367_v3  ;;  %v357_v56 = vld [vmem:[#allocation10 + $0x3] ss:$8 sm:$0x3] }
 0xf87   :  { %v1406_v57 = vrot.slane %v357_v56, %v4507_v23  ;;  %v1410_v58 = vrot.slane %v357_v56, %v4511_v26 }
 0xf88   :  { %v1368_v18 = vmul.f32 %v1366_v4, %v1366_v4 }
 0xf8a   :  { %1371 = vadd.xlane.f32.xlu0 %v1368_v18 }
0x1013   :  { %v1370_v16 = vpop.xlane.xlu0 %1369 }
0x1014   :  { %v1373_v17 = vmul.f32 0.0078125, %v1370_v16 }
0x1016   :  { %v1375_v21 = vadd.f32 1e-05, %v1373_v17 }
0x1017   :  { %v1372_v25 = vpop.xlane.xlu0 %1371 }
0x1018   :  { %4104 = vrsqrt.f32 %v1375_v21  ;;  %v1374_v45 = vmul.f32 0.0078125, %v1372_v25 }
0x101a   :  { %v1376_v27 = vadd.f32 1e-05, %v1374_v45 }
0x101c   :  { %4106 = vrsqrt.f32 %v1376_v27 }
0x1022   :  { %v4105_v28 = vpop.eup %4104 }
0x1023   :  { %v1379_v29 = vmul.f32 %v4105_v28, %v1365_v63 }
0x1025   :  { %v1381_v32 = vmul.f32 %v1379_v29, %v354_v30 }
0x1026   :  { %v4107_v31 = vpop.eup %4106 }
0x1027   :  { %v1380_v20 = vmul.f32 %v4107_v31, %v1366_v4  ;;  %v4643_v35 = vadd.f32 %v1381_v32, %v355_v33 }
0x1029   :  { %v1382_v34 = vmul.f32 %v1380_v20, %v354_v30 }
0x102b   :  { %v4645_v37 = vadd.f32 %v1382_v34, %v355_v33 }
0x102d   :  { %v1385_v38 = vpack.c.bf16 %v4645_v37, %v4643_v35 }
0x102f   :  { %1526 = vmatmul.mubr.bf16.vlgmr.msra.gmra.mrb[16].mxu0 %v1385_v38 }
0x1030   :  { %1991 = vmatprep.mubr.bf16.mxu0 %v4325_v1 }
0x1102   :  { %v1527_v59 = vpop.f32.mrb[16].mxu0 }
0x1103   :  { %v1528_v60 = vadd.f32 %v1527_v59, %v1406_v57  ;;  %v1529_v61 = vpop.f32.mrb[17].mxu0 }
0x1104   :  { %v1530_v62 = vadd.f32 %v1529_v61, %v1410_v58  ;;  %v1531_v63 = vpop.f32.mrb[18].mxu0  ;;  %v3982_v61 = vld [vmem:[#allocation4 + $0xc4] ss:$12 sps:$4 sm:$0xff]  }
0x1105   :  { %v1536_v0 = vmul.f32 %v1528_v60, %v1528_v60  ;;  %v1532_v2 = vadd.f32 %v1531_v63, %v1406_v57  ;;  %v1533_v3 = vpop.f32.mrb[19].mxu0  ;;  %v3986_v63 = vld [vmem:[#allocation4 + $0xdc] ss:$12 sps:$4 sm:$0xff]   ;;  %1959 = vmatprep.subr.bf16.mxu0 %v3982_v61 }
0x1106   :  { %v1537_v4 = vmul.f32 %v1530_v62, %v1530_v62  ;;  %v1534_v18 = vadd.f32 %v1533_v3, %v1410_v58 }
0x1107   :  { %v1540_v19 = vmul.f32 %v1536_v0, %v1528_v60  ;;  %v1538_v5 = vmul.f32 %v1532_v2, %v1532_v2  ;;  %v3984_v0 = vld [vmem:[#allocation4 + $0xd8] ss:$12 sps:$4 sm:$0xff]  }
0x1108   :  { %v1541_v6 = vmul.f32 %v1537_v4, %v1530_v62  ;;  %v1539_v7 = vmul.f32 %v1534_v18, %v1534_v18 }
0x1109   :  { %v1544_v8 = vmul.f32 0.044715, %v1540_v19  ;;  %v1542_v9 = vmul.f32 %v1538_v5, %v1532_v2 }
0x110a   :  { %v1545_v10 = vmul.f32 0.044715, %v1541_v6  ;;  %v1543_v11 = vmul.f32 %v1539_v7, %v1534_v18  ;;  %v3987_v6 = vld [vmem:[#allocation4 + $0xe0] ss:$12 sps:$4 sm:$0xff]  }
0x110b   :  { %v1548_v13 = vadd.f32 %v1544_v8, %v1528_v60  ;;  %v1546_v48 = vmul.f32 0.044715, %v1542_v9  ;;  %v3990_v7 = vld [vmem:[#allocation4 + $0xf4] ss:$12 sps:$4 sm:$0xff]   ;;  %v3988_v8 = vld [vmem:[#allocation4 + $0xf0] ss:$12 sps:$4 sm:$0xff]  }
0x110c   :  { %v1549_v14 = vadd.f32 %v1545_v10, %v1530_v62  ;;  %v1547_v50 = vmul.f32 0.044715, %v1543_v11  ;;  %v3991_v9 = vld [vmem:[#allocation4 + $0xf8] ss:$12 sps:$4 sm:$0xff]   ;;  %v3992_v11 = vld [vmem:[#allocation4 + $0x108] ss:$12 sps:$4 sm:$0xff]  }
0x110d   :  { %v1552_v16 = vmul.f32 0.7978846, %v1548_v13  ;;  %v1550_v17 = vadd.f32 %v1546_v48, %v1532_v2  ;;  %v3994_v10 = vld [vmem:[#allocation4 + $0x10c] ss:$12 sps:$4 sm:$0xff]   ;;  %v3995_v13 = vld [vmem:[#allocation4 + $0x110] ss:$12 sps:$4 sm:$0xff]  }
0x110e   :  { %v1553_v21 = vmul.f32 0.7978846, %v1549_v14  ;;  %v1551_v25 = vadd.f32 %v1547_v50, %v1534_v18  ;;  %v3998_v48 = vld [vmem:[#allocation4 + $0x124] ss:$12 sps:$4 sm:$0xff]   ;;  %v3996_v14 = vld [vmem:[#allocation4 + $0x120] ss:$12 sps:$4 sm:$0xff]  }
0x110f   :  { %4108 = vtanh.f32 %v1552_v16  ;;  %v1554_v45 = vmul.f32 0.7978846, %v1550_v17  ;;  %v3999_v50 = vld [vmem:[#allocation4 + $0x128] ss:$12 sps:$4 sm:$0xff]   ;;  %v4000_v17 = vld [vmem:[#allocation4 + $0x138] ss:$12 sps:$4 sm:$0xff]  }
0x1110   :  { %4110 = vtanh.f32 %v1553_v21  ;;  %v1555_v27 = vmul.f32 0.7978846, %v1551_v25  ;;  %v4002_v16 = vld [vmem:[#allocation4 + $0x13c] ss:$12 sps:$4 sm:$0xff]   ;;  %v4003_v21 = vld [vmem:[#allocation4 + $0x140] ss:$12 sps:$4 sm:$0xff]  }
0x1111   :  { %4112 = vtanh.f32 %v1554_v45  ;;  %v4006_v25 = vld [vmem:[#allocation4 + $0x154] ss:$12 sps:$4 sm:$0xff]   ;;  %v4004_v45 = vld [vmem:[#allocation4 + $0x150] ss:$12 sps:$4 sm:$0xff]  }
0x1112   :  { %4114 = vtanh.f32 %v1555_v27  ;;  %v4007_v27 = vld [vmem:[#allocation4 + $0x158] ss:$12 sps:$4 sm:$0xff]  }
0x1119   :  { %v4109_v28 = vpop.eup %4108 }
0x111a   :  { %v4111_v29 = vpop.eup %4110  ;;  %v1560_v30 = vadd.f32 1.0, %v4109_v28  ;;  %v4010_v28 = vld [vmem:[#allocation4 + $0x16c] ss:$12 sps:$4 sm:$0xff]  }
0x111b   :  { %v4113_v31 = vpop.eup %4112  ;;  %v1561_v20 = vadd.f32 1.0, %v4111_v29  ;;  %v4008_v29 = vld [vmem:[#allocation4 + $0x168] ss:$12 sps:$4 sm:$0xff]  }
0x111c   :  { %v4115_v32 = vpop.eup %4114  ;;  %v1564_v33 = vmul.f32 0.5, %v1560_v30  ;;  %v1562_v34 = vadd.f32 1.0, %v4113_v31  ;;  %v4011_v30 = vld [vmem:[#allocation4 + $0x170] ss:$12 sps:$4 sm:$0xff]  }
0x111d   :  { %v1563_v38 = vadd.f32 1.0, %v4115_v32  ;;  %v1565_v39 = vmul.f32 0.5, %v1561_v20 }
0x111e   :  { %v1566_v12 = vmul.f32 0.5, %v1562_v34  ;;  %v1568_v41 = vmul.f32 %v1564_v33, %v1528_v60  ;;  %v3980_v60 = vld [vmem:[#allocation4 + $0xc0] ss:$12 sps:$4 sm:$0xff]  }
0x111f   :  { %v1567_v40 = vmul.f32 0.5, %v1563_v38  ;;  %v1569_v42 = vmul.f32 %v1565_v39, %v1530_v62  ;;  %v3983_v62 = vld [vmem:[#allocation4 + $0xc8] ss:$12 sps:$4 sm:$0xff]   ;;  %1960 = vmatpush1.bf16.msra.mxu0 %v3980_v60 }
0x1120   :  { %v1570_v15 = vmul.f32 %v1566_v12, %v1532_v2  ;;  %1961 = vmatprep.subr.bf16.mxu0 %v3986_v63 }
0x1121   :  { %v1571_v43 = vmul.f32 %v1567_v40, %v1534_v18  ;;  %v359_v40 = vld [vmem:[#allocation10 + $0x4] ss:$0 sm:$0xff] }
0x1122   :  { %v1572_v47 = vpack.c.bf16 %v1570_v15, %v1568_v41 }
0x1123   :  { %v1573_v49 = vpack.c.bf16 %v1571_v43, %v1569_v42  ;;  %1962 = vmatpush1.bf16.msra.mxu0 %v3984_v0  ;;  %v360_v43 = vld [vmem:[#allocation10 + $0xc] ss:$0 sm:$0xff] }
0x1124   :  { %1963 = vmatprep.subr.bf16.mxu0 %v3990_v7 }
0x1125   :  { %1734 = vmatprep.mubr.bf16.mxu1 %v1573_v49 }
0x1126   :  { %1735 = vmatmul.mubr.bf16.vlgmr.msra.gmra.mrb[44].mxu1 %v1572_v47 }
0x1127   :  { %3756 = vmatprep.mubr.msk.bf16.mxu1 %vm4328_vm14, %v4327_v36  ;;  %3741 = vmatpush3.bf16.msra.mxu1 %v3983_v62 }
0x1128   :  { %3742 = vmatprep.subr.bf16.mxu1 %v4327_v36  ;;  %1964 = vmatpush1.bf16.msra.mxu0 %v3988_v8  ;;  %v4712_v8 = vld [vmem:[%s4856_s1] sm:$0xff] }
0x1129   :  { %1965 = vmatprep.subr.bf16.mxu0 %v3994_v10 }
0x112b   :  { %3743 = vmatpush3.bf16.msra.mxu1 %v3987_v6 }
0x112c   :  { %3744 = vmatprep.subr.bf16.mxu1 %v4327_v36  ;;  %1966 = vmatpush1.bf16.msra.mxu0 %v3992_v11 }
0x112d   :  { %1967 = vmatprep.subr.bf16.mxu0 %v3998_v48 }
0x112f   :  { %3745 = vmatpush3.bf16.msra.mxu1 %v3991_v9 }
0x1130   :  { %3746 = vmatprep.subr.bf16.mxu1 %v4327_v36  ;;  %1968 = vmatpush1.bf16.msra.mxu0 %v3996_v14 }
0x1131   :  { %1969 = vmatprep.subr.bf16.mxu0 %v4002_v16 }
0x1133   :  { %3747 = vmatpush3.bf16.msra.mxu1 %v3995_v13  ;;  %v4718_v13 = vld [vmem:[%s4856_s1 + $0x8] sm:$0xff] }
0x1134   :  { %3748 = vmatprep.subr.bf16.mxu1 %v4327_v36  ;;  %1970 = vmatpush1.bf16.msra.mxu0 %v4000_v17 }
0x1135   :  { %1971 = vmatprep.subr.bf16.mxu0 %v4006_v25 }
0x1137   :  { %3749 = vmatpush3.bf16.msra.mxu1 %v3999_v50 }
0x1138   :  { %3750 = vmatprep.subr.bf16.mxu1 %v4327_v36  ;;  %1972 = vmatpush1.bf16.msra.mxu0 %v4004_v45 }
0x1139   :  { %1973 = vmatprep.subr.bf16.mxu0 %v4010_v28 }
0x113b   :  { %3751 = vmatpush3.bf16.msra.mxu1 %v4003_v21 }
0x113c   :  { %3752 = vmatprep.subr.bf16.mxu1 %v4327_v36  ;;  %1974 = vmatpush1.bf16.msra.mxu0 %v4008_v29 }
0x113d   :  { %3760 = vmatprep.subr.bf16.mxu0 %v4327_v36 }
0x113f   :  { %3753 = vmatpush3.bf16.msra.mxu1 %v4007_v27 }
0x1140   :  { %3754 = vmatprep.subr.bf16.mxu1 %v4327_v36 }
0x1143   :  { %3755 = vmatpush3.bf16.msra.mxu1 %v4011_v30 }
0x1144   :  { %3766 = vmatprep.subr.bf16.mxu1 %v4327_v36 }
0x11f9   :  { %v3566_v51 = vpop.f32.mrb[44].mxu1 }
0x11fa   :  { %v3567_v52 = vpop.f32.mrb[45].mxu1 }
0x11fb   :  { %v3568_v53 = vadd.f32 %v3567_v52, %v3566_v51  ;;  %v3569_v54 = vpop.f32.mrb[46].mxu1  ;;  %v1772_v52 = vld [vmem:[#allocation10 + $0x5] ss:$8 sm:$0x7] }
0x11fc   :  { %v3570_v55 = vpop.f32.mrb[47].mxu1 }
0x11fd   :  { %v1737_v44 = vadd.f32 %v3568_v53, %v358_v46  ;;  %v3571_v56 = vadd.f32 %v3570_v55, %v3569_v54  ;;  %v1819_v53 = vrot.slane %v1772_v52, %v4507_v23  ;;  %v1827_v54 = vrot.slane %v1772_v52, %v405_v24 }
0x11ff   :  { %v1740_v57 = vadd.f32 %v3571_v56, %v358_v46  ;;  %v1743_v58 = vadd.f32 %v1737_v44, %v4643_v35  ;;  %v1823_v56 = vrot.slane %v1772_v52, %v4511_v26 }
0x1201   :  { %1745 = vadd.xlane.f32.xlu1 %v1743_v58  ;;  %v1744_v59 = vadd.f32 %v1740_v57, %v4645_v37 }
0x1203   :  { %1747 = vadd.xlane.f32.xlu0 %v1744_v59 }
0x128e   :  { %v1746_v2 = vpop.xlane.xlu1 %1745 }
0x128f   :  { %v1749_v3 = vmul.f32 0.0078125, %v1746_v2 }
0x1290   :  { %v1748_v4 = vpop.xlane.xlu0 %1747 }
0x1291   :  { %v1751_v35 = vsub.f32 %v1743_v58, %v1749_v3  ;;  %v1750_v18 = vmul.f32 0.0078125, %v1748_v4 }
0x1293   :  { %v4658_v19 = vsub.f32 %v1744_v59, %v1750_v18  ;;  %v1753_v37 = vmul.f32 %v1751_v35, %v1751_v35 }
0x1295   :  { %1755 = vadd.xlane.f32.xlu0 %v1753_v37  ;;  %v1754_v5 = vmul.f32 %v4658_v19, %v4658_v19 }
0x1299   :  { %1757 = vadd.xlane.f32.xlu0 %v1754_v5 }
0x1322   :  { %v1756_v31 = vpop.xlane.xlu0 %1755 }
0x1323   :  { %v1759_v20 = vmul.f32 0.0078125, %v1756_v31 }
0x1325   :  { %v1761_v32 = vadd.f32 1e-05, %v1759_v20 }
0x1326   :  { %v1758_v33 = vpop.xlane.xlu0 %1757 }
0x1327   :  { %4116 = vrsqrt.f32 %v1761_v32  ;;  %v1760_v34 = vmul.f32 0.0078125, %v1758_v33 }
0x1329   :  { %v1762_v38 = vadd.f32 1e-05, %v1760_v34 }
0x132b   :  { %4118 = vrsqrt.f32 %v1762_v38 }
0x1331   :  { %v4117_v39 = vpop.eup %4116 }
0x1332   :  { %v1765_v12 = vmul.f32 %v4117_v39, %v1751_v35 }
0x1334   :  { %v1767_v42 = vmul.f32 %v1765_v12, %v359_v40 }
0x1335   :  { %v4119_v41 = vpop.eup %4118 }
0x1336   :  { %v1766_v15 = vmul.f32 %v4119_v41, %v4658_v19  ;;  %v4671_v49 = vadd.f32 %v1767_v42, %v360_v43 }
0x1338   :  { %v1768_v47 = vmul.f32 %v1766_v15, %v359_v40 }
0x133a   :  { %v4673_v51 = vadd.f32 %v1768_v47, %v360_v43 }
0x133c   :  { %v1781_v46 = vpack.c.bf16 %v4673_v51, %v4671_v49 }
0x133e   :  { %1992 = vmatmul.mubr.bf16.vlgmr.msra.gmra.mrb[20].mxu0 %v1781_v46  ;;  %3757 = vmatmul.mubr.bf16.vlgmr.msra.gmra.mrb[48].mxu1 %v1781_v46 }
0x133f   :  { %3762 = vmatprep.mubr.msk.bf16.mxu0 %vm4328_vm14, %v4327_v36  ;;  %3768 = vmatprep.mubr.msk.bf16.mxu1 %vm4328_vm14, %v4327_v36 }
0x1411   :  { %v1993_v55 = vpop.f32.mrb[20].mxu0  ;;  %v2036_v44 = vpop.f32.mrb[48].mxu1 }
0x1412   :  { %v1995_v57 = vpop.f32.mrb[21].mxu0  ;;  %v3758_v58 = vpop.f32.mrb[49].mxu1  ;;  %v1994_v61 = vadd.f32 %v1993_v55, %v1819_v53  ;;  %v2037_v62 = vadd.f32 %v2036_v44, %v1827_v54 }
0x1413   :  { %v1997_v59 = vpop.f32.mrb[22].mxu0  ;;  %v2039_v60 = vpop.f32.mrb[50].mxu1  ;;  %v1996_v4 = vadd.f32 %v1995_v57, %v1823_v56 }
0x1414   :  { %v1998_v63 = vadd.f32 %v1997_v59, %v1819_v53  ;;  %v2040_v0 = vadd.f32 %v2039_v60, %v1827_v54  ;;  %v1999_v2 = vpop.f32.mrb[23].mxu0  ;;  %v3759_v3 = vpop.f32.mrb[51].mxu1 }
0x1415   :  { %v2000_v35 = vadd.f32 %v1999_v2, %v1823_v56 }
0x1416   :  { %v4685_v18 = vpack.c.bf16 %v1998_v63, %v1994_v61  ;;  %v4687_v22 = vpack.c.bf16 %v2040_v0, %v2037_v62  ;;  %v4014_v63 = vld [vmem:[#allocation6 + $0x50] sm:$0xff]   ;;  %v4015_v0 = vld [vmem:[#allocation6 + $0x58] sm:$0xff]  }
0x1417   :  { %v4689_v24 = vpack.c.bf16 %v2000_v35, %v1996_v4 }
0x1418   :  { %3767 = vmatpush3.bf16.msra.mxu1 %v4687_v22 }
0x1419   :  { %2170 = vrot.lane.b32.xlu0 %v4689_v24, %s4329_s25  ;;  %v2050_v19 = vsel %vm625_vm15, %v4689_v24, 0  ;;  %3778 = vmatprep.subr.bf16.mxu1 %v4327_v36 }
0x141a   :  { %3761 = vmatpush3.bf16.xpose.msra.mxu0 %v2050_v19 }
0x141b   :  { %3772 = vmatprep.subr.bf16.mxu0 %v4327_v36 }
0x141d   :  { %2167 = vrot.lane.b32.xlu0 %v4685_v18, %s4329_s25 }
0x1421   :  { %3763 = vmatmul.mubr.msk.bf16.vlgmr.msra.gmra.mrb[24].mxu0 %vm625_vm15, %v4685_v18 }
0x1422   :  { %3774 = vmatprep.mubr.msk.bf16.mxu0 %vm4328_vm14, %v4327_v36 }
0x148b   :  { %v2171_v37 = vpop.permute.xlu0 %2170 }
0x148c   :  { %v2176_v5 = vsel %vm625_vm15, %v2171_v37, 0 }
0x148d   :  { %3773 = vmatpush3.bf16.xpose.msra.mxu0 %v2176_v5 }
0x148e   :  { %3784 = vmatprep.subr.bf16.mxu0 %v4327_v36 }
0x148f   :  { %v2168_v6 = vpop.permute.xlu0 %2167 }
0x1494   :  { %3775 = vmatmul.mubr.msk.bf16.vlgmr.msra.gmra.mrb[28].mxu0 %vm625_vm15, %v2168_v6  ;;  %v4012_v6 = vld [vmem:[#allocation6 + $0x40] sm:$0xff]  }
0x1495   :  { %3788 = vmatprep.mubr.msk.bf16.mxu0 %vm4328_vm14, %v4327_v36  ;;  %3785 = vmatpush3.bf16.msra.mxu0 %v4014_v63  ;;  %v4016_v63 = vld [vmem:[#allocation6 + $0x60] sm:$0xff]  }
0x1496   :  { %3786 = vmatprep.subr.bf16.mxu0 %v4327_v36 }
0x1499   :  { %3787 = vmatpush3.bf16.msra.mxu0 %v4015_v0 }
0x149a   :  { %3800 = vmatprep.subr.bf16.mxu0 %v4327_v36 }
0x14f4   :  { %v2086_v7 = vpop.f32.mrb[24].mxu0 }
0x14f5   :  { %v2087_v9 = vadd.f32 %v4712_v8, %v2086_v7  ;;  %v3764_v10 = vpop.f32.mrb[25].mxu0 }
0x14f6   :  { %v2089_v11 = vpop.f32.mrb[26].mxu0 }
0x14f7   :  { %v2090_v48 = vadd.f32 %v4718_v13, %v2089_v11  ;;  %v3765_v14 = vpop.f32.mrb[27].mxu0  ;;  %v2093_v50 = vsel %vm673_vm0, %v2087_v9, -inf }
0x14f8   :  { %2094 = vmax.xlane.f32.xlu1 %v2093_v50 }
0x14f9   :  { %v2096_v16 = vsel %vm673_vm0, %v2090_v48, -inf }
0x14fa   :  { %2097 = vmax.xlane.f32.xlu0 %v2096_v16 }
0x1510   :  { %2409 = vrot.lane.b32.xlu0 %v4689_v24, %s4317_s5 }
0x1567   :  { %v2212_v17 = vpop.f32.mrb[28].mxu0 }
0x1568   :  { %v2213_v21 = vadd.f32 %v4712_v8, %v2212_v17  ;;  %v3776_v25 = vpop.f32.mrb[29].mxu0 }
0x1569   :  { %v2215_v45 = vpop.f32.mrb[30].mxu0 }
0x156a   :  { %v2216_v27 = vadd.f32 %v4718_v13, %v2215_v45  ;;  %v3777_v28 = vpop.f32.mrb[31].mxu0  ;;  %v2219_v29 = vsel %vm673_vm0, %v2213_v21, -inf }
0x156b   :  { %2220 = vmax.xlane.f32.xlu1 %v2219_v29 }
0x156c   :  { %v2222_v30 = vsel %vm673_vm0, %v2216_v27, -inf }
0x156f   :  { %2223 = vmax.xlane.f32.xlu1 %v2222_v30 }
0x1585   :  { %v2095_v31 = vpop.xlane.xlu1 %2094 }
0x1586   :  { %v2099_v20 = vsub.f32 %v2087_v9, %v2095_v31  ;;  %v4013_v9 = vld [vmem:[#allocation6 + $0x48] sm:$0xff]  }
0x1587   :  { %v2098_v32 = vpop.xlane.xlu0 %2097 }
0x1588   :  { %v2101_v33 = vmul.f32 1.442695, %v2099_v20  ;;  %v2100_v34 = vsub.f32 %v2090_v48, %v2098_v32 }
0x158a   :  { %4120 = vpow2.f32 %v2101_v33  ;;  %v2103_v38 = vmul.f32 1.442695, %v2100_v34 }
0x158c   :  { %4122 = vpow2.f32 %v2103_v38 }
0x1594   :  { %v4121_v39 = vpop.eup %4120 }
0x1595   :  { %v2105_v12 = vsel %vm673_vm0, %v4121_v39, 0.0 }
0x1596   :  { %v4123_v40 = vpop.eup %4122  ;;  %2106 = vadd.xlane.f32.xlu1 %v2105_v12 }
0x1597   :  { %v2108_v41 = vsel %vm673_vm0, %v4123_v40, 0.0 }
0x159a   :  { %2109 = vadd.xlane.f32.xlu1 %v2108_v41 }
0x15f8   :  { %v2221_v15 = vpop.xlane.xlu1 %2220 }
0x15f9   :  { %v2225_v42 = vsub.f32 %v2213_v21, %v2221_v15  ;;  %v2410_v21 = vpop.permute.xlu0 %2409 }
0x15fa   :  { %v2415_v28 = vsel %vm625_vm15, %v2410_v21, 0 }
0x15fb   :  { %v2227_v43 = vmul.f32 1.442695, %v2225_v42 }
0x15fc   :  { %v2224_v47 = vpop.xlane.xlu1 %2223 }
0x15fd   :  { %4124 = vpow2.f32 %v2227_v43  ;;  %v2226_v46 = vsub.f32 %v2216_v27, %v2224_v47 }
0x15ff   :  { %v2229_v52 = vmul.f32 1.442695, %v2226_v46 }
0x1601   :  { %4126 = vpow2.f32 %v2229_v52 }
0x1607   :  { %v4125_v53 = vpop.eup %4124 }
0x1608   :  { %v2231_v54 = vsel %vm673_vm0, %v4125_v53, 0.0 }
0x1609   :  { %2232 = vadd.xlane.f32.xlu1 %v2231_v54 }
0x160b   :  { %v4127_v55 = vpop.eup %4126 }
0x160c   :  { %v2234_v44 = vsel %vm673_vm0, %v4127_v55, 0.0 }
0x160d   :  { %2235 = vadd.xlane.f32.xlu1 %v2234_v44 }
0x161e   :  { %2243 = vrot.lane.b32.xlu1 %v4687_v22, %s4329_s25 }
0x1622   :  { %2407 = vrot.lane.b32.xlu1 %v4685_v18, %s4317_s5 }
0x1623   :  { %v2107_v56 = vpop.xlane.xlu1 %2106 }
0x1624   :  { %4128 = vrcp.f32 %v2107_v56 }
0x1627   :  { %v2110_v57 = vpop.xlane.xlu1 %2109 }
0x1628   :  { %4130 = vrcp.f32 %v2110_v57 }
0x162e   :  { %v4129_v58 = vpop.eup %4128 }
0x162f   :  { %v2113_v60 = vmul.f32 %v4129_v58, %v4121_v39 }
0x1632   :  { %v4131_v59 = vpop.eup %4130 }
0x1633   :  { %v2114_v61 = vmul.f32 %v4131_v59, %v4123_v40 }
0x1635   :  { %v2115_v62 = vpack.c.bf16 %v2114_v61, %v2113_v60 }
0x1637   :  { %3769 = vmatmul.mubr.msk.bf16.vlgmr.msra.gmra.mrb[52].mxu1 %vm673_vm0, %v2115_v62 }
0x1638   :  { %3780 = vmatprep.mubr.msk.bf16.mxu1 %vm4328_vm14, %v4327_v36 }
0x1696   :  { %v2233_v2 = vpop.xlane.xlu1 %2232 }
0x1697   :  { %4132 = vrcp.f32 %v2233_v2 }
0x169a   :  { %v2236_v3 = vpop.xlane.xlu1 %2235 }
0x169b   :  { %4134 = vrcp.f32 %v2236_v3 }
0x169e   :  { %v2244_v4 = vpop.permute.xlu1 %2243 }
0x169f   :  { %3779 = vmatpush3.bf16.msra.mxu1 %v2244_v4 }
0x16a0   :  { %3792 = vmatprep.subr.bf16.mxu1 %v4327_v36 }
0x16a1   :  { %v4133_v35 = vpop.eup %4132 }
0x16a2   :  { %v2239_v37 = vmul.f32 %v4133_v35, %v4125_v53  ;;  %v2408_v29 = vpop.permute.xlu1 %2407 }
0x16a5   :  { %v4135_v19 = vpop.eup %4134 }
0x16a6   :  { %v2240_v5 = vmul.f32 %v4135_v19, %v4127_v55 }
0x16a8   :  { %v2241_v7 = vpack.c.bf16 %v2240_v5, %v2239_v37 }
0x16aa   :  { %3781 = vmatmul.mubr.msk.bf16.vlgmr.msra.gmra.mrb[56].mxu1 %vm673_vm0, %v2241_v7  ;;  %v4017_v7 = vld [vmem:[#allocation6 + $0x68] sm:$0xff]  }
0x16ab   :  { %3793 = vmatpush3.bf16.msra.mxu1 %v4012_v6  ;;  %3796 = vmatprep.mubr.msk.bf16.mxu1 %vm4328_vm14, %v4327_v36 }
0x16ac   :  { %3794 = vmatprep.subr.bf16.mxu1 %v4327_v36 }
0x16af   :  { %3795 = vmatpush3.bf16.msra.mxu1 %v4013_v9 }
0x16b0   :  { %3806 = vmatprep.subr.bf16.mxu1 %v4327_v36 }
0x170a   :  { %v2153_v10 = vpop.f32.mrb[52].mxu1 }
0x170b   :  { %v3770_v11 = vpop.f32.mrb[53].mxu1 }
0x170c   :  { %v2156_v48 = vpop.f32.mrb[54].mxu1 }
0x170d   :  { %v2160_v14 = vpack.c.bf16 %v2156_v48, %v2153_v10  ;;  %v3771_v50 = vpop.f32.mrb[55].mxu1 }
0x170f   :  { %3797 = vmatmul.mubr.msk.bf16.vlgmr.msra.gmra.mrb[60].mxu1 %vm625_vm15, %v2160_v14 }
0x1710   :  { %3808 = vmatprep.mubr.msk.bf16.mxu1 %vm4328_vm14, %v4327_v36 }
0x177d   :  { %v2283_v16 = vpop.f32.mrb[56].mxu1 }
0x177e   :  { %v3782_v17 = vpop.f32.mrb[57].mxu1 }
0x177f   :  { %v2286_v25 = vpop.f32.mrb[58].mxu1 }
0x1780   :  { %v2290_v45 = vpack.c.bf16 %v2286_v25, %v2283_v16  ;;  %v3783_v27 = vpop.f32.mrb[59].mxu1 }
0x1782   :  { %3789 = vmatmul.mubr.msk.bf16.vlgmr.msra.gmra.mrb[32].mxu0 %vm625_vm15, %v2290_v45 }
0x1783   :  { %3801 = vmatpush3.bf16.xpose.msra.mxu0 %v2415_v28  ;;  %3802 = vmatprep.mubr.msk.bf16.mxu0 %vm4328_vm14, %v4327_v36 }
0x1784   :  { %3812 = vmatprep.subr.bf16.mxu0 %v4327_v36 }
0x178a   :  { %3803 = vmatmul.mubr.msk.bf16.vlgmr.msra.gmra.mrb[36].mxu0 %vm625_vm15, %v2408_v29 }
0x178b   :  { %3816 = vmatprep.mubr.msk.bf16.mxu0 %vm4328_vm14, %v4327_v36  ;;  %3813 = vmatpush3.bf16.msra.mxu0 %v4016_v63 }
0x178c   :  { %3814 = vmatprep.subr.bf16.mxu0 %v4327_v36 }
0x178f   :  { %3815 = vmatpush3.bf16.msra.mxu0 %v4017_v7  ;;  %v4023_v7 = vld [vmem:[#allocation7 + $0x90] ss:$8 sps:$4 sm:$0xff]  }
0x1790   :  { %3826 = vmatprep.subr.bf16.mxu0 %v4327_v36 }
0x17e2   :  { %v2400_v30 = vpop.f32.mrb[60].mxu1 }
0x17e3   :  { %v3798_v31 = vpop.f32.mrb[61].mxu1 }
0x17e4   :  { %v2403_v20 = vpop.f32.mrb[62].mxu1 }
0x17e5   :  { %v3799_v32 = vpop.f32.mrb[63].mxu1 }
0x1855   :  { %v2344_v33 = vpop.f32.mrb[32].mxu0 }
0x1856   :  { %v4759_v34 = vadd.f32 %v2400_v30, %v2344_v33  ;;  %v3790_v38 = vpop.f32.mrb[33].mxu0 }
0x1857   :  { %v2347_v39 = vpop.f32.mrb[34].mxu0 }
0x1858   :  { %v4761_v12 = vadd.f32 %v2403_v20, %v2347_v39  ;;  %v3791_v40 = vpop.f32.mrb[35].mxu0 }
0x1859   :  { %v4018_v40 = vld [vmem:[#allocation6 + $0x70] sm:$0xff]  }
0x185d   :  { %v2451_v41 = vpop.f32.mrb[36].mxu0 }
0x185e   :  { %v2452_v15 = vadd.f32 %v4712_v8, %v2451_v41  ;;  %v3804_v42 = vpop.f32.mrb[37].mxu0 }
0x185f   :  { %v2454_v43 = vpop.f32.mrb[38].mxu0 }
0x1860   :  { %v2455_v47 = vadd.f32 %v4718_v13, %v2454_v43  ;;  %v3805_v46 = vpop.f32.mrb[39].mxu0  ;;  %v2458_v52 = vsel %vm673_vm0, %v2452_v15, -inf }
0x1861   :  { %2459 = vmax.xlane.f32.xlu1 %v2458_v52 }
0x1862   :  { %v2461_v53 = vsel %vm673_vm0, %v2455_v47, -inf }
0x1863   :  { %2462 = vmax.xlane.f32.xlu0 %v2461_v53 }
0x18ee   :  { %v2460_v54 = vpop.xlane.xlu1 %2459 }
0x18ef   :  { %v2464_v55 = vsub.f32 %v2452_v15, %v2460_v54 }
0x18f0   :  { %v2463_v44 = vpop.xlane.xlu0 %2462 }
0x18f1   :  { %v2466_v56 = vmul.f32 1.442695, %v2464_v55  ;;  %v2465_v57 = vsub.f32 %v2455_v47, %v2463_v44 }
0x18f3   :  { %4136 = vpow2.f32 %v2466_v56  ;;  %v2468_v58 = vmul.f32 1.442695, %v2465_v57 }
0x18f5   :  { %4138 = vpow2.f32 %v2468_v58 }
0x18fd   :  { %v4137_v59 = vpop.eup %4136 }
0x18fe   :  { %v2470_v60 = vsel %vm673_vm0, %v4137_v59, 0.0 }
0x18ff   :  { %v4139_v61 = vpop.eup %4138  ;;  %2471 = vadd.xlane.f32.xlu1 %v2470_v60 }
0x1900   :  { %v2473_v62 = vsel %vm673_vm0, %v4139_v61, 0.0 }
0x1901   :  { %2474 = vadd.xlane.f32.xlu0 %v2473_v62  ;;  %v1773_v62 = vld [vmem:[#allocation10 + $0x6] ss:$0 sm:$0xff] }
0x1910   :  { %2481 = vrot.lane.b32.xlu1 %v4687_v22, %s4317_s5 }
0x1914   :  { %2591 = vrot.lane.b32.xlu1 %v4685_v18, %s4330_s26 }
0x1917   :  { %2593 = vrot.lane.b32.xlu0 %v4689_v24, %s4330_s26 }
0x198c   :  { %v2472_v0 = vpop.xlane.xlu1 %2471 }
0x198d   :  { %4140 = vrcp.f32 %v2472_v0 }
0x198e   :  { %v2475_v2 = vpop.xlane.xlu0 %2474 }
0x198f   :  { %4142 = vrcp.f32 %v2475_v2 }
0x1990   :  { %v2482_v3 = vpop.permute.xlu1 %2481 }
0x1991   :  { %3807 = vmatpush3.bf16.msra.mxu1 %v2482_v3 }
0x1992   :  { %3820 = vmatprep.subr.bf16.mxu1 %v4327_v36  ;;  %v2594_v18 = vpop.permute.xlu0 %2593 }
0x1993   :  { %v2599_v24 = vsel %vm625_vm15, %v2594_v18, 0 }
0x1994   :  { %v2592_v6 = vpop.permute.xlu1 %2591 }
0x1997   :  { %v4141_v4 = vpop.eup %4140 }
0x1998   :  { %v2478_v19 = vmul.f32 %v4141_v4, %v4137_v59 }
0x1999   :  { %v4143_v35 = vpop.eup %4142 }
0x199a   :  { %v2479_v37 = vmul.f32 %v4143_v35, %v4139_v61 }
0x199c   :  { %v2480_v5 = vpack.c.bf16 %v2479_v37, %v2478_v19 }
0x199e   :  { %3809 = vmatmul.mubr.msk.bf16.vlgmr.msra.gmra.mrb[64].mxu1 %vm673_vm0, %v2480_v5  ;;  %v4020_v5 = vld [vmem:[#allocation7 + $0x80] ss:$8 sps:$4 sm:$0xff]  }
0x199f   :  { %3821 = vmatpush3.bf16.xpose.msra.mxu1 %v2599_v24  ;;  %3822 = vmatprep.mubr.msk.bf16.mxu1 %vm4328_vm14, %v4327_v36  ;;  %v4022_v24 = vld [vmem:[#allocation7 + $0x84] ss:$8 sps:$4 sm:$0xff]  }
0x19a0   :  { %3832 = vmatprep.subr.bf16.mxu1 %v4327_v36 }
0x19a6   :  { %3823 = vmatmul.mubr.msk.bf16.vlgmr.msra.gmra.mrb[68].mxu1 %vm625_vm15, %v2592_v6  ;;  %v4025_v6 = vld [vmem:[#allocation7 + $0x94] ss:$8 sps:$4 sm:$0xff]  }
0x19a7   :  { %3836 = vmatprep.mubr.msk.bf16.mxu1 %vm4328_vm14, %v4327_v36  ;;  %3833 = vmatpush3.bf16.msra.mxu1 %v4018_v40 }
0x19a8   :  { %3834 = vmatprep.subr.bf16.mxu1 %v4327_v36 }
0x1a71   :  { %v2521_v9 = vpop.f32.mrb[64].mxu1 }
0x1a72   :  { %v3810_v10 = vpop.f32.mrb[65].mxu1 }
0x1a73   :  { %v2524_v11 = vpop.f32.mrb[66].mxu1 }
0x1a74   :  { %v2528_v48 = vpack.c.bf16 %v2524_v11, %v2521_v9  ;;  %v3811_v14 = vpop.f32.mrb[67].mxu1 }
0x1a76   :  { %3817 = vmatmul.mubr.msk.bf16.vlgmr.msra.gmra.mrb[40].mxu0 %vm625_vm15, %v2528_v48 }
0x1a77   :  { %3828 = vmatprep.mubr.msk.bf16.mxu0 %vm4328_vm14, %v4327_v36 }
0x1a79   :  { %v2635_v50 = vpop.f32.mrb[68].mxu1 }
0x1a7a   :  { %v2636_v16 = vadd.f32 %v4712_v8, %v2635_v50  ;;  %v3824_v17 = vpop.f32.mrb[69].mxu1 }
0x1a7b   :  { %v2638_v21 = vpop.f32.mrb[70].mxu1  ;;  %v4026_v17 = vld [vmem:[#allocation7 + $0xa0] ss:$8 sps:$4 sm:$0xff]  }
0x1a7c   :  { %v2639_v25 = vadd.f32 %v4718_v13, %v2638_v21  ;;  %v3825_v45 = vpop.f32.mrb[71].mxu1  ;;  %v2642_v27 = vsel %vm673_vm0, %v2636_v16, -inf  ;;  %v4031_v21 = vld [vmem:[#allocation7 + $0xb4] ss:$8 sps:$4 sm:$0xff]  }
0x1a7d   :  { %2643 = vmax.xlane.f32.xlu1 %v2642_v27  ;;  %v4034_v45 = vld [vmem:[#allocation7 + $0xc4] ss:$8 sps:$4 sm:$0xff]   ;;  %v4032_v27 = vld [vmem:[#allocation7 + $0xc0] ss:$8 sps:$4 sm:$0xff]  }
0x1a7e   :  { %v2645_v28 = vsel %vm673_vm0, %v2639_v25, -inf }
0x1a7f   :  { %2646 = vmax.xlane.f32.xlu0 %v2645_v28  ;;  %v4037_v28 = vld [vmem:[#allocation7 + $0xd4] ss:$8 sps:$4 sm:$0xff]  }
0x1b0a   :  { %v2644_v29 = vpop.xlane.xlu1 %2643 }
0x1b0b   :  { %v2648_v30 = vsub.f32 %v2636_v16, %v2644_v29  ;;  %v4035_v29 = vld [vmem:[#allocation7 + $0xd0] ss:$8 sps:$4 sm:$0xff]  }
0x1b0c   :  { %v2647_v31 = vpop.xlane.xlu0 %2646 }
0x1b0d   :  { %v2650_v20 = vmul.f32 1.442695, %v2648_v30  ;;  %v2649_v32 = vsub.f32 %v2639_v25, %v2647_v31  ;;  %v4029_v25 = vld [vmem:[#allocation7 + $0xb0] ss:$8 sps:$4 sm:$0xff]   ;;  %v4040_v30 = vld [vmem:[#allocation7 + $0xe4] ss:$8 sps:$4 sm:$0xff]  }
0x1b0e   :  { %v4038_v31 = vld [vmem:[#allocation7 + $0xe0] ss:$8 sps:$4 sm:$0xff]  }
0x1b0f   :  { %4144 = vpow2.f32 %v2650_v20  ;;  %v2652_v33 = vmul.f32 1.442695, %v2649_v32  ;;  %v4043_v20 = vld [vmem:[#allocation7 + $0xf4] ss:$8 sps:$4 sm:$0xff]   ;;  %v4041_v32 = vld [vmem:[#allocation7 + $0xf0] ss:$8 sps:$4 sm:$0xff]  }
0x1b11   :  { %4146 = vpow2.f32 %v2652_v33 }
0x1b19   :  { %v4145_v8 = vpop.eup %4144 }
0x1b1a   :  { %v2654_v38 = vsel %vm673_vm0, %v4145_v8, 0.0 }
0x1b1b   :  { %v4147_v39 = vpop.eup %4146  ;;  %2655 = vadd.xlane.f32.xlu0 %v2654_v38 }
0x1b1c   :  { %v2657_v13 = vsel %vm673_vm0, %v4147_v39, 0.0 }
0x1b1d   :  { %2658 = vadd.xlane.f32.xlu1 %v2657_v13 }
0x1b31   :  { %2665 = vrot.lane.b32.xlu0 %v4687_v22, %s4330_s26 }
0x1b49   :  { %v2582_v41 = vpop.f32.mrb[40].mxu0 }
0x1b4a   :  { %v2589_v15 = vadd.f32 %v2582_v41, %v4759_v34  ;;  %v3818_v42 = vpop.f32.mrb[41].mxu0  ;;  %v4019_v34 = vld [vmem:[#allocation6 + $0x78] sm:$0xff]  }
0x1b4b   :  { %v2585_v43 = vpop.f32.mrb[42].mxu0  ;;  %3835 = vmatpush3.bf16.msra.mxu1 %v4019_v34  ;;  %v1774_v42 = vld [vmem:[#allocation10 + $0xe] ss:$0 sm:$0xff] }
0x1b4c   :  { %v2590_v47 = vadd.f32 %v2585_v43, %v4761_v12  ;;  %v3819_v46 = vpop.f32.mrb[43].mxu0  ;;  %v4047_v34 = vld [vmem:[#allocation9 + $0x88] sm:$0xff]  }
0x1ba8   :  { %v2656_v52 = vpop.xlane.xlu0 %2655 }
0x1ba9   :  { %4148 = vrcp.f32 %v2656_v52  ;;  %v1775_v52 = vld [vmem:[#allocation10 + $0x16] ss:$0 sm:$0xff] }
0x1baa   :  { %v2659_v53 = vpop.xlane.xlu1 %2658 }
0x1bab   :  { %4150 = vrcp.f32 %v2659_v53 }
0x1bac   :  { %v2666_v54 = vpop.permute.xlu0 %2665 }
0x1bad   :  { %3827 = vmatpush3.bf16.msra.mxu0 %v2666_v54 }
0x1bae   :  { %2914 = vmatprep.subr.bf16.mxu0 %v4022_v24 }
0x1bb3   :  { %v4149_v55 = vpop.eup %4148 }
0x1bb4   :  { %v2662_v44 = vmul.f32 %v4149_v55, %v4145_v8 }
0x1bb5   :  { %v4151_v22 = vpop.eup %4150 }
0x1bb6   :  { %v2663_v56 = vmul.f32 %v4151_v22, %v4147_v39 }
0x1bb8   :  { %v2664_v57 = vpack.c.bf16 %v2663_v56, %v2662_v44  ;;  %v4044_v44 = vld [vmem:[#allocation9 + $0xc0] sm:$0xff]  }
0x1bb9   :  { %v4045_v56 = vld [vmem:[#allocation9 + $0x80] sm:$0xff]   ;;  %3609 = vmatprep.subr.bf16.mxu1 %v4044_v44 }
0x1bba   :  { %3829 = vmatmul.mubr.msk.bf16.vlgmr.msra.gmra.mrb[44].mxu0 %vm673_vm0, %v2664_v57  ;;  %v4046_v57 = vld [vmem:[#allocation9 + $0xc8] sm:$0xff]  }
0x1bbb   :  { %2946 = vmatprep.mubr.bf16.mxu0 %v4325_v1  ;;  %2915 = vmatpush1.bf16.msra.mxu0 %v4020_v5 }
0x1bbc   :  { %2916 = vmatprep.subr.bf16.mxu0 %v4025_v6 }
0x1bbf   :  { %2917 = vmatpush1.bf16.msra.mxu0 %v4023_v7 }
0x1c8d   :  { %v2705_v58 = vpop.f32.mrb[44].mxu0 }
0x1c8e   :  { %v3830_v12 = vpop.f32.mrb[45].mxu0 }
0x1c8f   :  { %v2708_v59 = vpop.f32.mrb[46].mxu0  ;;  %v4049_v12 = vld [vmem:[#allocation9 + $0x90] sm:$0xff]  }
0x1c90   :  { %v2712_v60 = vpack.c.bf16 %v2708_v59, %v2705_v58  ;;  %v3831_v61 = vpop.f32.mrb[47].mxu0  ;;  %v4048_v58 = vld [vmem:[#allocation9 + $0xd0] sm:$0xff]   ;;  %v4050_v59 = vld [vmem:[#allocation9 + $0xd8] sm:$0xff]  }
0x1c91   :  { %v4052_v61 = vld [vmem:[#allocation9 + $0xe0] sm:$0xff]  }
0x1c92   :  { %3837 = vmatmul.mubr.msk.bf16.vlgmr.msra.gmra.mrb[72].mxu1 %vm625_vm15, %v2712_v60  ;;  %v4051_v60 = vld [vmem:[#allocation9 + $0x98] sm:$0xff]  }
0x1c93   :  { %3610 = vmatpush3.bf16.msra.mxu1 %v4045_v56 }
0x1c94   :  { %3611 = vmatprep.subr.bf16.mxu1 %v4046_v57 }
0x1c97   :  { %3612 = vmatpush3.bf16.msra.mxu1 %v4047_v34 }
0x1c98   :  { %3613 = vmatprep.subr.bf16.mxu1 %v4048_v58 }
0x1c9b   :  { %3614 = vmatpush3.bf16.msra.mxu1 %v4049_v12  ;;  %v1778_v12 = vld [vmem:[#allocation10 + $0x17] ss:$0 sm:$0xff] }
0x1c9c   :  { %3615 = vmatprep.subr.bf16.mxu1 %v4050_v59 }
0x1c9f   :  { %3616 = vmatpush3.bf16.msra.mxu1 %v4051_v60 }
0x1ca0   :  { %3617 = vmatprep.subr.bf16.mxu1 %v4052_v61 }
0x1d65   :  { %v2766_v63 = vpop.f32.mrb[72].mxu1 }
0x1d66   :  { %v2773_v0 = vadd.f32 %v2766_v63, %v2589_v15  ;;  %v3838_v2 = vpop.f32.mrb[73].mxu1  ;;  %v4054_v63 = vld [vmem:[#allocation9 + $0xe8] sm:$0xff]  }
0x1d67   :  { %v2769_v3 = vpop.f32.mrb[74].mxu1  ;;  %v4056_v2 = vld [vmem:[#allocation9 + $0xf0] sm:$0xff]  }
0x1d68   :  { %v2775_v4 = vadd.f32 %v2773_v0, %v1773_v62  ;;  %v2774_v35 = vadd.f32 %v2769_v3, %v2590_v47  ;;  %v3839_v19 = vpop.f32.mrb[75].mxu1  ;;  %v4055_v0 = vld [vmem:[#allocation9 + $0xa8] sm:$0xff]   ;;  %v4057_v3 = vld [vmem:[#allocation9 + $0xb0] sm:$0xff]  }
0x1d69   :  { %v1777_v19 = vld [vmem:[#allocation10 + $0x7] ss:$8 sm:$0x3] }
0x1d6a   :  { %v2776_v37 = vadd.f32 %v2774_v35, %v1773_v62  ;;  %v2777_v1 = vadd.f32 %v2775_v4, %v4671_v49  ;;  %v4053_v62 = vld [vmem:[#allocation9 + $0xa0] sm:$0xff]   ;;  %v4058_v4 = vld [vmem:[#allocation9 + $0xf8] sm:$0xff]  }
0x1d6b   :  { %3618 = vmatpush3.bf16.msra.mxu1 %v4053_v62  ;;  %v4059_v35 = vld [vmem:[#allocation9 + $0xb8] sm:$0xff]  }
0x1d6c   :  { %2779 = vadd.xlane.f32.xlu1 %v2777_v1  ;;  %v2778_v18 = vadd.f32 %v2776_v37, %v4673_v51  ;;  %v4028_v51 = vld [vmem:[#allocation7 + $0xa4] ss:$8 sps:$4 sm:$0xff]   ;;  %3619 = vmatprep.subr.bf16.mxu1 %v4054_v63  ;;  %v2827_v37 = vrot.slane %v1777_v19, %v4507_v23 }
0x1d6d   :  { %2918 = vmatprep.subr.bf16.mxu0 %v4028_v51 }
0x1d6e   :  { %2919 = vmatpush1.bf16.msra.mxu0 %v4026_v17 }
0x1d6f   :  { %2920 = vmatprep.subr.bf16.mxu0 %v4031_v21  ;;  %3620 = vmatpush3.bf16.msra.mxu1 %v4055_v0 }
0x1d70   :  { %2781 = vadd.xlane.f32.xlu1 %v2778_v18  ;;  %3621 = vmatprep.subr.bf16.mxu1 %v4056_v2 }
0x1d72   :  { %2921 = vmatpush1.bf16.msra.mxu0 %v4029_v25 }
0x1d73   :  { %2922 = vmatprep.subr.bf16.mxu0 %v4034_v45  ;;  %3622 = vmatpush3.bf16.msra.mxu1 %v4057_v3 }
0x1d74   :  { %3623 = vmatprep.subr.bf16.mxu1 %v4058_v4 }
0x1d76   :  { %2923 = vmatpush1.bf16.msra.mxu0 %v4032_v27 }
0x1d77   :  { %2924 = vmatprep.subr.bf16.mxu0 %v4037_v28  ;;  %3624 = vmatpush3.bf16.msra.mxu1 %v4059_v35  ;;  %v4060_v35 = vld [vmem:[%s4862_s7] sm:$0xff]  }
0x1d7a   :  { %2925 = vmatpush1.bf16.msra.mxu0 %v4035_v29 }
0x1d7b   :  { %2926 = vmatprep.subr.bf16.mxu0 %v4040_v30 }
0x1d7e   :  { %2927 = vmatpush1.bf16.msra.mxu0 %v4038_v31 }
0x1d7f   :  { %2928 = vmatprep.subr.bf16.mxu0 %v4043_v20 }
0x1d82   :  { %2929 = vmatpush1.bf16.msra.mxu0 %v4041_v32 }
0x1d83   :  { %3840 = vmatprep.subr.bf16.mxu0 %v4327_v36 }
0x1df9   :  { %v2780_v9 = vpop.xlane.xlu1 %2779 }
0x1dfa   :  { %v2783_v10 = vmul.f32 0.0078125, %v2780_v9 }
0x1dfc   :  { %v2785_v11 = vsub.f32 %v2777_v1, %v2783_v10  ;;  %v2831_v1 = vrot.slane %v1777_v19, %v4511_v26 }
0x1dfd   :  { %v2782_v48 = vpop.xlane.xlu1 %2781 }
0x1dfe   :  { %v2784_v14 = vmul.f32 0.0078125, %v2782_v48  ;;  %v2787_v50 = vmul.f32 %v2785_v11, %v2785_v11 }
0x1e00   :  { %v2786_v16 = vsub.f32 %v2778_v18, %v2784_v14  ;;  %2789 = vadd.xlane.f32.xlu1 %v2787_v50 }
0x1e02   :  { %v2788_v49 = vmul.f32 %v2786_v16, %v2786_v16 }
0x1e04   :  { %2791 = vadd.xlane.f32.xlu1 %v2788_v49 }
0x1e8d   :  { %v2790_v33 = vpop.xlane.xlu1 %2789 }
0x1e8e   :  { %v2793_v8 = vmul.f32 0.0078125, %v2790_v33 }
0x1e90   :  { %v2795_v38 = vadd.f32 1e-05, %v2793_v8 }
0x1e91   :  { %v2792_v39 = vpop.xlane.xlu1 %2791 }
0x1e92   :  { %4152 = vrsqrt.f32 %v2795_v38  ;;  %v2794_v13 = vmul.f32 0.0078125, %v2792_v39 }
0x1e94   :  { %v2796_v40 = vadd.f32 1e-05, %v2794_v13 }
0x1e96   :  { %4154 = vrsqrt.f32 %v2796_v40 }
0x1e9c   :  { %v4153_v41 = vpop.eup %4152 }
0x1e9d   :  { %v2799_v15 = vmul.f32 %v4153_v41, %v2785_v11 }
0x1e9f   :  { %v2801_v46 = vmul.f32 %v2799_v15, %v1774_v42 }
0x1ea0   :  { %v4155_v43 = vpop.eup %4154 }
0x1ea1   :  { %v2800_v47 = vmul.f32 %v4155_v43, %v2786_v16  ;;  %v4806_v54 = vadd.f32 %v2801_v46, %v1775_v52 }
0x1ea3   :  { %v2802_v53 = vmul.f32 %v2800_v47, %v1774_v42 }
0x1ea5   :  { %v4808_v55 = vadd.f32 %v2802_v53, %v1775_v52 }
0x1ea7   :  { %v2805_v22 = vpack.c.bf16 %v4808_v55, %v4806_v54 }
0x1ea9   :  { %2947 = vmatmul.mubr.bf16.vlgmr.msra.gmra.mrb[48].mxu0 %v2805_v22 }
0x1eaa   :  { %3856 = vmatprep.mubr.msk.bf16.mxu0 %vm4328_vm14, %v4327_v36  ;;  %3841 = vmatpush3.bf16.msra.mxu0 %v4060_v35 }
0x1eab   :  { %3842 = vmatprep.subr.bf16.mxu0 %v4327_v36 }
0x1f7c   :  { %v2948_v18 = vpop.f32.mrb[48].mxu0 }
0x1f7d   :  { %v2949_v5 = vadd.f32 %v2948_v18, %v2827_v37  ;;  %v2950_v24 = vpop.f32.mrb[49].mxu0 }
0x1f7e   :  { %v2951_v6 = vadd.f32 %v2950_v24, %v2831_v1  ;;  %v2952_v7 = vpop.f32.mrb[50].mxu0 }
0x1f7f   :  { %v2957_v9 = vmul.f32 %v2949_v5, %v2949_v5  ;;  %v2953_v10 = vadd.f32 %v2952_v7, %v2827_v37  ;;  %v2954_v11 = vpop.f32.mrb[51].mxu0  ;;  %v4062_v7 = vld [vmem:[%s4862_s7 + $0x10] sm:$0xff]  }
0x1f80   :  { %v2958_v48 = vmul.f32 %v2951_v6, %v2951_v6  ;;  %v2955_v14 = vadd.f32 %v2954_v11, %v2831_v1  ;;  %v4065_v11 = vld [vmem:[%s4862_s7 + $0x28] sm:$0xff]  }
0x1f81   :  { %v2961_v50 = vmul.f32 %v2957_v9, %v2949_v5  ;;  %v2959_v16 = vmul.f32 %v2953_v10, %v2953_v10  ;;  %v4063_v9 = vld [vmem:[%s4862_s7 + $0x18] sm:$0xff]  }
0x1f82   :  { %v2962_v49 = vmul.f32 %v2958_v48, %v2951_v6  ;;  %v2960_v51 = vmul.f32 %v2955_v14, %v2955_v14  ;;  %v4066_v48 = vld [vmem:[%s4862_s7 + $0x30] sm:$0xff]  }
0x1f83   :  { %v2965_v17 = vmul.f32 0.044715, %v2961_v50  ;;  %v2963_v21 = vmul.f32 %v2959_v16, %v2953_v10 }
0x1f84   :  { %v2966_v25 = vmul.f32 0.044715, %v2962_v49  ;;  %v2964_v23 = vmul.f32 %v2960_v51, %v2955_v14 }
0x1f85   :  { %v2969_v45 = vadd.f32 %v2965_v17, %v2949_v5  ;;  %v2967_v26 = vmul.f32 0.044715, %v2963_v21 }
0x1f86   :  { %v2970_v27 = vadd.f32 %v2966_v25, %v2951_v6  ;;  %v2968_v28 = vmul.f32 0.044715, %v2964_v23  ;;  %v1779_v23 = vld [vmem:[#allocation10 + $0x18] ss:$0 sm:$0xff] }
0x1f87   :  { %v2973_v29 = vmul.f32 0.7978846, %v2969_v45  ;;  %v2971_v30 = vadd.f32 %v2967_v26, %v2953_v10 }
0x1f88   :  { %v2974_v31 = vmul.f32 0.7978846, %v2970_v27  ;;  %v2972_v20 = vadd.f32 %v2968_v28, %v2955_v14  ;;  %v1780_v28 = vld [vmem:[#allocation10 + $0x20] ss:$0 sm:$0xff] }
0x1f89   :  { %4156 = vtanh.f32 %v2973_v29  ;;  %v2975_v32 = vmul.f32 0.7978846, %v2971_v30 }
0x1f8a   :  { %4158 = vtanh.f32 %v2974_v31  ;;  %v2976_v33 = vmul.f32 0.7978846, %v2972_v20 }
0x1f8b   :  { %4160 = vtanh.f32 %v2975_v32 }
0x1f8c   :  { %4162 = vtanh.f32 %v2976_v33 }
0x1f93   :  { %v4157_v8 = vpop.eup %4156 }
0x1f94   :  { %v4159_v38 = vpop.eup %4158  ;;  %v2981_v39 = vadd.f32 1.0, %v4157_v8  ;;  %v321_v8 = vld [vmem:[#allocation10 + $0x10] ss:$0 sm:$0xff] }
0x1f95   :  { %v4161_v13 = vpop.eup %4160  ;;  %v2982_v40 = vadd.f32 1.0, %v4159_v38 }
0x1f96   :  { %v4163_v41 = vpop.eup %4162  ;;  %v2985_v15 = vmul.f32 0.5, %v2981_v39  ;;  %v2983_v42 = vadd.f32 1.0, %v4161_v13 }
0x1f97   :  { %v2984_v43 = vadd.f32 1.0, %v4163_v41  ;;  %v2986_v47 = vmul.f32 0.5, %v2982_v40 }
0x1f98   :  { %v2987_v46 = vmul.f32 0.5, %v2983_v42  ;;  %v2989_v53 = vmul.f32 %v2985_v15, %v2949_v5 }
0x1f99   :  { %v2988_v52 = vmul.f32 0.5, %v2984_v43  ;;  %v2990_v44 = vmul.f32 %v2986_v47, %v2951_v6 }
0x1f9a   :  { %v2991_v22 = vmul.f32 %v2987_v46, %v2953_v10  ;;  %v4064_v10 = vld [vmem:[%s4862_s7 + $0x20] sm:$0xff]  }
0x1f9b   :  { %v2992_v56 = vmul.f32 %v2988_v52, %v2955_v14  ;;  %v4067_v14 = vld [vmem:[%s4862_s7 + $0x38] sm:$0xff]  }
0x1f9c   :  { %v2993_v57 = vpack.c.bf16 %v2991_v22, %v2989_v53 }
0x1f9d   :  { %v2994_v34 = vpack.c.bf16 %v2992_v56, %v2990_v44 }
0x1f9f   :  { %3156 = vmatprep.mubr.bf16.mxu1 %v2994_v34 }
0x1fa0   :  { %3157 = vmatmul.mubr.bf16.vlgmr.msra.gmra.mrb[76].mxu1 %v2993_v57 }
0x2073   :  { %v3625_v58 = vpop.f32.mrb[76].mxu1 }
0x2074   :  { %v3626_v59 = vpop.f32.mrb[77].mxu1 }
0x2075   :  { %v3627_v60 = vadd.f32 %v3626_v59, %v3625_v58  ;;  %v3628_v61 = vpop.f32.mrb[78].mxu1 }
0x2076   :  { %v3629_v62 = vpop.f32.mrb[79].mxu1 }
0x2077   :  { %v3159_v63 = vadd.f32 %v3627_v60, %v1778_v12  ;;  %v3630_v0 = vadd.f32 %v3629_v62, %v3628_v61 }
0x2079   :  { %v3162_v2 = vadd.f32 %v3630_v0, %v1778_v12  ;;  %v3165_v3 = vadd.f32 %v3159_v63, %v4806_v54 }
0x207b   :  { %3167 = vadd.xlane.f32.xlu1 %v3165_v3  ;;  %v3166_v4 = vadd.f32 %v3162_v2, %v4808_v55  ;;  %v4061_v55 = vld [vmem:[%s4862_s7 + $0x8] sm:$0xff]  }
0x207c   :  { %3843 = vmatpush3.bf16.msra.mxu0 %v4061_v55 }
0x207d   :  { %3844 = vmatprep.subr.bf16.mxu0 %v4327_v36 }
0x207f   :  { %3169 = vadd.xlane.f32.xlu1 %v3166_v4 }
0x2080   :  { %3845 = vmatpush3.bf16.msra.mxu0 %v4062_v7 }
0x2081   :  { %3846 = vmatprep.subr.bf16.mxu0 %v4327_v36 }
0x2084   :  { %3847 = vmatpush3.bf16.msra.mxu0 %v4063_v9 }
0x2085   :  { %3848 = vmatprep.subr.bf16.mxu0 %v4327_v36 }
0x2088   :  { %3849 = vmatpush3.bf16.msra.mxu0 %v4064_v10 }
0x2089   :  { %3850 = vmatprep.subr.bf16.mxu0 %v4327_v36 }
0x208c   :  { %3851 = vmatpush3.bf16.msra.mxu0 %v4065_v11 }
0x208d   :  { %3852 = vmatprep.subr.bf16.mxu0 %v4327_v36 }
0x2090   :  { %3853 = vmatpush3.bf16.msra.mxu0 %v4066_v48 }
0x2091   :  { %3854 = vmatprep.subr.bf16.mxu0 %v4327_v36 }
0x2094   :  { %3855 = vmatpush3.bf16.msra.mxu0 %v4067_v14 }
0x2108   :  { %v3168_v19 = vpop.xlane.xlu1 %3167 }
0x2109   :  { %v3171_v37 = vmul.f32 0.0078125, %v3168_v19 }
0x210b   :  { %v3173_v1 = vsub.f32 %v3165_v3, %v3171_v37 }
0x210c   :  { %v3170_v18 = vpop.xlane.xlu1 %3169 }
0x210d   :  { %v3172_v5 = vmul.f32 0.0078125, %v3170_v18  ;;  %v3175_v24 = vmul.f32 %v3173_v1, %v3173_v1 }
0x210f   :  { %v3174_v6 = vsub.f32 %v3166_v4, %v3172_v5  ;;  %3177 = vadd.xlane.f32.xlu0 %v3175_v24 }
0x2111   :  { %v3176_v54 = vmul.f32 %v3174_v6, %v3174_v6 }
0x2113   :  { %3179 = vadd.xlane.f32.xlu1 %v3176_v54 }
0x219c   :  { %v3178_v50 = vpop.xlane.xlu0 %3177 }
0x219d   :  { %v3181_v16 = vmul.f32 0.0078125, %v3178_v50 }
0x219f   :  { %v3183_v49 = vadd.f32 1e-05, %v3181_v16 }
0x21a0   :  { %v3180_v51 = vpop.xlane.xlu1 %3179 }
0x21a1   :  { %4164 = vrsqrt.f32 %v3183_v49  ;;  %v3182_v17 = vmul.f32 0.0078125, %v3180_v51 }
0x21a3   :  { %v3184_v21 = vadd.f32 1e-05, %v3182_v17 }
0x21a5   :  { %4166 = vrsqrt.f32 %v3184_v21 }
0x21ab   :  { %v4165_v25 = vpop.eup %4164 }
0x21ac   :  { %v3187_v45 = vmul.f32 %v4165_v25, %v3173_v1 }
0x21ae   :  { %v3189_v26 = vmul.f32 %v3187_v45, %v1779_v23 }
0x21af   :  { %v4167_v27 = vpop.eup %4166 }
0x21b0   :  { %v3188_v29 = vmul.f32 %v4167_v27, %v3174_v6  ;;  %v3191_v31 = vadd.f32 %v3189_v26, %v1780_v28 }
0x21b2   :  { %v3190_v30 = vmul.f32 %v3188_v29, %v1779_v23  ;;  %v3193_v36 = vmax.f32 %v3191_v31, 0.0 }
0x21b4   :  { %v3192_v20 = vadd.f32 %v3190_v30, %v1780_v28 }
0x21b6   :  { %v3194_v32 = vmax.f32 %v3192_v20, 0.0 }
0x21b8   :  { %v3195_v33 = vpack.c.bf16 %v3194_v32, %v3193_v36 }
0x21ba   :  { %3857 = vmatmul.mubr.bf16.vlgmr.msra.gmra.mrb[52].mxu0 %v3195_v33 }
0x228d   :  { %v3294_v38 = vpop.f32.mrb[52].mxu0 }
0x228e   :  { %v3295_v39 = vadd.f32 %v3294_v38, %v321_v8  ;;  %v3858_v13 = vpop.f32.mrb[53].mxu0 }
0x228f   :  { %v3297_v40 = vpop.f32.mrb[54].mxu0 }
0x2290   :  { %3301 = vst [vmem:[%s4864_s9] sm:$0xff] %v3295_v39  ;;  %v3298_v41 = vadd.f32 %v3297_v40, %v321_v8  ;;  %v3859_v15 = vpop.f32.mrb[55].mxu0 }
0x2292   :  { %3302 = vst [vmem:[%s4864_s9 + $0x8] sm:$0xff] %v3298_v41 }
0x2293   :  { %3307 = vsyncpa [#allocation3], 1 }
0x2294   :  { %3308 = vsyncpa [#allocation5], 1 }
0x2295   :  { %3309 = vsyncpa [#allocation8], 1 }
0x2296   :  { %3310 = vsyncpa [#allocation11], 1 }

</bundles_post_ra>
